<compile_context>
chip_gen: v6e
topology: v6e:2x2x1
jax: 0.10.0
libtpu: 0.0.40
codegen_flags: <defaults>
</compile_context>

<pallas_src>
import functools
import numpy as np

import jax
import jax.numpy as jnp
from jax.experimental import pallas as pl
from jax.experimental.pallas import tpu as pltpu


# ---------------------------------------------------------------------------
# Pallas kernel: tiled (M,K)x(K,N) matmul with fused bias + optional ReLU
# ---------------------------------------------------------------------------
def _matmul_bias_act_kernel(x_ref, w_ref, b_ref, o_ref, acc_ref, *, relu):
    k = pl.program_id(2)

    @pl.when(k == 0)
    def _():
        acc_ref[...] = jnp.zeros_like(acc_ref)

    acc_ref[...] += jnp.dot(x_ref[...], w_ref[...],
                            preferred_element_type=jnp.float32)

    @pl.when(k == pl.num_programs(2) - 1)
    def _():
        out = acc_ref[...] + b_ref[...]
        if relu:
            out = jnp.maximum(out, 0.0)
        o_ref[...] = out.astype(o_ref.dtype)


def _rup(x, m):
    return ((x + m - 1) // m) * m


def pallas_linear_prepadded(x, wp, bp, n_out, *, relu, tm=512, tk_max=2048):
    """y = relu?(x @ W + b) using pre-padded W (Kp,Np) and b (1,Np).

    Only the (small) activation side is padded per call; weights/bias were
    padded once in prepare_params().
    """
    M, K = x.shape
    Kp, Np = wp.shape
    assert K <= Kp and Kp % 128 == 0 and Np % 128 == 0 and bp.shape == (1, Np)

    tm = min(tm, _rup(M, 8))          # sublane granularity
    Mp = _rup(M, tm)
    tn = 128

    if Kp <= tk_max:
        tk = Kp
    else:
        tk = tk_max - (tk_max % 128)
        while Kp % tk != 0:
            tk -= 128

    xp = jnp.zeros((Mp, Kp), jnp.float32).at[:M, :K].set(x.astype(jnp.float32))

    cost = pl.CostEstimate(
        flops=2 * Mp * Kp * Np,
        transcendentals=0,
        bytes_accessed=4 * (Mp * Kp + Kp * Np + Mp * Np + Np),
    )

    out = pl.pallas_call(
        functools.partial(_matmul_bias_act_kernel, relu=relu),
        out_shape=jax.ShapeDtypeStruct((Mp, Np), jnp.float32),
        grid_spec=pltpu.PrefetchScalarGridSpec(
            num_scalar_prefetch=0,
            grid=(Mp // tm, Np // tn, Kp // tk),
            in_specs=[
                pl.BlockSpec((tm, tk), lambda i, j, k: (i, k)),
                pl.BlockSpec((tk, tn), lambda i, j, k: (k, j)),
                pl.BlockSpec((1, tn), lambda i, j, k: (0, j)),
            ],
            out_specs=pl.BlockSpec((tm, tn), lambda i, j, k: (i, j)),
            scratch_shapes=[pltpu.VMEM((tm, tn), jnp.float32)],
        ),
        compiler_params=pltpu.CompilerParams(
            dimension_semantics=("parallel", "parallel", "arbitrary")),
        cost_estimate=cost,
    )(xp, wp, bp)
    return out[:M, :n_out]


# ---------------------------------------------------------------------------
# Conv (valid, stride 1) as im2col + Pallas matmul, fused bias + ReLU
# ---------------------------------------------------------------------------
def conv2d_relu(x, wp, bp, *, cout, khw):
    """x: (N,H,W,Cin) NHWC.  wp/bp: pre-padded im2col matmul weight/bias."""
    # TODO(synk): at large batch, extract the kH*kW shifted windows inside the
    # kernel instead of materializing the im2col patch tensor (fine at batch 2).
    N, H, W, Cin = x.shape
    kH, kW = khw
    Ho, Wo = H - kH + 1, W - kW + 1
    patches = [x[:, i:i + Ho, j:j + Wo, :] for i in range(kH) for j in range(kW)]
    pm = jnp.concatenate(patches, axis=-1).reshape(N * Ho * Wo, kH * kW * Cin)
    y = pallas_linear_prepadded(pm, wp, bp, cout, relu=True, tm=512)
    return y.reshape(N, Ho, Wo, cout)


def maxpool2x2(x):
    """MaxPool2d(2,2) on NHWC (floor behavior for odd dims, like PyTorch)."""
    N, H, W, C = x.shape
    Hc, Wc = (H // 2) * 2, (W // 2) * 2
    x = x[:, :Hc, :Wc, :].reshape(N, H // 2, 2, W // 2, 2, C)
    return x.max(axis=(2, 4))


def _adaptive_matrix(in_size, out_size):
    """A[o, i] averaging matrix with exact PyTorch adaptive-pool bin boundaries."""
    A = np.zeros((out_size, in_size), dtype=np.float32)
    for i in range(out_size):
        start = (i * in_size) // out_size
        end = ((i + 1) * in_size + out_size - 1) // out_size
        A[i, start:end] = 1.0 / (end - start)
    return jnp.asarray(A)


def _feature_hw(h, w):
    """Spatial size of the conv stack output for an (h, w) input."""
    for k in (5, 3, 3):
        h = (h - k + 1) // 2
        w = (w - k + 1) // 2
    return h, w


# ---------------------------------------------------------------------------
# Parameters (deterministic, shapes exactly as Net.__init__)
# ---------------------------------------------------------------------------
def init_params(key):
    ks = jax.random.split(key, 6)

    def kaiming(k, shape, fan_in):        # kaiming_normal_, fan_in, relu
        return jax.random.normal(k, shape, jnp.float32) * np.sqrt(2.0 / fan_in)

    def xavier(k, shape):                 # xavier_normal_ (std symmetric in in/out)
        fan_in, fan_out = shape
        return jax.random.normal(k, shape, jnp.float32) * np.sqrt(2.0 / (fan_in + fan_out))

    p = {}
    p['conv1_w'] = kaiming(ks[0], (32, 3, 5, 5), 3 * 5 * 5)
    p['conv1_b'] = jnp.zeros((32,), jnp.float32)
    p['conv2_w'] = kaiming(ks[1], (64, 32, 3, 3), 32 * 3 * 3)
    p['conv2_b'] = jnp.zeros((64,), jnp.float32)
    p['conv3_w'] = kaiming(ks[2], (128, 64, 3, 3), 64 * 3 * 3)
    p['conv3_b'] = jnp.zeros((128,), jnp.float32)
    # FC weights stored as (in_features, out_features).
    p['fc1_w'] = xavier(ks[3], (128 * 30 * 62, 120))
    p['fc1_b'] = jnp.zeros((120,), jnp.float32)
    p['fc2_w'] = xavier(ks[4], (120, 84))
    p['fc2_b'] = jnp.zeros((84,), jnp.float32)
    p['fc3_w'] = xavier(ks[5], (84, 4))
    p['fc3_b'] = jnp.zeros((4,), jnp.float32)
    return p


def _pad_wb(wm, b):
    """Pad a (K,N) matmul weight and (N,) bias to 128-aligned K/N, once."""
    K, N = wm.shape
    Kp, Np = _rup(K, 128), _rup(N, 128)
    wp = jnp.zeros((Kp, Np), jnp.float32).at[:K, :N].set(wm.astype(jnp.float32))
    bp = jnp.zeros((1, Np), jnp.float32).at[0, :N].set(b.astype(jnp.float32))
    return wp, bp


def prepare_params(params, input_hw):
    """One-time, offline rewrite of the parameters into matmul-ready form.

    - conv weights -> im2col layout, zero-padded to 128-aligned K/N.
    - AdaptiveAvgPool2d((30,62)) + CHW flatten folded into fc1's weight
      (exact linear-algebra identity), dropping fc1's K from 238080 to
      128 * Hf * Wf, and re-indexed to (h, w, c) so the NHWC feature map can be
      flattened directly.
    """
    Hf, Wf = _feature_hw(*input_hw)
    prep = {}

    for name in ('conv1', 'conv2', 'conv3'):
        w, b = params[f'{name}_w'], params[f'{name}_b']
        cout, cin, kh, kw = w.shape
        wm = jnp.transpose(w, (2, 3, 1, 0)).reshape(kh * kw * cin, cout)
        prep[f'{name}_wp'], prep[f'{name}_bp'] = _pad_wb(wm, b)

    # Fold adaptive average pool + flatten into fc1.
    Ah = _adaptive_matrix(Hf, 30)                      # (30, Hf)  Ah[o, h]
    Aw = _adaptive_matrix(Wf, 62)                      # (62, Wf)  Aw[p, w]
    w4 = params['fc1_w'].reshape(128, 30, 62, 120)     # [c, o, p, f]
    w_eff = jnp.einsum('oh,pw,copf->hwcf', Ah, Aw, w4).reshape(Hf * Wf * 128, 120)
    prep['fc1_wp'], prep['fc1_bp'] = _pad_wb(w_eff, params['fc1_b'])

    for name in ('fc2', 'fc3'):
        prep[f'{name}_wp'], prep[f'{name}_bp'] = _pad_wb(
            params[f'{name}_w'], params[f'{name}_b'])
    return prep


# ---------------------------------------------------------------------------
# Forward pass (matches Net.forward, inference mode)
# ---------------------------------------------------------------------------
def forward(prepared, x_nchw):
    x = jnp.transpose(x_nchw, (0, 2, 3, 1)).astype(jnp.float32)   # NCHW -> NHWC

    x = maxpool2x2(conv2d_relu(x, prepared['conv1_wp'], prepared['conv1_bp'],
                               cout=32, khw=(5, 5)))
    # dropout(p=0.2): identity at inference
    x = maxpool2x2(conv2d_relu(x, prepared['conv2_wp'], prepared['conv2_bp'],
                               cout=64, khw=(3, 3)))
    # dropout(p=0.2): identity at inference
    x = maxpool2x2(conv2d_relu(x, prepared['conv3_wp'], prepared['conv3_bp'],
                               cout=128, khw=(3, 3)))

    # AdaptiveAvgPool2d((30,62)) + torch.flatten(x,1) are folded into fc1_wp,
    # which is laid out in (h, w, c) order -> flatten the NHWC map directly.
    x = x.reshape(x.shape[0], -1)

    x = pallas_linear_prepadded(x, prepared['fc1_wp'], prepared['fc1_bp'], 120,
                                relu=True, tm=8)
    x = pallas_linear_prepadded(x, prepared['fc2_wp'], prepared['fc2_bp'], 84,
                                relu=True, tm=8)
    x = pallas_linear_prepadded(x, prepared['fc3_wp'], prepared['fc3_bp'], 4,
                                relu=False, tm=8)
    return x


if __name__ == "__main__":
    key = jax.random.PRNGKey(0)
    k_params, k_input = jax.random.split(key)

    params = init_params(k_params)
    # Small NCHW input consistent with the module (3 input channels).
    x = jax.random.normal(k_input, (2, 3, 52, 52), jnp.float32)

    # One-time prepare: fold pool/flatten into fc1, pre-pad all matmul weights.
    prepared = prepare_params(params, (52, 52))

    out = jax.jit(forward)(prepared, x)
    out = jax.block_until_ready(out)

    assert out.shape == (2, 4), out.shape
    assert jnp.all(jnp.isfinite(out))
    print("KERNEL_OK")
</pallas_src>

<mosaic_0001>
module attributes {stable_mosaic.version = 11 : i64} {
  func.func @_matmul_bias_act_kernel(%arg0: i32, %arg1: i32, %arg2: i32, %arg3: memref<512x128xf32, #tpu.memory_space<vmem>>, %arg4: memref<128x128xf32, #tpu.memory_space<vmem>>, %arg5: memref<1x128xf32, #tpu.memory_space<vmem>>, %arg6: memref<512x128xf32, #tpu.memory_space<vmem>>, %arg7: memref<512x128xf32, #tpu.memory_space<vmem>>) attributes {dimension_semantics = [#tpu.dimension_semantics<parallel>, #tpu.dimension_semantics<parallel>, #tpu.dimension_semantics<arbitrary>], iteration_bounds = array<i64: 9, 1, 1>, scalar_prefetch = 0 : i64, scratch_operands = 1 : i64, tpu.core_type = #tpu.core_type<tc>, window_params = [{transform_indices = @transform_0, window_bounds = array<i64: 512, 128>}, {transform_indices = @transform_1, window_bounds = array<i64: 128, 128>}, {transform_indices = @transform_2, window_bounds = array<i64: 1, 128>}, {transform_indices = @transform_3, window_bounds = array<i64: 512, 128>}]} {
    %c0_i32 = arith.constant 0 : i32
    %0 = arith.cmpi eq, %arg2, %c0_i32 : i32
    %1 = arith.extui %0 : i1 to i32
    %c0_i32_0 = arith.constant 0 : i32
    %2 = arith.cmpi ne, %1, %c0_i32_0 : i32
    scf.if %2 {
      %cst_10 = arith.constant 0.000000e+00 : f32
      %12 = vector.broadcast %cst_10 : f32 to vector<512x128xf32>
      %c0_11 = arith.constant 0 : index
      %c0_12 = arith.constant 0 : index
      %13 = vector.load %arg7[%c0_11, %c0_12] : memref<512x128xf32, #tpu.memory_space<vmem>>, vector<512x128xf32>
      tpu.vector_store %arg7[%c0_11, %c0_12], %12 {strides = array<i32>} : memref<512x128xf32, #tpu.memory_space<vmem>>, vector<512x128xf32>,
    } else {
    }
    %c0 = arith.constant 0 : index
    %c0_1 = arith.constant 0 : index
    %3 = vector.load %arg7[%c0, %c0_1] : memref<512x128xf32, #tpu.memory_space<vmem>>, vector<512x128xf32>
    %c0_2 = arith.constant 0 : index
    %c0_3 = arith.constant 0 : index
    %4 = vector.load %arg3[%c0_2, %c0_3] : memref<512x128xf32, #tpu.memory_space<vmem>>, vector<512x128xf32>
    %c0_4 = arith.constant 0 : index
    %c0_5 = arith.constant 0 : index
    %5 = vector.load %arg4[%c0_4, %c0_5] : memref<128x128xf32, #tpu.memory_space<vmem>>, vector<128x128xf32>
    %cst = arith.constant dense<0.000000e+00> : vector<512x128xf32>
    %6 = tpu.matmul %4, %5, %cst {dimension_numbers = #tpu.dot_dimension_numbers<[1], [0], [0], [1], [0, 0, 1, 1], [], []>} : vector<512x128xf32>, vector<128x128xf32>, vector<512x128xf32> -> vector<512x128xf32>
    %7 = arith.addf %3, %6 : vector<512x128xf32>
    %c0_6 = arith.constant 0 : index
    %c0_7 = arith.constant 0 : index
    %8 = vector.load %arg7[%c0_6, %c0_7] : memref<512x128xf32, #tpu.memory_space<vmem>>, vector<512x128xf32>
    tpu.vector_store %arg7[%c0_6, %c0_7], %7 {strides = array<i32>} : memref<512x128xf32, #tpu.memory_space<vmem>>, vector<512x128xf32>,
    %c0_i32_8 = arith.constant 0 : i32
    %9 = arith.cmpi eq, %arg2, %c0_i32_8 : i32
    %10 = arith.extui %9 : i1 to i32
    %c0_i32_9 = arith.constant 0 : i32
    %11 = arith.cmpi ne, %10, %c0_i32_9 : i32
    scf.if %11 {
      %c0_10 = arith.constant 0 : index
      %c0_11 = arith.constant 0 : index
      %12 = vector.load %arg7[%c0_10, %c0_11] : memref<512x128xf32, #tpu.memory_space<vmem>>, vector<512x128xf32>
      %c0_12 = arith.constant 0 : index
      %c0_13 = arith.constant 0 : index
      %13 = vector.load %arg5[%c0_12, %c0_13] : memref<1x128xf32, #tpu.memory_space<vmem>>, vector<1x128xf32>
      %14 = vector.broadcast %13 : vector<1x128xf32> to vector<512x128xf32>
      %15 = arith.addf %12, %14 : vector<512x128xf32>
      %cst_14 = arith.constant 0.000000e+00 : f32
      %16 = vector.broadcast %cst_14 : f32 to vector<512x128xf32>
      %17 = arith.maximumf %15, %16 : vector<512x128xf32>
      %c0_15 = arith.constant 0 : index
      %c0_16 = arith.constant 0 : index
      %18 = vector.load %arg6[%c0_15, %c0_16] : memref<512x128xf32, #tpu.memory_space<vmem>>, vector<512x128xf32>
      tpu.vector_store %arg6[%c0_15, %c0_16], %17 {strides = array<i32>} : memref<512x128xf32, #tpu.memory_space<vmem>>, vector<512x128xf32>,
    } else {
    }
    return
  }
  func.func @transform_0(%arg0: i32, %arg1: i32, %arg2: i32) -> (i32, i32) {
    %c0_i32 = arith.constant 0 : i32
    return %arg0, %arg2 : i32, i32
  }
  func.func @transform_1(%arg0: i32, %arg1: i32, %arg2: i32) -> (i32, i32) {
    %c0_i32 = arith.constant 0 : i32
    return %arg2, %arg1 : i32, i32
  }
  func.func @transform_2(%arg0: i32, %arg1: i32, %arg2: i32) -> (i32, i32) {
    %c0_i32 = arith.constant 0 : i32
    %c0_i32_0 = arith.constant 0 : i32
    return %c0_i32, %arg1 : i32, i32
  }
  func.func @transform_3(%arg0: i32, %arg1: i32, %arg2: i32) -> (i32, i32) {
    %c0_i32 = arith.constant 0 : i32
    return %arg0, %arg1 : i32, i32
  }
}

module attributes {stable_mosaic.version = 11 : i64} {
  func.func @_matmul_bias_act_kernel(%arg0: i32, %arg1: i32, %arg2: i32, %arg3: memref<512x384xf32, #tpu.memory_space<vmem>>, %arg4: memref<384x128xf32, #tpu.memory_space<vmem>>, %arg5: memref<1x128xf32, #tpu.memory_space<vmem>>, %arg6: memref<512x128xf32, #tpu.memory_space<vmem>>, %arg7: memref<512x128xf32, #tpu.memory_space<vmem>>) attributes {dimension_semantics = [#tpu.dimension_semantics<parallel>, #tpu.dimension_semantics<parallel>, #tpu.dimension_semantics<arbitrary>], iteration_bounds = array<i64: 2, 1, 1>, scalar_prefetch = 0 : i64, scratch_operands = 1 : i64, tpu.core_type = #tpu.core_type<tc>, window_params = [{transform_indices = @transform_0, window_bounds = array<i64: 512, 384>}, {transform_indices = @transform_1, window_bounds = array<i64: 384, 128>}, {transform_indices = @transform_2, window_bounds = array<i64: 1, 128>}, {transform_indices = @transform_3, window_bounds = array<i64: 512, 128>}]} {
    %c0_i32 = arith.constant 0 : i32
    %0 = arith.cmpi eq, %arg2, %c0_i32 : i32
    %1 = arith.extui %0 : i1 to i32
    %c0_i32_0 = arith.constant 0 : i32
    %2 = arith.cmpi ne, %1, %c0_i32_0 : i32
    scf.if %2 {
      %cst_10 = arith.constant 0.000000e+00 : f32
      %12 = vector.broadcast %cst_10 : f32 to vector<512x128xf32>
      %c0_11 = arith.constant 0 : index
      %c0_12 = arith.constant 0 : index
      %13 = vector.load %arg7[%c0_11, %c0_12] : memref<512x128xf32, #tpu.memory_space<vmem>>, vector<512x128xf32>
      tpu.vector_store %arg7[%c0_11, %c0_12], %12 {strides = array<i32>} : memref<512x128xf32, #tpu.memory_space<vmem>>, vector<512x128xf32>,
    } else {
    }
    %c0 = arith.constant 0 : index
    %c0_1 = arith.constant 0 : index
    %3 = vector.load %arg7[%c0, %c0_1] : memref<512x128xf32, #tpu.memory_space<vmem>>, vector<512x128xf32>
    %c0_2 = arith.constant 0 : index
    %c0_3 = arith.constant 0 : index
    %4 = vector.load %arg3[%c0_2, %c0_3] : memref<512x384xf32, #tpu.memory_space<vmem>>, vector<512x384xf32>
    %c0_4 = arith.constant 0 : index
    %c0_5 = arith.constant 0 : index
    %5 = vector.load %arg4[%c0_4, %c0_5] : memref<384x128xf32, #tpu.memory_space<vmem>>, vector<384x128xf32>
    %cst = arith.constant dense<0.000000e+00> : vector<512x128xf32>
    %6 = tpu.matmul %4, %5, %cst {dimension_numbers = #tpu.dot_dimension_numbers<[1], [0], [0], [1], [0, 0, 1, 1], [], []>} : vector<512x384xf32>, vector<384x128xf32>, vector<512x128xf32> -> vector<512x128xf32>
    %7 = arith.addf %3, %6 : vector<512x128xf32>
    %c0_6 = arith.constant 0 : index
    %c0_7 = arith.constant 0 : index
    %8 = vector.load %arg7[%c0_6, %c0_7] : memref<512x128xf32, #tpu.memory_space<vmem>>, vector<512x128xf32>
    tpu.vector_store %arg7[%c0_6, %c0_7], %7 {strides = array<i32>} : memref<512x128xf32, #tpu.memory_space<vmem>>, vector<512x128xf32>,
    %c0_i32_8 = arith.constant 0 : i32
    %9 = arith.cmpi eq, %arg2, %c0_i32_8 : i32
    %10 = arith.extui %9 : i1 to i32
    %c0_i32_9 = arith.constant 0 : i32
    %11 = arith.cmpi ne, %10, %c0_i32_9 : i32
    scf.if %11 {
      %c0_10 = arith.constant 0 : index
      %c0_11 = arith.constant 0 : index
      %12 = vector.load %arg7[%c0_10, %c0_11] : memref<512x128xf32, #tpu.memory_space<vmem>>, vector<512x128xf32>
      %c0_12 = arith.constant 0 : index
      %c0_13 = arith.constant 0 : index
      %13 = vector.load %arg5[%c0_12, %c0_13] : memref<1x128xf32, #tpu.memory_space<vmem>>, vector<1x128xf32>
      %14 = vector.broadcast %13 : vector<1x128xf32> to vector<512x128xf32>
      %15 = arith.addf %12, %14 : vector<512x128xf32>
      %cst_14 = arith.constant 0.000000e+00 : f32
      %16 = vector.broadcast %cst_14 : f32 to vector<512x128xf32>
      %17 = arith.maximumf %15, %16 : vector<512x128xf32>
      %c0_15 = arith.constant 0 : index
      %c0_16 = arith.constant 0 : index
      %18 = vector.load %arg6[%c0_15, %c0_16] : memref<512x128xf32, #tpu.memory_space<vmem>>, vector<512x128xf32>
      tpu.vector_store %arg6[%c0_15, %c0_16], %17 {strides = array<i32>} : memref<512x128xf32, #tpu.memory_space<vmem>>, vector<512x128xf32>,
    } else {
    }
    return
  }
  func.func @transform_0(%arg0: i32, %arg1: i32, %arg2: i32) -> (i32, i32) {
    %c0_i32 = arith.constant 0 : i32
    return %arg0, %arg2 : i32, i32
  }
  func.func @transform_1(%arg0: i32, %arg1: i32, %arg2: i32) -> (i32, i32) {
    %c0_i32 = arith.constant 0 : i32
    return %arg2, %arg1 : i32, i32
  }
  func.func @transform_2(%arg0: i32, %arg1: i32, %arg2: i32) -> (i32, i32) {
    %c0_i32 = arith.constant 0 : i32
    %c0_i32_0 = arith.constant 0 : i32
    return %c0_i32, %arg1 : i32, i32
  }
  func.func @transform_3(%arg0: i32, %arg1: i32, %arg2: i32) -> (i32, i32) {
    %c0_i32 = arith.constant 0 : i32
    return %arg0, %arg1 : i32, i32
  }
}

module attributes {stable_mosaic.version = 11 : i64} {
  func.func @_matmul_bias_act_kernel(%arg0: i32, %arg1: i32, %arg2: i32, %arg3: memref<168x640xf32, #tpu.memory_space<vmem>>, %arg4: memref<640x128xf32, #tpu.memory_space<vmem>>, %arg5: memref<1x128xf32, #tpu.memory_space<vmem>>, %arg6: memref<168x128xf32, #tpu.memory_space<vmem>>, %arg7: memref<168x128xf32, #tpu.memory_space<vmem>>) attributes {dimension_semantics = [#tpu.dimension_semantics<parallel>, #tpu.dimension_semantics<parallel>, #tpu.dimension_semantics<arbitrary>], iteration_bounds = array<i64: 1, 1, 1>, scalar_prefetch = 0 : i64, scratch_operands = 1 : i64, tpu.core_type = #tpu.core_type<tc>, window_params = [{transform_indices = @transform_0, window_bounds = array<i64: 168, 640>}, {transform_indices = @transform_1, window_bounds = array<i64: 640, 128>}, {transform_indices = @transform_2, window_bounds = array<i64: 1, 128>}, {transform_indices = @transform_3, window_bounds = array<i64: 168, 128>}]} {
    %c0_i32 = arith.constant 0 : i32
    %0 = arith.cmpi eq, %arg2, %c0_i32 : i32
    %1 = arith.extui %0 : i1 to i32
    %c0_i32_0 = arith.constant 0 : i32
    %2 = arith.cmpi ne, %1, %c0_i32_0 : i32
    scf.if %2 {
      %cst_10 = arith.constant 0.000000e+00 : f32
      %12 = vector.broadcast %cst_10 : f32 to vector<168x128xf32>
      %c0_11 = arith.constant 0 : index
      %c0_12 = arith.constant 0 : index
      %13 = vector.load %arg7[%c0_11, %c0_12] : memref<168x128xf32, #tpu.memory_space<vmem>>, vector<168x128xf32>
      tpu.vector_store %arg7[%c0_11, %c0_12], %12 {strides = array<i32>} : memref<168x128xf32, #tpu.memory_space<vmem>>, vector<168x128xf32>,
    } else {
    }
    %c0 = arith.constant 0 : index
    %c0_1 = arith.constant 0 : index
    %3 = vector.load %arg7[%c0, %c0_1] : memref<168x128xf32, #tpu.memory_space<vmem>>, vector<168x128xf32>
    %c0_2 = arith.constant 0 : index
    %c0_3 = arith.constant 0 : index
    %4 = vector.load %arg3[%c0_2, %c0_3] : memref<168x640xf32, #tpu.memory_space<vmem>>, vector<168x640xf32>
    %c0_4 = arith.constant 0 : index
    %c0_5 = arith.constant 0 : index
    %5 = vector.load %arg4[%c0_4, %c0_5] : memref<640x128xf32, #tpu.memory_space<vmem>>, vector<640x128xf32>
    %cst = arith.constant dense<0.000000e+00> : vector<168x128xf32>
    %6 = tpu.matmul %4, %5, %cst {dimension_numbers = #tpu.dot_dimension_numbers<[1], [0], [0], [1], [0, 0, 1, 1], [], []>} : vector<168x640xf32>, vector<640x128xf32>, vector<168x128xf32> -> vector<168x128xf32>
    %7 = arith.addf %3, %6 : vector<168x128xf32>
    %c0_6 = arith.constant 0 : index
    %c0_7 = arith.constant 0 : index
    %8 = vector.load %arg7[%c0_6, %c0_7] : memref<168x128xf32, #tpu.memory_space<vmem>>, vector<168x128xf32>
    tpu.vector_store %arg7[%c0_6, %c0_7], %7 {strides = array<i32>} : memref<168x128xf32, #tpu.memory_space<vmem>>, vector<168x128xf32>,
    %c0_i32_8 = arith.constant 0 : i32
    %9 = arith.cmpi eq, %arg2, %c0_i32_8 : i32
    %10 = arith.extui %9 : i1 to i32
    %c0_i32_9 = arith.constant 0 : i32
    %11 = arith.cmpi ne, %10, %c0_i32_9 : i32
    scf.if %11 {
      %c0_10 = arith.constant 0 : index
      %c0_11 = arith.constant 0 : index
      %12 = vector.load %arg7[%c0_10, %c0_11] : memref<168x128xf32, #tpu.memory_space<vmem>>, vector<168x128xf32>
      %c0_12 = arith.constant 0 : index
      %c0_13 = arith.constant 0 : index
      %13 = vector.load %arg5[%c0_12, %c0_13] : memref<1x128xf32, #tpu.memory_space<vmem>>, vector<1x128xf32>
      %14 = vector.broadcast %13 : vector<1x128xf32> to vector<168x128xf32>
      %15 = arith.addf %12, %14 : vector<168x128xf32>
      %cst_14 = arith.constant 0.000000e+00 : f32
      %16 = vector.broadcast %cst_14 : f32 to vector<168x128xf32>
      %17 = arith.maximumf %15, %16 : vector<168x128xf32>
      %c0_15 = arith.constant 0 : index
      %c0_16 = arith.constant 0 : index
      %18 = vector.load %arg6[%c0_15, %c0_16] : memref<168x128xf32, #tpu.memory_space<vmem>>, vector<168x128xf32>
      tpu.vector_store %arg6[%c0_15, %c0_16], %17 {strides = array<i32>} : memref<168x128xf32, #tpu.memory_space<vmem>>, vector<168x128xf32>,
    } else {
    }
    return
  }
  func.func @transform_0(%arg0: i32, %arg1: i32, %arg2: i32) -> (i32, i32) {
    %c0_i32 = arith.constant 0 : i32
    return %arg0, %arg2 : i32, i32
  }
  func.func @transform_1(%arg0: i32, %arg1: i32, %arg2: i32) -> (i32, i32) {
    %c0_i32 = arith.constant 0 : i32
    return %arg2, %arg1 : i32, i32
  }
  func.func @transform_2(%arg0: i32, %arg1: i32, %arg2: i32) -> (i32, i32) {
    %c0_i32 = arith.constant 0 : i32
    %c0_i32_0 = arith.constant 0 : i32
    return %c0_i32, %arg1 : i32, i32
  }
  func.func @transform_3(%arg0: i32, %arg1: i32, %arg2: i32) -> (i32, i32) {
    %c0_i32 = arith.constant 0 : i32
    return %arg0, %arg1 : i32, i32
  }
}

module attributes {stable_mosaic.version = 11 : i64} {
  func.func @_matmul_bias_act_kernel(%arg0: i32, %arg1: i32, %arg2: i32, %arg3: memref<8x2048xf32, #tpu.memory_space<vmem>>, %arg4: memref<2048x128xf32, #tpu.memory_space<vmem>>, %arg5: memref<1x128xf32, #tpu.memory_space<vmem>>, %arg6: memref<8x128xf32, #tpu.memory_space<vmem>>, %arg7: memref<8x128xf32, #tpu.memory_space<vmem>>) attributes {dimension_semantics = [#tpu.dimension_semantics<parallel>, #tpu.dimension_semantics<parallel>, #tpu.dimension_semantics<arbitrary>], iteration_bounds = array<i64: 1, 1, 1>, scalar_prefetch = 0 : i64, scratch_operands = 1 : i64, tpu.core_type = #tpu.core_type<tc>, window_params = [{transform_indices = @transform_0, window_bounds = array<i64: 8, 2048>}, {transform_indices = @transform_1, window_bounds = array<i64: 2048, 128>}, {transform_indices = @transform_2, window_bounds = array<i64: 1, 128>}, {transform_indices = @transform_3, window_bounds = array<i64: 8, 128>}]} {
    %c0_i32 = arith.constant 0 : i32
    %0 = arith.cmpi eq, %arg2, %c0_i32 : i32
    %1 = arith.extui %0 : i1 to i32
    %c0_i32_0 = arith.constant 0 : i32
    %2 = arith.cmpi ne, %1, %c0_i32_0 : i32
    scf.if %2 {
      %cst_10 = arith.constant 0.000000e+00 : f32
      %12 = vector.broadcast %cst_10 : f32 to vector<8x128xf32>
      %c0_11 = arith.constant 0 : index
      %c0_12 = arith.constant 0 : index
      %13 = vector.load %arg7[%c0_11, %c0_12] : memref<8x128xf32, #tpu.memory_space<vmem>>, vector<8x128xf32>
      tpu.vector_store %arg7[%c0_11, %c0_12], %12 {strides = array<i32>} : memref<8x128xf32, #tpu.memory_space<vmem>>, vector<8x128xf32>,
    } else {
    }
    %c0 = arith.constant 0 : index
    %c0_1 = arith.constant 0 : index
    %3 = vector.load %arg7[%c0, %c0_1] : memref<8x128xf32, #tpu.memory_space<vmem>>, vector<8x128xf32>
    %c0_2 = arith.constant 0 : index
    %c0_3 = arith.constant 0 : index
    %4 = vector.load %arg3[%c0_2, %c0_3] : memref<8x2048xf32, #tpu.memory_space<vmem>>, vector<8x2048xf32>
    %c0_4 = arith.constant 0 : index
    %c0_5 = arith.constant 0 : index
    %5 = vector.load %arg4[%c0_4, %c0_5] : memref<2048x128xf32, #tpu.memory_space<vmem>>, vector<2048x128xf32>
    %cst = arith.constant dense<0.000000e+00> : vector<8x128xf32>
    %6 = tpu.matmul %4, %5, %cst {dimension_numbers = #tpu.dot_dimension_numbers<[1], [0], [0], [1], [0, 0, 1, 1], [], []>} : vector<8x2048xf32>, vector<2048x128xf32>, vector<8x128xf32> -> vector<8x128xf32>
    %7 = arith.addf %3, %6 : vector<8x128xf32>
    %c0_6 = arith.constant 0 : index
    %c0_7 = arith.constant 0 : index
    %8 = vector.load %arg7[%c0_6, %c0_7] : memref<8x128xf32, #tpu.memory_space<vmem>>, vector<8x128xf32>
    tpu.vector_store %arg7[%c0_6, %c0_7], %7 {strides = array<i32>} : memref<8x128xf32, #tpu.memory_space<vmem>>, vector<8x128xf32>,
    %c0_i32_8 = arith.constant 0 : i32
    %9 = arith.cmpi eq, %arg2, %c0_i32_8 : i32
    %10 = arith.extui %9 : i1 to i32
    %c0_i32_9 = arith.constant 0 : i32
    %11 = arith.cmpi ne, %10, %c0_i32_9 : i32
    scf.if %11 {
      %c0_10 = arith.constant 0 : index
      %c0_11 = arith.constant 0 : index
      %12 = vector.load %arg7[%c0_10, %c0_11] : memref<8x128xf32, #tpu.memory_space<vmem>>, vector<8x128xf32>
      %c0_12 = arith.constant 0 : index
      %c0_13 = arith.constant 0 : index
      %13 = vector.load %arg5[%c0_12, %c0_13] : memref<1x128xf32, #tpu.memory_space<vmem>>, vector<1x128xf32>
      %14 = vector.broadcast %13 : vector<1x128xf32> to vector<8x128xf32>
      %15 = arith.addf %12, %14 : vector<8x128xf32>
      %cst_14 = arith.constant 0.000000e+00 : f32
      %16 = vector.broadcast %cst_14 : f32 to vector<8x128xf32>
      %17 = arith.maximumf %15, %16 : vector<8x128xf32>
      %c0_15 = arith.constant 0 : index
      %c0_16 = arith.constant 0 : index
      %18 = vector.load %arg6[%c0_15, %c0_16] : memref<8x128xf32, #tpu.memory_space<vmem>>, vector<8x128xf32>
      tpu.vector_store %arg6[%c0_15, %c0_16], %17 {strides = array<i32>} : memref<8x128xf32, #tpu.memory_space<vmem>>, vector<8x128xf32>,
    } else {
    }
    return
  }
  func.func @transform_0(%arg0: i32, %arg1: i32, %arg2: i32) -> (i32, i32) {
    %c0_i32 = arith.constant 0 : i32
    return %arg0, %arg2 : i32, i32
  }
  func.func @transform_1(%arg0: i32, %arg1: i32, %arg2: i32) -> (i32, i32) {
    %c0_i32 = arith.constant 0 : i32
    return %arg2, %arg1 : i32, i32
  }
  func.func @transform_2(%arg0: i32, %arg1: i32, %arg2: i32) -> (i32, i32) {
    %c0_i32 = arith.constant 0 : i32
    %c0_i32_0 = arith.constant 0 : i32
    return %c0_i32, %arg1 : i32, i32
  }
  func.func @transform_3(%arg0: i32, %arg1: i32, %arg2: i32) -> (i32, i32) {
    %c0_i32 = arith.constant 0 : i32
    return %arg0, %arg1 : i32, i32
  }
}

module attributes {stable_mosaic.version = 11 : i64} {
  func.func @_matmul_bias_act_kernel(%arg0: i32, %arg1: i32, %arg2: i32, %arg3: memref<8x128xf32, #tpu.memory_space<vmem>>, %arg4: memref<128x128xf32, #tpu.memory_space<vmem>>, %arg5: memref<1x128xf32, #tpu.memory_space<vmem>>, %arg6: memref<8x128xf32, #tpu.memory_space<vmem>>, %arg7: memref<8x128xf32, #tpu.memory_space<vmem>>) attributes {dimension_semantics = [#tpu.dimension_semantics<parallel>, #tpu.dimension_semantics<parallel>, #tpu.dimension_semantics<arbitrary>], iteration_bounds = array<i64: 1, 1, 1>, scalar_prefetch = 0 : i64, scratch_operands = 1 : i64, tpu.core_type = #tpu.core_type<tc>, window_params = [{transform_indices = @transform_0, window_bounds = array<i64: 8, 128>}, {transform_indices = @transform_1, window_bounds = array<i64: 128, 128>}, {transform_indices = @transform_2, window_bounds = array<i64: 1, 128>}, {transform_indices = @transform_3, window_bounds = array<i64: 8, 128>}]} {
    %c0_i32 = arith.constant 0 : i32
    %0 = arith.cmpi eq, %arg2, %c0_i32 : i32
    %1 = arith.extui %0 : i1 to i32
    %c0_i32_0 = arith.constant 0 : i32
    %2 = arith.cmpi ne, %1, %c0_i32_0 : i32
    scf.if %2 {
      %cst_10 = arith.constant 0.000000e+00 : f32
      %12 = vector.broadcast %cst_10 : f32 to vector<8x128xf32>
      %c0_11 = arith.constant 0 : index
      %c0_12 = arith.constant 0 : index
      %13 = vector.load %arg7[%c0_11, %c0_12] : memref<8x128xf32, #tpu.memory_space<vmem>>, vector<8x128xf32>
      tpu.vector_store %arg7[%c0_11, %c0_12], %12 {strides = array<i32>} : memref<8x128xf32, #tpu.memory_space<vmem>>, vector<8x128xf32>,
    } else {
    }
    %c0 = arith.constant 0 : index
    %c0_1 = arith.constant 0 : index
    %3 = vector.load %arg7[%c0, %c0_1] : memref<8x128xf32, #tpu.memory_space<vmem>>, vector<8x128xf32>
    %c0_2 = arith.constant 0 : index
    %c0_3 = arith.constant 0 : index
    %4 = vector.load %arg3[%c0_2, %c0_3] : memref<8x128xf32, #tpu.memory_space<vmem>>, vector<8x128xf32>
    %c0_4 = arith.constant 0 : index
    %c0_5 = arith.constant 0 : index
    %5 = vector.load %arg4[%c0_4, %c0_5] : memref<128x128xf32, #tpu.memory_space<vmem>>, vector<128x128xf32>
    %cst = arith.constant dense<0.000000e+00> : vector<8x128xf32>
    %6 = tpu.matmul %4, %5, %cst {dimension_numbers = #tpu.dot_dimension_numbers<[1], [0], [0], [1], [0, 0, 1, 1], [], []>} : vector<8x128xf32>, vector<128x128xf32>, vector<8x128xf32> -> vector<8x128xf32>
    %7 = arith.addf %3, %6 : vector<8x128xf32>
    %c0_6 = arith.constant 0 : index
    %c0_7 = arith.constant 0 : index
    %8 = vector.load %arg7[%c0_6, %c0_7] : memref<8x128xf32, #tpu.memory_space<vmem>>, vector<8x128xf32>
    tpu.vector_store %arg7[%c0_6, %c0_7], %7 {strides = array<i32>} : memref<8x128xf32, #tpu.memory_space<vmem>>, vector<8x128xf32>,
    %c0_i32_8 = arith.constant 0 : i32
    %9 = arith.cmpi eq, %arg2, %c0_i32_8 : i32
    %10 = arith.extui %9 : i1 to i32
    %c0_i32_9 = arith.constant 0 : i32
    %11 = arith.cmpi ne, %10, %c0_i32_9 : i32
    scf.if %11 {
      %c0_10 = arith.constant 0 : index
      %c0_11 = arith.constant 0 : index
      %12 = vector.load %arg7[%c0_10, %c0_11] : memref<8x128xf32, #tpu.memory_space<vmem>>, vector<8x128xf32>
      %c0_12 = arith.constant 0 : index
      %c0_13 = arith.constant 0 : index
      %13 = vector.load %arg5[%c0_12, %c0_13] : memref<1x128xf32, #tpu.memory_space<vmem>>, vector<1x128xf32>
      %14 = vector.broadcast %13 : vector<1x128xf32> to vector<8x128xf32>
      %15 = arith.addf %12, %14 : vector<8x128xf32>
      %cst_14 = arith.constant 0.000000e+00 : f32
      %16 = vector.broadcast %cst_14 : f32 to vector<8x128xf32>
      %17 = arith.maximumf %15, %16 : vector<8x128xf32>
      %c0_15 = arith.constant 0 : index
      %c0_16 = arith.constant 0 : index
      %18 = vector.load %arg6[%c0_15, %c0_16] : memref<8x128xf32, #tpu.memory_space<vmem>>, vector<8x128xf32>
      tpu.vector_store %arg6[%c0_15, %c0_16], %17 {strides = array<i32>} : memref<8x128xf32, #tpu.memory_space<vmem>>, vector<8x128xf32>,
    } else {
    }
    return
  }
  func.func @transform_0(%arg0: i32, %arg1: i32, %arg2: i32) -> (i32, i32) {
    %c0_i32 = arith.constant 0 : i32
    return %arg0, %arg2 : i32, i32
  }
  func.func @transform_1(%arg0: i32, %arg1: i32, %arg2: i32) -> (i32, i32) {
    %c0_i32 = arith.constant 0 : i32
    return %arg2, %arg1 : i32, i32
  }
  func.func @transform_2(%arg0: i32, %arg1: i32, %arg2: i32) -> (i32, i32) {
    %c0_i32 = arith.constant 0 : i32
    %c0_i32_0 = arith.constant 0 : i32
    return %c0_i32, %arg1 : i32, i32
  }
  func.func @transform_3(%arg0: i32, %arg1: i32, %arg2: i32) -> (i32, i32) {
    %c0_i32 = arith.constant 0 : i32
    return %arg0, %arg1 : i32, i32
  }
}

module attributes {stable_mosaic.version = 11 : i64} {
  func.func @_matmul_bias_act_kernel(%arg0: i32, %arg1: i32, %arg2: i32, %arg3: memref<8x128xf32, #tpu.memory_space<vmem>>, %arg4: memref<128x128xf32, #tpu.memory_space<vmem>>, %arg5: memref<1x128xf32, #tpu.memory_space<vmem>>, %arg6: memref<8x128xf32, #tpu.memory_space<vmem>>, %arg7: memref<8x128xf32, #tpu.memory_space<vmem>>) attributes {dimension_semantics = [#tpu.dimension_semantics<parallel>, #tpu.dimension_semantics<parallel>, #tpu.dimension_semantics<arbitrary>], iteration_bounds = array<i64: 1, 1, 1>, scalar_prefetch = 0 : i64, scratch_operands = 1 : i64, tpu.core_type = #tpu.core_type<tc>, window_params = [{transform_indices = @transform_0, window_bounds = array<i64: 8, 128>}, {transform_indices = @transform_1, window_bounds = array<i64: 128, 128>}, {transform_indices = @transform_2, window_bounds = array<i64: 1, 128>}, {transform_indices = @transform_3, window_bounds = array<i64: 8, 128>}]} {
    %c0_i32 = arith.constant 0 : i32
    %0 = arith.cmpi eq, %arg2, %c0_i32 : i32
    %1 = arith.extui %0 : i1 to i32
    %c0_i32_0 = arith.constant 0 : i32
    %2 = arith.cmpi ne, %1, %c0_i32_0 : i32
    scf.if %2 {
      %cst_10 = arith.constant 0.000000e+00 : f32
      %12 = vector.broadcast %cst_10 : f32 to vector<8x128xf32>
      %c0_11 = arith.constant 0 : index
      %c0_12 = arith.constant 0 : index
      %13 = vector.load %arg7[%c0_11, %c0_12] : memref<8x128xf32, #tpu.memory_space<vmem>>, vector<8x128xf32>
      tpu.vector_store %arg7[%c0_11, %c0_12], %12 {strides = array<i32>} : memref<8x128xf32, #tpu.memory_space<vmem>>, vector<8x128xf32>,
    } else {
    }
    %c0 = arith.constant 0 : index
    %c0_1 = arith.constant 0 : index
    %3 = vector.load %arg7[%c0, %c0_1] : memref<8x128xf32, #tpu.memory_space<vmem>>, vector<8x128xf32>
    %c0_2 = arith.constant 0 : index
    %c0_3 = arith.constant 0 : index
    %4 = vector.load %arg3[%c0_2, %c0_3] : memref<8x128xf32, #tpu.memory_space<vmem>>, vector<8x128xf32>
    %c0_4 = arith.constant 0 : index
    %c0_5 = arith.constant 0 : index
    %5 = vector.load %arg4[%c0_4, %c0_5] : memref<128x128xf32, #tpu.memory_space<vmem>>, vector<128x128xf32>
    %cst = arith.constant dense<0.000000e+00> : vector<8x128xf32>
    %6 = tpu.matmul %4, %5, %cst {dimension_numbers = #tpu.dot_dimension_numbers<[1], [0], [0], [1], [0, 0, 1, 1], [], []>} : vector<8x128xf32>, vector<128x128xf32>, vector<8x128xf32> -> vector<8x128xf32>
    %7 = arith.addf %3, %6 : vector<8x128xf32>
    %c0_6 = arith.constant 0 : index
    %c0_7 = arith.constant 0 : index
    %8 = vector.load %arg7[%c0_6, %c0_7] : memref<8x128xf32, #tpu.memory_space<vmem>>, vector<8x128xf32>
    tpu.vector_store %arg7[%c0_6, %c0_7], %7 {strides = array<i32>} : memref<8x128xf32, #tpu.memory_space<vmem>>, vector<8x128xf32>,
    %c0_i32_8 = arith.constant 0 : i32
    %9 = arith.cmpi eq, %arg2, %c0_i32_8 : i32
    %10 = arith.extui %9 : i1 to i32
    %c0_i32_9 = arith.constant 0 : i32
    %11 = arith.cmpi ne, %10, %c0_i32_9 : i32
    scf.if %11 {
      %c0_10 = arith.constant 0 : index
      %c0_11 = arith.constant 0 : index
      %12 = vector.load %arg7[%c0_10, %c0_11] : memref<8x128xf32, #tpu.memory_space<vmem>>, vector<8x128xf32>
      %c0_12 = arith.constant 0 : index
      %c0_13 = arith.constant 0 : index
      %13 = vector.load %arg5[%c0_12, %c0_13] : memref<1x128xf32, #tpu.memory_space<vmem>>, vector<1x128xf32>
      %14 = vector.broadcast %13 : vector<1x128xf32> to vector<8x128xf32>
      %15 = arith.addf %12, %14 : vector<8x128xf32>
      %c0_14 = arith.constant 0 : index
      %c0_15 = arith.constant 0 : index
      %16 = vector.load %arg6[%c0_14, %c0_15] : memref<8x128xf32, #tpu.memory_space<vmem>>, vector<8x128xf32>
      tpu.vector_store %arg6[%c0_14, %c0_15], %15 {strides = array<i32>} : memref<8x128xf32, #tpu.memory_space<vmem>>, vector<8x128xf32>,
    } else {
    }
    return
  }
  func.func @transform_0(%arg0: i32, %arg1: i32, %arg2: i32) -> (i32, i32) {
    %c0_i32 = arith.constant 0 : i32
    return %arg0, %arg2 : i32, i32
  }
  func.func @transform_1(%arg0: i32, %arg1: i32, %arg2: i32) -> (i32, i32) {
    %c0_i32 = arith.constant 0 : i32
    return %arg2, %arg1 : i32, i32
  }
  func.func @transform_2(%arg0: i32, %arg1: i32, %arg2: i32) -> (i32, i32) {
    %c0_i32 = arith.constant 0 : i32
    %c0_i32_0 = arith.constant 0 : i32
    return %c0_i32, %arg1 : i32, i32
  }
  func.func @transform_3(%arg0: i32, %arg1: i32, %arg2: i32) -> (i32, i32) {
    %c0_i32 = arith.constant 0 : i32
    return %arg0, %arg1 : i32, i32
  }
}

</mosaic_0001>

<bundles_post_ra>
// kernel: forward.6
= control target key start
LH: loop header
LB: loop body
LE: loop exit
PB: predicated region body
PF: predicated region fallthrough
CT: control target
= control target key end

     0   :  { %s1683_s12 = smov 0   ;;  %s1685_s13 = smov 0   ;;  %s1975_s0 = inlined_call_operand.vmem [shape: f32[4608,128], index: 0, kind: input, shape index: {}]   ;;  %s1976_s1 = inlined_call_operand.vmem [shape: f32[128,128], index: 1, kind: input, shape index: {}]   ;;  %s1977_s2 = inlined_call_operand.vmem [shape: f32[1,128], index: 2, kind: input, shape index: {}]   ;;  %s1978_s3 = inlined_call_operand.vmem [shape: f32[4608,128], index: 3, kind: output, shape index: {}]  }
   0x1   :  { %s1687_s14 = smov 0  }
   0x2 LB: > { %s32_s15 = sadd.s32 1, %s1657_s13  ;;  %p1367_p0 = scmp.ge.s32.totalorder %s1661_s14, 1  ;;  %s1661_s14 = sphi %s1687_s14, %s13_s14   ;;  %s1657_s13 = sphi %s1685_s13, %s1980_s13   ;;  %s1653_s12 = sphi %s1683_s12, %s1979_s12  }
   0x3   : > { %p34_p1 = scmp.ge.s32.totalorder %s32_s15, 9  ;;  %p188_p2 = scmp.lt.s32.totalorder %s1661_s14, 10 }
   0x5   : > { %s1982_s15 = smov (%p34_p1, %s32_s15), 0  ;;  %p189_p3 = pnand %p1367_p0, %p188_p2 }
   0x6   : > { %s1368_s5 = sshll.u32 (!%p189_p3), %s1653_s12, 6 }
   0x7   : > { %192 = sbr.rel (%p189_p3) target bundleno = 306 (0x132), region = 32  ;;  %p230_p4 = scmp.lt.s32.totalorder (!%p189_p3), %s1368_s5, 575 }
   0xc   : > { %v470_v0 = vld [vmem:[%s1976_s1 + $0x78] sm:$0xff]  ;;  %v469_v1 = vld [vmem:[%s1976_s1 + $0x70] sm:$0xff]  ;;  %v468_v2 = vld [vmem:[%s1976_s1 + $0x68] sm:$0xff]  ;;  %s1984_s5 = smov (!%p230_p4, %s1368_s5), 575 }
   0xd   : > { %1455 = vmatprep.subr.mxu0 %v470_v0  ;;  %1583 = vmatprep.subr.mxu1 %v470_v0  ;;  %v467_v3 = vld [vmem:[%s1976_s1 + $0x60] sm:$0xff]  ;;  %v466_v4 = vld [vmem:[%s1976_s1 + $0x58] sm:$0xff]  ;;  %v465_v5 = vld [vmem:[%s1976_s1 + $0x50] sm:$0xff]  ;;  %s1369_s21 = sshll.u32 %s1984_s5, 3 }
   0xe   : > { %1456 = vmatpush3.msra.mxu0 %v470_v0  ;;  %1599 = vmatpush3.msra.mxu1 %v470_v0  ;;  %v464_v6 = vld [vmem:[%s1976_s1 + $0x48] sm:$0xff]  ;;  %v463_v7 = vld [vmem:[%s1976_s1 + $0x40] sm:$0xff]  ;;  %v462_v8 = vld [vmem:[%s1976_s1 + $0x38] sm:$0xff]  ;;  %s1757_s26 = scalar_lea.vmem %s1975_s0, %s1369_s21  ;;  %s1838_s7 = scalar_lea.vmem %s1978_s3, %s1369_s21 }
   0xf   : > { %1457 = vmatprep.subr.mxu0 %v469_v1  ;;  %1584 = vmatprep.subr.mxu1 %v469_v1  ;;  %v461_v9 = vld [vmem:[%s1976_s1 + $0x30] sm:$0xff]  ;;  %v460_v10 = vld [vmem:[%s1976_s1 + $0x28] sm:$0xff]  ;;  %v459_v11 = vld [vmem:[%s1976_s1 + $0x20] sm:$0xff] }
  0x10   : > { %1458 = vmatpush3.msra.mxu0 %v469_v1  ;;  %1600 = vmatpush3.msra.mxu1 %v469_v1  ;;  %v458_v12 = vld [vmem:[%s1976_s1 + $0x18] sm:$0xff]  ;;  %v457_v13 = vld [vmem:[%s1976_s1 + $0x10] sm:$0xff]  ;;  %v456_v14 = vld [vmem:[%s1976_s1 + $0x8] sm:$0xff] }
  0x11   : > { %1459 = vmatprep.subr.mxu0 %v468_v2  ;;  %1585 = vmatprep.subr.mxu1 %v468_v2  ;;  %v455_v15 = vld [vmem:[%s1976_s1] sm:$0xff]  ;;  %v392_v18 = vld [vmem:[%s1757_s26 + $0x8] sm:$0xff]  ;;  %v393_v20 = vld [vmem:[%s1757_s26 + $0x10] sm:$0xff] }
  0x12   : > { %1460 = vmatpush3.msra.mxu0 %v468_v2  ;;  %1601 = vmatpush3.msra.mxu1 %v468_v2  ;;  %v391_v16 = vld [vmem:[%s1757_s26] sm:$0xff]  ;;  %v424_v19 = vld [vmem:[%s1757_s26 + $0x108] sm:$0xff]  ;;  %v425_v21 = vld [vmem:[%s1757_s26 + $0x110] sm:$0xff] }
  0x13   : > { %1461 = vmatprep.subr.mxu0 %v467_v3  ;;  %1586 = vmatprep.subr.mxu1 %v467_v3  ;;  %v423_v17 = vld [vmem:[%s1757_s26 + $0x100] sm:$0xff]  ;;  %v394_v22 = vld [vmem:[%s1757_s26 + $0x18] sm:$0xff]  ;;  %v396_v26 = vld [vmem:[%s1757_s26 + $0x28] sm:$0xff] }
  0x14   : > { %1462 = vmatpush3.msra.mxu0 %v467_v3  ;;  %1602 = vmatpush3.msra.mxu1 %v467_v3  ;;  %v426_v23 = vld [vmem:[%s1757_s26 + $0x118] sm:$0xff]  ;;  %v395_v24 = vld [vmem:[%s1757_s26 + $0x20] sm:$0xff]  ;;  %v428_v27 = vld [vmem:[%s1757_s26 + $0x128] sm:$0xff] }
  0x15   : > { %1463 = vmatprep.subr.mxu0 %v466_v4  ;;  %1587 = vmatprep.subr.mxu1 %v466_v4  ;;  %v427_v25 = vld [vmem:[%s1757_s26 + $0x120] sm:$0xff]  ;;  %v397_v28 = vld [vmem:[%s1757_s26 + $0x30] sm:$0xff]  ;;  %v398_v30 = vld [vmem:[%s1757_s26 + $0x38] sm:$0xff] }
  0x16   : > { %1464 = vmatpush3.msra.mxu0 %v466_v4  ;;  %1603 = vmatpush3.msra.mxu1 %v466_v4  ;;  %v429_v29 = vld [vmem:[%s1757_s26 + $0x130] sm:$0xff]  ;;  %v430_v31 = vld [vmem:[%s1757_s26 + $0x138] sm:$0xff]  ;;  %v399_v32 = vld [vmem:[%s1757_s26 + $0x40] sm:$0xff] }
  0x17   : > { %1465 = vmatprep.subr.mxu0 %v465_v5  ;;  %1588 = vmatprep.subr.mxu1 %v465_v5  ;;  %v431_v33 = vld [vmem:[%s1757_s26 + $0x140] sm:$0xff]  ;;  %v400_v34 = vld [vmem:[%s1757_s26 + $0x48] sm:$0xff]  ;;  %v401_v36 = vld [vmem:[%s1757_s26 + $0x50] sm:$0xff] }
  0x18   : > { %1466 = vmatpush3.msra.mxu0 %v465_v5  ;;  %1604 = vmatpush3.msra.mxu1 %v465_v5  ;;  %v432_v35 = vld [vmem:[%s1757_s26 + $0x148] sm:$0xff]  ;;  %v433_v37 = vld [vmem:[%s1757_s26 + $0x150] sm:$0xff]  ;;  %v402_v38 = vld [vmem:[%s1757_s26 + $0x58] sm:$0xff] }
  0x19   : > { %1467 = vmatprep.subr.mxu0 %v464_v6  ;;  %1589 = vmatprep.subr.mxu1 %v464_v6  ;;  %v434_v39 = vld [vmem:[%s1757_s26 + $0x158] sm:$0xff]  ;;  %v403_v40 = vld [vmem:[%s1757_s26 + $0x60] sm:$0xff]  ;;  %v404_v42 = vld [vmem:[%s1757_s26 + $0x68] sm:$0xff] }
  0x1a   : > { %1468 = vmatpush3.msra.mxu0 %v464_v6  ;;  %1605 = vmatpush3.msra.mxu1 %v464_v6  ;;  %v435_v41 = vld [vmem:[%s1757_s26 + $0x160] sm:$0xff]  ;;  %v436_v43 = vld [vmem:[%s1757_s26 + $0x168] sm:$0xff]  ;;  %v405_v44 = vld [vmem:[%s1757_s26 + $0x70] sm:$0xff] }
  0x1b   : > { %1469 = vmatprep.subr.mxu0 %v463_v7  ;;  %1590 = vmatprep.subr.mxu1 %v463_v7  ;;  %v437_v45 = vld [vmem:[%s1757_s26 + $0x170] sm:$0xff]  ;;  %v406_v46 = vld [vmem:[%s1757_s26 + $0x78] sm:$0xff]  ;;  %v407_v48 = vld [vmem:[%s1757_s26 + $0x80] sm:$0xff] }
  0x1c   : > { %1470 = vmatpush3.msra.mxu0 %v463_v7  ;;  %1606 = vmatpush3.msra.mxu1 %v463_v7  ;;  %v438_v47 = vld [vmem:[%s1757_s26 + $0x178] sm:$0xff]  ;;  %v439_v49 = vld [vmem:[%s1757_s26 + $0x180] sm:$0xff]  ;;  %v408_v50 = vld [vmem:[%s1757_s26 + $0x88] sm:$0xff] }
  0x1d   : > { %1471 = vmatprep.subr.mxu0 %v462_v8  ;;  %1591 = vmatprep.subr.mxu1 %v462_v8  ;;  %v440_v51 = vld [vmem:[%s1757_s26 + $0x188] sm:$0xff]  ;;  %v409_v52 = vld [vmem:[%s1757_s26 + $0x90] sm:$0xff]  ;;  %v410_v54 = vld [vmem:[%s1757_s26 + $0x98] sm:$0xff] }
  0x1e   : > { %1472 = vmatpush3.msra.mxu0 %v462_v8  ;;  %1607 = vmatpush3.msra.mxu1 %v462_v8  ;;  %v441_v53 = vld [vmem:[%s1757_s26 + $0x190] sm:$0xff]  ;;  %v442_v55 = vld [vmem:[%s1757_s26 + $0x198] sm:$0xff]  ;;  %v411_v56 = vld [vmem:[%s1757_s26 + $0xa0] sm:$0xff] }
  0x1f   : > { %1473 = vmatprep.subr.mxu0 %v461_v9  ;;  %1592 = vmatprep.subr.mxu1 %v461_v9  ;;  %v443_v57 = vld [vmem:[%s1757_s26 + $0x1a0] sm:$0xff]  ;;  %v412_v58 = vld [vmem:[%s1757_s26 + $0xa8] sm:$0xff]  ;;  %v413_v60 = vld [vmem:[%s1757_s26 + $0xb0] sm:$0xff] }
  0x20   : > { %1474 = vmatpush3.msra.mxu0 %v461_v9  ;;  %1608 = vmatpush3.msra.mxu1 %v461_v9  ;;  %v444_v59 = vld [vmem:[%s1757_s26 + $0x1a8] sm:$0xff]  ;;  %v445_v61 = vld [vmem:[%s1757_s26 + $0x1b0] sm:$0xff]  ;;  %v414_v62 = vld [vmem:[%s1757_s26 + $0xb8] sm:$0xff] }
  0x21   : > { %1475 = vmatprep.subr.mxu0 %v460_v10  ;;  %1593 = vmatprep.subr.mxu1 %v460_v10  ;;  %v446_v63 = vld [vmem:[%s1757_s26 + $0x1b8] sm:$0xff]  ;;  %v415_v0 = vld [vmem:[%s1757_s26 + $0xc0] sm:$0xff]  ;;  %v416_v2 = vld [vmem:[%s1757_s26 + $0xc8] sm:$0xff] }
  0x22   : > { %1476 = vmatpush3.msra.mxu0 %v460_v10  ;;  %1609 = vmatpush3.msra.mxu1 %v460_v10  ;;  %v447_v1 = vld [vmem:[%s1757_s26 + $0x1c0] sm:$0xff]  ;;  %v448_v3 = vld [vmem:[%s1757_s26 + $0x1c8] sm:$0xff]  ;;  %v417_v4 = vld [vmem:[%s1757_s26 + $0xd0] sm:$0xff] }
  0x23   : > { %1477 = vmatprep.subr.mxu0 %v459_v11  ;;  %1594 = vmatprep.subr.mxu1 %v459_v11  ;;  %v449_v5 = vld [vmem:[%s1757_s26 + $0x1d0] sm:$0xff]  ;;  %v418_v6 = vld [vmem:[%s1757_s26 + $0xd8] sm:$0xff]  ;;  %v419_v8 = vld [vmem:[%s1757_s26 + $0xe0] sm:$0xff] }
  0x24   : > { %1478 = vmatpush3.msra.mxu0 %v459_v11  ;;  %1610 = vmatpush3.msra.mxu1 %v459_v11  ;;  %v450_v7 = vld [vmem:[%s1757_s26 + $0x1d8] sm:$0xff]  ;;  %v451_v9 = vld [vmem:[%s1757_s26 + $0x1e0] sm:$0xff]  ;;  %v420_v10 = vld [vmem:[%s1757_s26 + $0xe8] sm:$0xff] }
  0x25   : > { %1479 = vmatprep.subr.mxu0 %v458_v12  ;;  %1595 = vmatprep.subr.mxu1 %v458_v12  ;;  %v452_v11 = vld [vmem:[%s1757_s26 + $0x1e8] sm:$0xff] }
  0x26   : > { %1480 = vmatpush3.msra.mxu0 %v458_v12  ;;  %1611 = vmatpush3.msra.mxu1 %v458_v12  ;;  %v421_v12 = vld [vmem:[%s1757_s26 + $0xf0] sm:$0xff] }
  0x27   : > { %1481 = vmatprep.subr.mxu0 %v457_v13  ;;  %1596 = vmatprep.subr.mxu1 %v457_v13 }
  0x28   : > { %1482 = vmatpush3.msra.mxu0 %v457_v13  ;;  %1612 = vmatpush3.msra.mxu1 %v457_v13  ;;  %v453_v13 = vld [vmem:[%s1757_s26 + $0x1f0] sm:$0xff] }
  0x29   : > { %1483 = vmatprep.subr.mxu0 %v456_v14  ;;  %1597 = vmatprep.subr.mxu1 %v456_v14 }
  0x2a   : > { %1484 = vmatpush3.msra.mxu0 %v456_v14  ;;  %1613 = vmatpush3.msra.mxu1 %v456_v14  ;;  %v422_v14 = vld [vmem:[%s1757_s26 + $0xf8] sm:$0xff] }
  0x2b   : > { %1485 = vmatprep.subr.mxu0 %v455_v15  ;;  %1598 = vmatprep.subr.mxu1 %v455_v15 }
  0x2c   : > { %1486 = vmatpush3.msra.mxu0 %v455_v15  ;;  %1614 = vmatpush3.msra.mxu1 %v455_v15  ;;  %v454_v15 = vld [vmem:[%s1757_s26 + $0x1f8] sm:$0xff] }
  0x2d   : > { %1487 = vmatprep.mubr.f32.mxu0 %v391_v16  ;;  %1535 = vmatprep.mubr.f32.mxu1 %v423_v17  ;;  %v1829_v16 = vld [vmem:[%s1977_s2] ss:$0 sm:$0xff] }
  0x2e   : > { %1488 = vmatmul.mubr.f32.vlgmr.msra.gmra.mxu0 %v392_v18  ;;  %1536 = vmatmul.mubr.f32.vlgmr.msra.gmra.mxu1 %v424_v19 }
  0x2f   : > { %1490 = vmatprep.mubr.f32.mxu0 %v393_v20  ;;  %1538 = vmatprep.mubr.f32.mxu1 %v425_v21 }
  0x32   : > { %1491 = vmatmul.mubr.f32.gmra.mxu0 %v394_v22  ;;  %1539 = vmatmul.mubr.f32.gmra.mxu1 %v426_v23 }
  0x33   : > { %1493 = vmatprep.mubr.f32.mxu0 %v395_v24  ;;  %1541 = vmatprep.mubr.f32.mxu1 %v427_v25 }
  0x36   : > { %1494 = vmatmul.mubr.f32.gmra.mxu0 %v396_v26  ;;  %1542 = vmatmul.mubr.f32.gmra.mxu1 %v428_v27 }
  0x37   : > { %1496 = vmatprep.mubr.f32.mxu0 %v397_v28  ;;  %1544 = vmatprep.mubr.f32.mxu1 %v429_v29 }
  0x3a   : > { %1497 = vmatmul.mubr.f32.gmra.mxu0 %v398_v30  ;;  %1545 = vmatmul.mubr.f32.gmra.mxu1 %v430_v31 }
  0x3b   : > { %1499 = vmatprep.mubr.f32.mxu0 %v399_v32  ;;  %1547 = vmatprep.mubr.f32.mxu1 %v431_v33 }
  0x3e   : > { %1500 = vmatmul.mubr.f32.gmra.mxu0 %v400_v34  ;;  %1548 = vmatmul.mubr.f32.gmra.mxu1 %v432_v35 }
  0x3f   : > { %1502 = vmatprep.mubr.f32.mxu0 %v401_v36  ;;  %1550 = vmatprep.mubr.f32.mxu1 %v433_v37 }
  0x42   : > { %1503 = vmatmul.mubr.f32.gmra.mxu0 %v402_v38  ;;  %1551 = vmatmul.mubr.f32.gmra.mxu1 %v434_v39 }
  0x43   : > { %1505 = vmatprep.mubr.f32.mxu0 %v403_v40  ;;  %1553 = vmatprep.mubr.f32.mxu1 %v435_v41 }
  0x46   : > { %1506 = vmatmul.mubr.f32.gmra.mxu0 %v404_v42  ;;  %1554 = vmatmul.mubr.f32.gmra.mxu1 %v436_v43 }
  0x47   : > { %1508 = vmatprep.mubr.f32.mxu0 %v405_v44  ;;  %1556 = vmatprep.mubr.f32.mxu1 %v437_v45 }
  0x4a   : > { %1509 = vmatmul.mubr.f32.gmra.mxu0 %v406_v46  ;;  %1557 = vmatmul.mubr.f32.gmra.mxu1 %v438_v47 }
  0x4b   : > { %1511 = vmatprep.mubr.f32.mxu0 %v407_v48  ;;  %1559 = vmatprep.mubr.f32.mxu1 %v439_v49 }
  0x4e   : > { %1512 = vmatmul.mubr.f32.gmra.mxu0 %v408_v50  ;;  %1560 = vmatmul.mubr.f32.gmra.mxu1 %v440_v51 }
  0x4f   : > { %1514 = vmatprep.mubr.f32.mxu0 %v409_v52  ;;  %1562 = vmatprep.mubr.f32.mxu1 %v441_v53 }
  0x52   : > { %1515 = vmatmul.mubr.f32.gmra.mxu0 %v410_v54  ;;  %1563 = vmatmul.mubr.f32.gmra.mxu1 %v442_v55 }
  0x53   : > { %1517 = vmatprep.mubr.f32.mxu0 %v411_v56  ;;  %1565 = vmatprep.mubr.f32.mxu1 %v443_v57 }
  0x56   : > { %1518 = vmatmul.mubr.f32.gmra.mxu0 %v412_v58  ;;  %1566 = vmatmul.mubr.f32.gmra.mxu1 %v444_v59 }
  0x57   : > { %1520 = vmatprep.mubr.f32.mxu0 %v413_v60  ;;  %1568 = vmatprep.mubr.f32.mxu1 %v445_v61 }
  0x5a   : > { %1521 = vmatmul.mubr.f32.gmra.mxu0 %v414_v62  ;;  %1569 = vmatmul.mubr.f32.gmra.mxu1 %v446_v63 }
  0x5b   : > { %1523 = vmatprep.mubr.f32.mxu0 %v415_v0  ;;  %1571 = vmatprep.mubr.f32.mxu1 %v447_v1 }
  0x5e   : > { %1524 = vmatmul.mubr.f32.gmra.mxu0 %v416_v2  ;;  %1572 = vmatmul.mubr.f32.gmra.mxu1 %v448_v3 }
  0x5f   : > { %1526 = vmatprep.mubr.f32.mxu0 %v417_v4  ;;  %1574 = vmatprep.mubr.f32.mxu1 %v449_v5 }
  0x62   : > { %1527 = vmatmul.mubr.f32.gmra.mxu0 %v418_v6  ;;  %1575 = vmatmul.mubr.f32.gmra.mxu1 %v450_v7 }
  0x63   : > { %1529 = vmatprep.mubr.f32.mxu0 %v419_v8  ;;  %1577 = vmatprep.mubr.f32.mxu1 %v451_v9 }
  0x66   : > { %1530 = vmatmul.mubr.f32.gmra.mxu0 %v420_v10  ;;  %1578 = vmatmul.mubr.f32.gmra.mxu1 %v452_v11 }
  0x67   : > { %1532 = vmatprep.mubr.f32.mxu0 %v421_v12  ;;  %1580 = vmatprep.mubr.f32.mxu1 %v453_v13 }
  0x6a   : > { %1533 = vmatmul.mubr.f32.gmra.mxu0 %v422_v14  ;;  %1581 = vmatmul.mubr.f32.gmra.mxu1 %v454_v15 }
  0xee   : > { %v1489_v17 = vpop.f32.mrf.mxu0  ;;  %v1537_v18 = vpop.f32.mrf.mxu1 }
  0xef   : > { %v1059_v19 = vadd.f32 %v1489_v17, %v1829_v16  ;;  %v1091_v20 = vadd.f32 %v1537_v18, %v1829_v16 }
  0xf0   : > { %v537_v21 = vpop.f32.mrf.mxu0  ;;  %v697_v22 = vpop.f32.mrf.mxu1 }
  0xf1   : > { %v1123_v23 = vmax.f32 %v1059_v19, 0.0  ;;  %v1155_v24 = vmax.f32 %v1091_v20, 0.0  ;;  %v1058_v25 = vadd.f32 %v1829_v16, %v537_v21  ;;  %v1090_v26 = vadd.f32 %v1829_v16, %v697_v22 }
  0xf2   : > { %v1492_v27 = vpop.f32.mrf.mxu0  ;;  %v1540_v28 = vpop.f32.mrf.mxu1 }
  0xf3   : > { %1187 = vst [vmem:[%s1838_s7 + $0x8] sm:$0xff] %v1123_v23  ;;  %1219 = vst [vmem:[%s1838_s7 + $0x108] sm:$0xff] %v1155_v24  ;;  %v1122_v29 = vmax.f32 %v1058_v25, 0.0  ;;  %v1154_v30 = vmax.f32 %v1090_v26, 0.0  ;;  %v1061_v31 = vadd.f32 %v1492_v27, %v1829_v16  ;;  %v1093_v32 = vadd.f32 %v1540_v28, %v1829_v16 }
  0xf4   : > { %v547_v33 = vpop.f32.mrf.mxu0  ;;  %v707_v34 = vpop.f32.mrf.mxu1 }
  0xf5   : > { %1186 = vst [vmem:[%s1838_s7] sm:$0xff] %v1122_v29  ;;  %1218 = vst [vmem:[%s1838_s7 + $0x100] sm:$0xff] %v1154_v30  ;;  %v1125_v35 = vmax.f32 %v1061_v31, 0.0  ;;  %v1157_v36 = vmax.f32 %v1093_v32, 0.0  ;;  %v1060_v37 = vadd.f32 %v1829_v16, %v547_v33  ;;  %v1092_v38 = vadd.f32 %v1829_v16, %v707_v34 }
  0xf6   : > { %v1495_v39 = vpop.f32.mrf.mxu0  ;;  %v1543_v40 = vpop.f32.mrf.mxu1 }
  0xf7   : > { %1189 = vst [vmem:[%s1838_s7 + $0x18] sm:$0xff] %v1125_v35  ;;  %1221 = vst [vmem:[%s1838_s7 + $0x118] sm:$0xff] %v1157_v36  ;;  %v1124_v41 = vmax.f32 %v1060_v37, 0.0  ;;  %v1156_v42 = vmax.f32 %v1092_v38, 0.0  ;;  %v1063_v43 = vadd.f32 %v1495_v39, %v1829_v16  ;;  %v1095_v44 = vadd.f32 %v1543_v40, %v1829_v16 }
  0xf8   : > { %v557_v45 = vpop.f32.mrf.mxu0  ;;  %v717_v46 = vpop.f32.mrf.mxu1 }
  0xf9   : > { %1188 = vst [vmem:[%s1838_s7 + $0x10] sm:$0xff] %v1124_v41  ;;  %1220 = vst [vmem:[%s1838_s7 + $0x110] sm:$0xff] %v1156_v42  ;;  %v1127_v47 = vmax.f32 %v1063_v43, 0.0  ;;  %v1159_v48 = vmax.f32 %v1095_v44, 0.0  ;;  %v1062_v49 = vadd.f32 %v1829_v16, %v557_v45  ;;  %v1094_v50 = vadd.f32 %v1829_v16, %v717_v46 }
  0xfa   : > { %v1498_v51 = vpop.f32.mrf.mxu0  ;;  %v1546_v52 = vpop.f32.mrf.mxu1 }
  0xfb   : > { %1191 = vst [vmem:[%s1838_s7 + $0x28] sm:$0xff] %v1127_v47  ;;  %1223 = vst [vmem:[%s1838_s7 + $0x128] sm:$0xff] %v1159_v48  ;;  %v1126_v53 = vmax.f32 %v1062_v49, 0.0  ;;  %v1158_v54 = vmax.f32 %v1094_v50, 0.0  ;;  %v1065_v55 = vadd.f32 %v1498_v51, %v1829_v16  ;;  %v1097_v56 = vadd.f32 %v1546_v52, %v1829_v16 }
  0xfc   : > { %v567_v57 = vpop.f32.mrf.mxu0  ;;  %v727_v58 = vpop.f32.mrf.mxu1 }
  0xfd   : > { %1190 = vst [vmem:[%s1838_s7 + $0x20] sm:$0xff] %v1126_v53  ;;  %1222 = vst [vmem:[%s1838_s7 + $0x120] sm:$0xff] %v1158_v54  ;;  %v1129_v59 = vmax.f32 %v1065_v55, 0.0  ;;  %v1161_v60 = vmax.f32 %v1097_v56, 0.0  ;;  %v1064_v61 = vadd.f32 %v1829_v16, %v567_v57  ;;  %v1096_v62 = vadd.f32 %v1829_v16, %v727_v58 }
  0xfe   : > { %v1501_v63 = vpop.f32.mrf.mxu0  ;;  %v1549_v0 = vpop.f32.mrf.mxu1 }
  0xff   : > { %1193 = vst [vmem:[%s1838_s7 + $0x38] sm:$0xff] %v1129_v59  ;;  %1225 = vst [vmem:[%s1838_s7 + $0x138] sm:$0xff] %v1161_v60  ;;  %v1128_v1 = vmax.f32 %v1064_v61, 0.0  ;;  %v1160_v2 = vmax.f32 %v1096_v62, 0.0  ;;  %v1067_v3 = vadd.f32 %v1501_v63, %v1829_v16  ;;  %v1099_v4 = vadd.f32 %v1549_v0, %v1829_v16 }
 0x100   : > { %v577_v5 = vpop.f32.mrf.mxu0  ;;  %v737_v6 = vpop.f32.mrf.mxu1 }
 0x101   : > { %1192 = vst [vmem:[%s1838_s7 + $0x30] sm:$0xff] %v1128_v1  ;;  %1224 = vst [vmem:[%s1838_s7 + $0x130] sm:$0xff] %v1160_v2  ;;  %v1131_v7 = vmax.f32 %v1067_v3, 0.0  ;;  %v1163_v8 = vmax.f32 %v1099_v4, 0.0  ;;  %v1066_v9 = vadd.f32 %v1829_v16, %v577_v5  ;;  %v1098_v10 = vadd.f32 %v1829_v16, %v737_v6 }
 0x102   : > { %v1504_v11 = vpop.f32.mrf.mxu0  ;;  %v1552_v12 = vpop.f32.mrf.mxu1 }
 0x103   : > { %1195 = vst [vmem:[%s1838_s7 + $0x48] sm:$0xff] %v1131_v7  ;;  %1227 = vst [vmem:[%s1838_s7 + $0x148] sm:$0xff] %v1163_v8  ;;  %v1130_v13 = vmax.f32 %v1066_v9, 0.0  ;;  %v1162_v14 = vmax.f32 %v1098_v10, 0.0  ;;  %v1069_v15 = vadd.f32 %v1504_v11, %v1829_v16  ;;  %v1101_v17 = vadd.f32 %v1552_v12, %v1829_v16 }
 0x104   : > { %v587_v18 = vpop.f32.mrf.mxu0  ;;  %v747_v19 = vpop.f32.mrf.mxu1 }
 0x105   : > { %1194 = vst [vmem:[%s1838_s7 + $0x40] sm:$0xff] %v1130_v13  ;;  %1226 = vst [vmem:[%s1838_s7 + $0x140] sm:$0xff] %v1162_v14  ;;  %v1133_v20 = vmax.f32 %v1069_v15, 0.0  ;;  %v1165_v21 = vmax.f32 %v1101_v17, 0.0  ;;  %v1068_v22 = vadd.f32 %v1829_v16, %v587_v18  ;;  %v1100_v23 = vadd.f32 %v1829_v16, %v747_v19 }
 0x106   : > { %v1507_v24 = vpop.f32.mrf.mxu0  ;;  %v1555_v25 = vpop.f32.mrf.mxu1 }
 0x107   : > { %1197 = vst [vmem:[%s1838_s7 + $0x58] sm:$0xff] %v1133_v20  ;;  %1229 = vst [vmem:[%s1838_s7 + $0x158] sm:$0xff] %v1165_v21  ;;  %v1132_v26 = vmax.f32 %v1068_v22, 0.0  ;;  %v1164_v27 = vmax.f32 %v1100_v23, 0.0  ;;  %v1071_v28 = vadd.f32 %v1507_v24, %v1829_v16  ;;  %v1103_v29 = vadd.f32 %v1555_v25, %v1829_v16 }
 0x108   : > { %v597_v30 = vpop.f32.mrf.mxu0  ;;  %v757_v31 = vpop.f32.mrf.mxu1 }
 0x109   : > { %1196 = vst [vmem:[%s1838_s7 + $0x50] sm:$0xff] %v1132_v26  ;;  %1228 = vst [vmem:[%s1838_s7 + $0x150] sm:$0xff] %v1164_v27  ;;  %v1135_v32 = vmax.f32 %v1071_v28, 0.0  ;;  %v1167_v33 = vmax.f32 %v1103_v29, 0.0  ;;  %v1070_v34 = vadd.f32 %v1829_v16, %v597_v30  ;;  %v1102_v35 = vadd.f32 %v1829_v16, %v757_v31 }
 0x10a   : > { %v1510_v36 = vpop.f32.mrf.mxu0  ;;  %v1558_v37 = vpop.f32.mrf.mxu1 }
 0x10b   : > { %1199 = vst [vmem:[%s1838_s7 + $0x68] sm:$0xff] %v1135_v32  ;;  %1231 = vst [vmem:[%s1838_s7 + $0x168] sm:$0xff] %v1167_v33  ;;  %v1134_v38 = vmax.f32 %v1070_v34, 0.0  ;;  %v1166_v39 = vmax.f32 %v1102_v35, 0.0  ;;  %v1073_v40 = vadd.f32 %v1510_v36, %v1829_v16  ;;  %v1105_v41 = vadd.f32 %v1558_v37, %v1829_v16 }
 0x10c   : > { %v607_v42 = vpop.f32.mrf.mxu0  ;;  %v767_v43 = vpop.f32.mrf.mxu1 }
 0x10d   : > { %1198 = vst [vmem:[%s1838_s7 + $0x60] sm:$0xff] %v1134_v38  ;;  %1230 = vst [vmem:[%s1838_s7 + $0x160] sm:$0xff] %v1166_v39  ;;  %v1137_v44 = vmax.f32 %v1073_v40, 0.0  ;;  %v1169_v45 = vmax.f32 %v1105_v41, 0.0  ;;  %v1072_v46 = vadd.f32 %v1829_v16, %v607_v42  ;;  %v1104_v47 = vadd.f32 %v1829_v16, %v767_v43 }
 0x10e   : > { %v1513_v48 = vpop.f32.mrf.mxu0  ;;  %v1561_v49 = vpop.f32.mrf.mxu1 }
 0x10f   : > { %1201 = vst [vmem:[%s1838_s7 + $0x78] sm:$0xff] %v1137_v44  ;;  %1233 = vst [vmem:[%s1838_s7 + $0x178] sm:$0xff] %v1169_v45  ;;  %v1136_v50 = vmax.f32 %v1072_v46, 0.0  ;;  %v1168_v51 = vmax.f32 %v1104_v47, 0.0  ;;  %v1075_v52 = vadd.f32 %v1513_v48, %v1829_v16  ;;  %v1107_v53 = vadd.f32 %v1561_v49, %v1829_v16 }
 0x110   : > { %v617_v54 = vpop.f32.mrf.mxu0  ;;  %v777_v55 = vpop.f32.mrf.mxu1 }
 0x111   : > { %1200 = vst [vmem:[%s1838_s7 + $0x70] sm:$0xff] %v1136_v50  ;;  %1232 = vst [vmem:[%s1838_s7 + $0x170] sm:$0xff] %v1168_v51  ;;  %v1139_v56 = vmax.f32 %v1075_v52, 0.0  ;;  %v1171_v57 = vmax.f32 %v1107_v53, 0.0  ;;  %v1074_v58 = vadd.f32 %v1829_v16, %v617_v54  ;;  %v1106_v59 = vadd.f32 %v1829_v16, %v777_v55 }
 0x112   : > { %v1516_v60 = vpop.f32.mrf.mxu0  ;;  %v1564_v61 = vpop.f32.mrf.mxu1 }
 0x113   : > { %1203 = vst [vmem:[%s1838_s7 + $0x88] sm:$0xff] %v1139_v56  ;;  %1235 = vst [vmem:[%s1838_s7 + $0x188] sm:$0xff] %v1171_v57  ;;  %v1138_v62 = vmax.f32 %v1074_v58, 0.0  ;;  %v1170_v63 = vmax.f32 %v1106_v59, 0.0  ;;  %v1077_v0 = vadd.f32 %v1516_v60, %v1829_v16  ;;  %v1109_v1 = vadd.f32 %v1564_v61, %v1829_v16 }
 0x114   : > { %v627_v2 = vpop.f32.mrf.mxu0  ;;  %v787_v3 = vpop.f32.mrf.mxu1 }
 0x115   : > { %1202 = vst [vmem:[%s1838_s7 + $0x80] sm:$0xff] %v1138_v62  ;;  %1234 = vst [vmem:[%s1838_s7 + $0x180] sm:$0xff] %v1170_v63  ;;  %v1141_v4 = vmax.f32 %v1077_v0, 0.0  ;;  %v1173_v5 = vmax.f32 %v1109_v1, 0.0  ;;  %v1076_v6 = vadd.f32 %v1829_v16, %v627_v2  ;;  %v1108_v7 = vadd.f32 %v1829_v16, %v787_v3 }
 0x116   : > { %v1519_v8 = vpop.f32.mrf.mxu0  ;;  %v1567_v9 = vpop.f32.mrf.mxu1 }
 0x117   : > { %1205 = vst [vmem:[%s1838_s7 + $0x98] sm:$0xff] %v1141_v4  ;;  %1237 = vst [vmem:[%s1838_s7 + $0x198] sm:$0xff] %v1173_v5  ;;  %v1140_v10 = vmax.f32 %v1076_v6, 0.0  ;;  %v1172_v11 = vmax.f32 %v1108_v7, 0.0  ;;  %v1079_v12 = vadd.f32 %v1519_v8, %v1829_v16  ;;  %v1111_v13 = vadd.f32 %v1567_v9, %v1829_v16 }
 0x118   : > { %v637_v14 = vpop.f32.mrf.mxu0  ;;  %v797_v15 = vpop.f32.mrf.mxu1 }
 0x119   : > { %1204 = vst [vmem:[%s1838_s7 + $0x90] sm:$0xff] %v1140_v10  ;;  %1236 = vst [vmem:[%s1838_s7 + $0x190] sm:$0xff] %v1172_v11  ;;  %v1143_v17 = vmax.f32 %v1079_v12, 0.0  ;;  %v1175_v18 = vmax.f32 %v1111_v13, 0.0  ;;  %v1078_v19 = vadd.f32 %v1829_v16, %v637_v14  ;;  %v1110_v20 = vadd.f32 %v1829_v16, %v797_v15 }
 0x11a   : > { %v1522_v21 = vpop.f32.mrf.mxu0  ;;  %v1570_v22 = vpop.f32.mrf.mxu1 }
 0x11b   : > { %1207 = vst [vmem:[%s1838_s7 + $0xa8] sm:$0xff] %v1143_v17  ;;  %1239 = vst [vmem:[%s1838_s7 + $0x1a8] sm:$0xff] %v1175_v18  ;;  %v1142_v23 = vmax.f32 %v1078_v19, 0.0  ;;  %v1174_v24 = vmax.f32 %v1110_v20, 0.0  ;;  %v1081_v25 = vadd.f32 %v1522_v21, %v1829_v16  ;;  %v1113_v26 = vadd.f32 %v1570_v22, %v1829_v16 }
 0x11c   : > { %v647_v27 = vpop.f32.mrf.mxu0  ;;  %v807_v28 = vpop.f32.mrf.mxu1 }
 0x11d   : > { %1206 = vst [vmem:[%s1838_s7 + $0xa0] sm:$0xff] %v1142_v23  ;;  %1238 = vst [vmem:[%s1838_s7 + $0x1a0] sm:$0xff] %v1174_v24  ;;  %v1145_v29 = vmax.f32 %v1081_v25, 0.0  ;;  %v1177_v30 = vmax.f32 %v1113_v26, 0.0  ;;  %v1080_v31 = vadd.f32 %v1829_v16, %v647_v27  ;;  %v1112_v32 = vadd.f32 %v1829_v16, %v807_v28 }
 0x11e   : > { %v1525_v33 = vpop.f32.mrf.mxu0  ;;  %v1573_v34 = vpop.f32.mrf.mxu1 }
 0x11f   : > { %1209 = vst [vmem:[%s1838_s7 + $0xb8] sm:$0xff] %v1145_v29  ;;  %1241 = vst [vmem:[%s1838_s7 + $0x1b8] sm:$0xff] %v1177_v30  ;;  %v1144_v35 = vmax.f32 %v1080_v31, 0.0  ;;  %v1176_v36 = vmax.f32 %v1112_v32, 0.0  ;;  %v1083_v37 = vadd.f32 %v1525_v33, %v1829_v16  ;;  %v1115_v38 = vadd.f32 %v1573_v34, %v1829_v16 }
 0x120   : > { %v657_v39 = vpop.f32.mrf.mxu0  ;;  %v817_v40 = vpop.f32.mrf.mxu1 }
 0x121   : > { %1208 = vst [vmem:[%s1838_s7 + $0xb0] sm:$0xff] %v1144_v35  ;;  %1240 = vst [vmem:[%s1838_s7 + $0x1b0] sm:$0xff] %v1176_v36  ;;  %v1147_v41 = vmax.f32 %v1083_v37, 0.0  ;;  %v1179_v42 = vmax.f32 %v1115_v38, 0.0  ;;  %v1082_v43 = vadd.f32 %v1829_v16, %v657_v39  ;;  %v1114_v44 = vadd.f32 %v1829_v16, %v817_v40 }
 0x122   : > { %v1528_v45 = vpop.f32.mrf.mxu0  ;;  %v1576_v46 = vpop.f32.mrf.mxu1 }
 0x123   : > { %1211 = vst [vmem:[%s1838_s7 + $0xc8] sm:$0xff] %v1147_v41  ;;  %1243 = vst [vmem:[%s1838_s7 + $0x1c8] sm:$0xff] %v1179_v42  ;;  %v1146_v47 = vmax.f32 %v1082_v43, 0.0  ;;  %v1178_v48 = vmax.f32 %v1114_v44, 0.0  ;;  %v1085_v49 = vadd.f32 %v1528_v45, %v1829_v16  ;;  %v1117_v50 = vadd.f32 %v1576_v46, %v1829_v16 }
 0x124   : > { %v667_v51 = vpop.f32.mrf.mxu0  ;;  %v827_v52 = vpop.f32.mrf.mxu1 }
 0x125   : > { %1210 = vst [vmem:[%s1838_s7 + $0xc0] sm:$0xff] %v1146_v47  ;;  %1242 = vst [vmem:[%s1838_s7 + $0x1c0] sm:$0xff] %v1178_v48  ;;  %v1149_v53 = vmax.f32 %v1085_v49, 0.0  ;;  %v1181_v54 = vmax.f32 %v1117_v50, 0.0  ;;  %v1084_v55 = vadd.f32 %v1829_v16, %v667_v51  ;;  %v1116_v56 = vadd.f32 %v1829_v16, %v827_v52 }
 0x126   : > { %v1531_v57 = vpop.f32.mrf.mxu0  ;;  %v1579_v58 = vpop.f32.mrf.mxu1 }
 0x127   : > { %1213 = vst [vmem:[%s1838_s7 + $0xd8] sm:$0xff] %v1149_v53  ;;  %1245 = vst [vmem:[%s1838_s7 + $0x1d8] sm:$0xff] %v1181_v54  ;;  %v1148_v59 = vmax.f32 %v1084_v55, 0.0  ;;  %v1180_v60 = vmax.f32 %v1116_v56, 0.0  ;;  %v1087_v61 = vadd.f32 %v1531_v57, %v1829_v16  ;;  %v1119_v62 = vadd.f32 %v1579_v58, %v1829_v16 }
 0x128   : > { %v677_v63 = vpop.f32.mrf.mxu0  ;;  %v837_v0 = vpop.f32.mrf.mxu1 }
 0x129   : > { %1212 = vst [vmem:[%s1838_s7 + $0xd0] sm:$0xff] %v1148_v59  ;;  %1244 = vst [vmem:[%s1838_s7 + $0x1d0] sm:$0xff] %v1180_v60  ;;  %v1151_v1 = vmax.f32 %v1087_v61, 0.0  ;;  %v1183_v2 = vmax.f32 %v1119_v62, 0.0  ;;  %v1086_v3 = vadd.f32 %v1829_v16, %v677_v63  ;;  %v1118_v4 = vadd.f32 %v1829_v16, %v837_v0 }
 0x12a   : > { %v1534_v5 = vpop.f32.mrf.mxu0  ;;  %v1582_v6 = vpop.f32.mrf.mxu1 }
 0x12b   : > { %1215 = vst [vmem:[%s1838_s7 + $0xe8] sm:$0xff] %v1151_v1  ;;  %1247 = vst [vmem:[%s1838_s7 + $0x1e8] sm:$0xff] %v1183_v2  ;;  %v1150_v7 = vmax.f32 %v1086_v3, 0.0  ;;  %v1182_v8 = vmax.f32 %v1118_v4, 0.0  ;;  %v1089_v9 = vadd.f32 %v1534_v5, %v1829_v16  ;;  %v1121_v10 = vadd.f32 %v1582_v6, %v1829_v16 }
 0x12c   : > { %v687_v11 = vpop.f32.mrf.mxu0  ;;  %v847_v12 = vpop.f32.mrf.mxu1 }
 0x12d   : > { %1214 = vst [vmem:[%s1838_s7 + $0xe0] sm:$0xff] %v1150_v7  ;;  %1246 = vst [vmem:[%s1838_s7 + $0x1e0] sm:$0xff] %v1182_v8  ;;  %v1153_v13 = vmax.f32 %v1089_v9, 0.0  ;;  %v1185_v14 = vmax.f32 %v1121_v10, 0.0  ;;  %v1088_v15 = vadd.f32 %v1829_v16, %v687_v11  ;;  %v1120_v17 = vadd.f32 %v1829_v16, %v847_v12 }
 0x12f   : > { %1217 = vst [vmem:[%s1838_s7 + $0xf8] sm:$0xff] %v1153_v13  ;;  %1249 = vst [vmem:[%s1838_s7 + $0x1f8] sm:$0xff] %v1185_v14  ;;  %v1152_v18 = vmax.f32 %v1088_v15, 0.0  ;;  %v1184_v19 = vmax.f32 %v1120_v17, 0.0 }
 0x131   : > { %1216 = vst [vmem:[%s1838_s7 + $0xf0] sm:$0xff] %v1152_v18  ;;  %1248 = vst [vmem:[%s1838_s7 + $0x1f0] sm:$0xff] %v1184_v19 }
 0x132 PF: > { %s13_s14 = sadd.s32 1, %s1661_s14   ;;  %s1979_s12 = smov %s1657_s13 }
 0x133   : > { %p10_p5 = scmp.ge.s32.totalorder %s13_s14, 11   ;;  %s1980_s13 = smov %s1982_s15 }
 0x135   :  { %12 = sbr.rel (!%p10_p5) target bundleno = 2 (0x2), region = 76 }

// kernel: forward.7
= control target key start
LH: loop header
LB: loop body
LE: loop exit
PB: predicated region body
PF: predicated region fallthrough
CT: control target
= control target key end

     0   :  { %s2274_s12 = smov 0   ;;  %s2276_s13 = smov 0   ;;  %s2983_s0 = inlined_call_operand.vmem [shape: f32[1024,384], index: 0, kind: input, shape index: {}]   ;;  %s2984_s1 = inlined_call_operand.vmem [shape: f32[384,128], index: 1, kind: input, shape index: {}]   ;;  %s2985_s2 = inlined_call_operand.vmem [shape: f32[1,128], index: 2, kind: input, shape index: {}]   ;;  %s2986_s3 = inlined_call_operand.vmem [shape: f32[1024,128], index: 3, kind: output, shape index: {}]  }
   0x1   :  { %s2278_s14 = smov 0  }
   0x2 LB: > { %s32_s15 = sadd.s32 1, %s2247_s13  ;;  %p1923_p0 = scmp.ge.s32.totalorder %s2251_s14, 1  ;;  %s2251_s14 = sphi %s2278_s14, %s13_s14   ;;  %s2247_s13 = sphi %s2276_s13, %s2988_s13   ;;  %s2243_s12 = sphi %s2274_s12, %s2987_s12  }
   0x3   : > { %p34_p1 = scmp.ge.s32.totalorder %s32_s15, 2  ;;  %p191_p2 = scmp.lt.s32.totalorder %s2251_s14, 3 }
   0x5   : > { %s2990_s15 = smov (%p34_p1, %s32_s15), 0  ;;  %p192_p3 = pnand %p1923_p0, %p191_p2 }
   0x6   : > { %s1924_s16 = sshll.u32 (!%p192_p3), %s2243_s12, 6 }
   0x7   : > { %195 = sbr.rel (%p192_p3) target bundleno = 468 (0x1d4), region = 32  ;;  %p236_p4 = scmp.lt.s32.totalorder (!%p192_p3), %s1924_s16, 127 }
   0xc   : > { %v606_v0 = vld [vmem:[%s2984_s1 + $0x78] sm:$0xff]  ;;  %v2253_v1 = vmov 0.0   ;;  %v605_v2 = vld [vmem:[%s2984_s1 + $0x70] sm:$0xff]  ;;  %v604_v3 = vld [vmem:[%s2984_s1 + $0x68] sm:$0xff]  ;;  %s2992_s16 = smov (!%p236_p4, %s1924_s16), 127 }
   0xd   : > { %639 = vmatprep.subr.mxu0 %v2253_v1  ;;  %2139 = vmatprep.subr.mxu1 %v2253_v1  ;;  %v603_v4 = vld [vmem:[%s2984_s1 + $0x60] sm:$0xff]  ;;  %v602_v5 = vld [vmem:[%s2984_s1 + $0x58] sm:$0xff]  ;;  %v601_v6 = vld [vmem:[%s2984_s1 + $0x50] sm:$0xff]  ;;  %s2203_s28 = smul.u32 24, %s2992_s16  ;;  %s1927_s26 = sshll.u32 %s2992_s16, 3 }
   0xe   : > { %640 = vmatpush1.msra.mxu0 %v606_v0  ;;  %2171 = vmatpush1.msra.mxu1 %v606_v0  ;;  %v600_v7 = vld [vmem:[%s2984_s1 + $0x48] sm:$0xff]  ;;  %v599_v8 = vld [vmem:[%s2984_s1 + $0x40] sm:$0xff]  ;;  %v598_v9 = vld [vmem:[%s2984_s1 + $0x38] sm:$0xff]  ;;  %s2781_s29 = scalar_lea.vmem %s2986_s3, %s1927_s26 }
   0xf   : > { %641 = vmatprep.subr.mxu0 %v2253_v1  ;;  %2140 = vmatprep.subr.mxu1 %v2253_v1  ;;  %v597_v10 = vld [vmem:[%s2984_s1 + $0x30] sm:$0xff]  ;;  %v596_v11 = vld [vmem:[%s2984_s1 + $0x28] sm:$0xff]  ;;  %v595_v12 = vld [vmem:[%s2984_s1 + $0x20] sm:$0xff]  ;;  %s2454_s8 = scalar_lea.vmem %s2983_s0, %s2203_s28 }
  0x10   : > { %642 = vmatpush1.msra.mxu0 %v605_v2  ;;  %2172 = vmatpush1.msra.mxu1 %v605_v2  ;;  %v594_v13 = vld [vmem:[%s2984_s1 + $0x18] sm:$0xff]  ;;  %v593_v14 = vld [vmem:[%s2984_s1 + $0x10] sm:$0xff]  ;;  %v592_v15 = vld [vmem:[%s2984_s1 + $0x8] sm:$0xff] }
  0x11   : > { %643 = vmatprep.subr.mxu0 %v2253_v1  ;;  %2141 = vmatprep.subr.mxu1 %v2253_v1  ;;  %v591_v16 = vld [vmem:[%s2984_s1] sm:$0xff]  ;;  %v622_v17 = vld [vmem:[%s2984_s1 + $0xf8] sm:$0xff]  ;;  %v621_v18 = vld [vmem:[%s2984_s1 + $0xf0] sm:$0xff] }
  0x12   : > { %644 = vmatpush1.msra.mxu0 %v604_v3  ;;  %2173 = vmatpush1.msra.mxu1 %v604_v3  ;;  %v620_v19 = vld [vmem:[%s2984_s1 + $0xe8] sm:$0xff]  ;;  %v619_v20 = vld [vmem:[%s2984_s1 + $0xe0] sm:$0xff]  ;;  %v618_v21 = vld [vmem:[%s2984_s1 + $0xd8] sm:$0xff] }
  0x13   : > { %645 = vmatprep.subr.mxu0 %v2253_v1  ;;  %2142 = vmatprep.subr.mxu1 %v2253_v1  ;;  %v617_v22 = vld [vmem:[%s2984_s1 + $0xd0] sm:$0xff]  ;;  %v616_v23 = vld [vmem:[%s2984_s1 + $0xc8] sm:$0xff]  ;;  %v615_v24 = vld [vmem:[%s2984_s1 + $0xc0] sm:$0xff] }
  0x14   : > { %646 = vmatpush1.msra.mxu0 %v603_v4  ;;  %2174 = vmatpush1.msra.mxu1 %v603_v4  ;;  %v614_v25 = vld [vmem:[%s2984_s1 + $0xb8] sm:$0xff]  ;;  %v613_v26 = vld [vmem:[%s2984_s1 + $0xb0] sm:$0xff]  ;;  %v612_v27 = vld [vmem:[%s2984_s1 + $0xa8] sm:$0xff] }
  0x15   : > { %647 = vmatprep.subr.mxu0 %v2253_v1  ;;  %2143 = vmatprep.subr.mxu1 %v2253_v1  ;;  %v611_v28 = vld [vmem:[%s2984_s1 + $0xa0] sm:$0xff]  ;;  %v610_v29 = vld [vmem:[%s2984_s1 + $0x98] sm:$0xff]  ;;  %v609_v30 = vld [vmem:[%s2984_s1 + $0x90] sm:$0xff] }
  0x16   : > { %648 = vmatpush1.msra.mxu0 %v602_v5  ;;  %2175 = vmatpush1.msra.mxu1 %v602_v5  ;;  %v608_v31 = vld [vmem:[%s2984_s1 + $0x88] sm:$0xff]  ;;  %v607_v32 = vld [vmem:[%s2984_s1 + $0x80] sm:$0xff]  ;;  %v638_v37 = vld [vmem:[%s2984_s1 + $0x178] sm:$0xff] }
  0x17   : > { %649 = vmatprep.subr.mxu0 %v2253_v1  ;;  %2144 = vmatprep.subr.mxu1 %v2253_v1  ;;  %v400_v33 = vld [vmem:[%s2454_s8 + $0x8] sm:$0xff]  ;;  %v399_v35 = vld [vmem:[%s2454_s8] sm:$0xff]  ;;  %v637_v40 = vld [vmem:[%s2984_s1 + $0x170] sm:$0xff] }
  0x18   : > { %650 = vmatpush1.msra.mxu0 %v601_v6  ;;  %2176 = vmatpush1.msra.mxu1 %v601_v6  ;;  %v544_v34 = vld [vmem:[%s2454_s8 + $0x488] sm:$0xff]  ;;  %v543_v36 = vld [vmem:[%s2454_s8 + $0x480] sm:$0xff]  ;;  %v402_v41 = vld [vmem:[%s2454_s8 + $0x18] sm:$0xff] }
  0x19   : > { %651 = vmatprep.subr.mxu0 %v2253_v1  ;;  %2145 = vmatprep.subr.mxu1 %v2253_v1  ;;  %v403_v38 = vld [vmem:[%s2454_s8 + $0x20] sm:$0xff]  ;;  %v546_v42 = vld [vmem:[%s2454_s8 + $0x498] sm:$0xff]  ;;  %v636_v45 = vld [vmem:[%s2984_s1 + $0x168] sm:$0xff] }
  0x1a   : > { %652 = vmatpush1.msra.mxu0 %v600_v7  ;;  %2177 = vmatpush1.msra.mxu1 %v600_v7  ;;  %v547_v39 = vld [vmem:[%s2454_s8 + $0x4a0] sm:$0xff]  ;;  %v406_v43 = vld [vmem:[%s2454_s8 + $0x38] sm:$0xff]  ;;  %v405_v46 = vld [vmem:[%s2454_s8 + $0x30] sm:$0xff] }
  0x1b   : > { %653 = vmatprep.subr.mxu0 %v2253_v1  ;;  %2146 = vmatprep.subr.mxu1 %v2253_v1  ;;  %v550_v44 = vld [vmem:[%s2454_s8 + $0x4b8] sm:$0xff]  ;;  %v549_v47 = vld [vmem:[%s2454_s8 + $0x4b0] sm:$0xff]  ;;  %v635_v50 = vld [vmem:[%s2984_s1 + $0x160] sm:$0xff] }
  0x1c   : > { %654 = vmatpush1.msra.mxu0 %v599_v8  ;;  %2178 = vmatpush1.msra.mxu1 %v599_v8  ;;  %v409_v48 = vld [vmem:[%s2454_s8 + $0x50] sm:$0xff]  ;;  %v408_v51 = vld [vmem:[%s2454_s8 + $0x48] sm:$0xff]  ;;  %v634_v55 = vld [vmem:[%s2984_s1 + $0x158] sm:$0xff] }
  0x1d   : > { %655 = vmatprep.subr.mxu0 %v2253_v1  ;;  %2147 = vmatprep.subr.mxu1 %v2253_v1  ;;  %v553_v49 = vld [vmem:[%s2454_s8 + $0x4d0] sm:$0xff]  ;;  %v552_v52 = vld [vmem:[%s2454_s8 + $0x4c8] sm:$0xff]  ;;  %v411_v56 = vld [vmem:[%s2454_s8 + $0x60] sm:$0xff] }
  0x1e   : > { %656 = vmatpush1.msra.mxu0 %v598_v9  ;;  %2179 = vmatpush1.msra.mxu1 %v598_v9  ;;  %v412_v53 = vld [vmem:[%s2454_s8 + $0x68] sm:$0xff]  ;;  %v555_v57 = vld [vmem:[%s2454_s8 + $0x4e0] sm:$0xff]  ;;  %v633_v60 = vld [vmem:[%s2984_s1 + $0x150] sm:$0xff] }
  0x1f   : > { %657 = vmatprep.subr.mxu0 %v2253_v1  ;;  %2148 = vmatprep.subr.mxu1 %v2253_v1  ;;  %v556_v54 = vld [vmem:[%s2454_s8 + $0x4e8] sm:$0xff]  ;;  %v415_v58 = vld [vmem:[%s2454_s8 + $0x80] sm:$0xff]  ;;  %v414_v61 = vld [vmem:[%s2454_s8 + $0x78] sm:$0xff] }
  0x20   : > { %658 = vmatpush1.msra.mxu0 %v597_v10  ;;  %2180 = vmatpush1.msra.mxu1 %v597_v10  ;;  %v559_v59 = vld [vmem:[%s2454_s8 + $0x500] sm:$0xff]  ;;  %v558_v62 = vld [vmem:[%s2454_s8 + $0x4f8] sm:$0xff]  ;;  %v417_v2 = vld [vmem:[%s2454_s8 + $0x90] sm:$0xff] }
  0x21   : > { %659 = vmatprep.subr.mxu0 %v2253_v1  ;;  %2149 = vmatprep.subr.mxu1 %v2253_v1  ;;  %v418_v63 = vld [vmem:[%s2454_s8 + $0x98] sm:$0xff]  ;;  %v561_v3 = vld [vmem:[%s2454_s8 + $0x510] sm:$0xff]  ;;  %v631_v6 = vld [vmem:[%s2984_s1 + $0x140] sm:$0xff] }
  0x22   : > { %660 = vmatpush1.msra.mxu0 %v596_v11  ;;  %2181 = vmatpush1.msra.mxu1 %v596_v11  ;;  %v562_v0 = vld [vmem:[%s2454_s8 + $0x518] sm:$0xff]  ;;  %v421_v4 = vld [vmem:[%s2454_s8 + $0xb0] sm:$0xff]  ;;  %v420_v7 = vld [vmem:[%s2454_s8 + $0xa8] sm:$0xff] }
  0x23   : > { %661 = vmatprep.subr.mxu0 %v2253_v1  ;;  %2150 = vmatprep.subr.mxu1 %v2253_v1  ;;  %v565_v5 = vld [vmem:[%s2454_s8 + $0x530] sm:$0xff]  ;;  %v564_v8 = vld [vmem:[%s2454_s8 + $0x528] sm:$0xff]  ;;  %v630_v11 = vld [vmem:[%s2984_s1 + $0x138] sm:$0xff] }
  0x24   : > { %662 = vmatpush1.msra.mxu0 %v595_v12  ;;  %2182 = vmatpush1.msra.mxu1 %v595_v12  ;;  %v424_v9 = vld [vmem:[%s2454_s8 + $0xc8] sm:$0xff]  ;;  %v423_v12 = vld [vmem:[%s2454_s8 + $0xc0] sm:$0xff] }
  0x25   : > { %663 = vmatprep.subr.mxu0 %v2253_v1  ;;  %2151 = vmatprep.subr.mxu1 %v2253_v1  ;;  %v568_v10 = vld [vmem:[%s2454_s8 + $0x548] sm:$0xff] }
  0x26   : > { %664 = vmatpush1.msra.mxu0 %v594_v13  ;;  %2183 = vmatpush1.msra.mxu1 %v594_v13  ;;  %v567_v13 = vld [vmem:[%s2454_s8 + $0x540] sm:$0xff] }
  0x27   : > { %665 = vmatprep.subr.mxu0 %v2253_v1  ;;  %2152 = vmatprep.subr.mxu1 %v2253_v1 }
  0x28   : > { %666 = vmatpush1.msra.mxu0 %v593_v14  ;;  %2184 = vmatpush1.msra.mxu1 %v593_v14  ;;  %v427_v14 = vld [vmem:[%s2454_s8 + $0xe0] sm:$0xff] }
  0x29   : > { %667 = vmatprep.subr.mxu0 %v2253_v1  ;;  %2153 = vmatprep.subr.mxu1 %v2253_v1 }
  0x2a   : > { %668 = vmatpush1.msra.mxu0 %v592_v15  ;;  %2185 = vmatpush1.msra.mxu1 %v592_v15  ;;  %v571_v15 = vld [vmem:[%s2454_s8 + $0x560] sm:$0xff] }
  0x2b   : > { %669 = vmatprep.subr.mxu0 %v2253_v1  ;;  %2154 = vmatprep.subr.mxu1 %v2253_v1 }
  0x2c   : > { %670 = vmatpush1.msra.mxu0 %v591_v16  ;;  %2186 = vmatpush1.msra.mxu1 %v591_v16  ;;  %v629_v16 = vld [vmem:[%s2984_s1 + $0x130] sm:$0xff] }
  0x2d   : > { %671 = vmatprep.subr.mxu0 %v2253_v1  ;;  %2155 = vmatprep.subr.mxu1 %v2253_v1 }
  0x2e   : > { %672 = vmatpush2.msra.mxu0 %v622_v17  ;;  %2187 = vmatpush2.msra.mxu1 %v622_v17  ;;  %v426_v17 = vld [vmem:[%s2454_s8 + $0xd8] sm:$0xff] }
  0x2f   : > { %673 = vmatprep.subr.mxu0 %v2253_v1  ;;  %2156 = vmatprep.subr.mxu1 %v2253_v1 }
  0x30   : > { %674 = vmatpush2.msra.mxu0 %v621_v18  ;;  %2188 = vmatpush2.msra.mxu1 %v621_v18  ;;  %v570_v18 = vld [vmem:[%s2454_s8 + $0x558] sm:$0xff] }
  0x31   : > { %675 = vmatprep.subr.mxu0 %v2253_v1  ;;  %2157 = vmatprep.subr.mxu1 %v2253_v1 }
  0x32   : > { %676 = vmatpush2.msra.mxu0 %v620_v19  ;;  %2189 = vmatpush2.msra.mxu1 %v620_v19  ;;  %v430_v19 = vld [vmem:[%s2454_s8 + $0xf8] sm:$0xff] }
  0x33   : > { %677 = vmatprep.subr.mxu0 %v2253_v1  ;;  %2158 = vmatprep.subr.mxu1 %v2253_v1 }
  0x34   : > { %678 = vmatpush2.msra.mxu0 %v619_v20  ;;  %2190 = vmatpush2.msra.mxu1 %v619_v20  ;;  %v574_v20 = vld [vmem:[%s2454_s8 + $0x578] sm:$0xff] }
  0x35   : > { %679 = vmatprep.subr.mxu0 %v2253_v1  ;;  %2159 = vmatprep.subr.mxu1 %v2253_v1 }
  0x36   : > { %680 = vmatpush2.msra.mxu0 %v618_v21  ;;  %2191 = vmatpush2.msra.mxu1 %v618_v21  ;;  %v628_v21 = vld [vmem:[%s2984_s1 + $0x128] sm:$0xff] }
  0x37   : > { %681 = vmatprep.subr.mxu0 %v2253_v1  ;;  %2160 = vmatprep.subr.mxu1 %v2253_v1 }
  0x38   : > { %682 = vmatpush2.msra.mxu0 %v617_v22  ;;  %2192 = vmatpush2.msra.mxu1 %v617_v22  ;;  %v429_v22 = vld [vmem:[%s2454_s8 + $0xf0] sm:$0xff] }
  0x39   : > { %683 = vmatprep.subr.mxu0 %v2253_v1  ;;  %2161 = vmatprep.subr.mxu1 %v2253_v1 }
  0x3a   : > { %684 = vmatpush2.msra.mxu0 %v616_v23  ;;  %2193 = vmatpush2.msra.mxu1 %v616_v23  ;;  %v573_v23 = vld [vmem:[%s2454_s8 + $0x570] sm:$0xff] }
  0x3b   : > { %685 = vmatprep.subr.mxu0 %v2253_v1  ;;  %2162 = vmatprep.subr.mxu1 %v2253_v1 }
  0x3c   : > { %686 = vmatpush2.msra.mxu0 %v615_v24  ;;  %2194 = vmatpush2.msra.mxu1 %v615_v24  ;;  %v433_v24 = vld [vmem:[%s2454_s8 + $0x110] sm:$0xff] }
  0x3d   : > { %687 = vmatprep.subr.mxu0 %v2253_v1  ;;  %2163 = vmatprep.subr.mxu1 %v2253_v1 }
  0x3e   : > { %688 = vmatpush2.msra.mxu0 %v614_v25  ;;  %2195 = vmatpush2.msra.mxu1 %v614_v25  ;;  %v577_v25 = vld [vmem:[%s2454_s8 + $0x590] sm:$0xff] }
  0x3f   : > { %689 = vmatprep.subr.mxu0 %v2253_v1  ;;  %2164 = vmatprep.subr.mxu1 %v2253_v1 }
  0x40   : > { %690 = vmatpush2.msra.mxu0 %v613_v26  ;;  %2196 = vmatpush2.msra.mxu1 %v613_v26  ;;  %v627_v26 = vld [vmem:[%s2984_s1 + $0x120] sm:$0xff] }
  0x41   : > { %691 = vmatprep.subr.mxu0 %v2253_v1  ;;  %2165 = vmatprep.subr.mxu1 %v2253_v1 }
  0x42   : > { %692 = vmatpush2.msra.mxu0 %v612_v27  ;;  %2197 = vmatpush2.msra.mxu1 %v612_v27  ;;  %v432_v27 = vld [vmem:[%s2454_s8 + $0x108] sm:$0xff] }
  0x43   : > { %693 = vmatprep.subr.mxu0 %v2253_v1  ;;  %2166 = vmatprep.subr.mxu1 %v2253_v1 }
  0x44   : > { %694 = vmatpush2.msra.mxu0 %v611_v28  ;;  %2198 = vmatpush2.msra.mxu1 %v611_v28  ;;  %v576_v28 = vld [vmem:[%s2454_s8 + $0x588] sm:$0xff] }
  0x45   : > { %695 = vmatprep.subr.mxu0 %v2253_v1  ;;  %2167 = vmatprep.subr.mxu1 %v2253_v1 }
  0x46   : > { %696 = vmatpush2.msra.mxu0 %v610_v29  ;;  %2199 = vmatpush2.msra.mxu1 %v610_v29  ;;  %v436_v29 = vld [vmem:[%s2454_s8 + $0x128] sm:$0xff] }
  0x47   : > { %697 = vmatprep.subr.mxu0 %v2253_v1  ;;  %2168 = vmatprep.subr.mxu1 %v2253_v1 }
  0x48   : > { %698 = vmatpush2.msra.mxu0 %v609_v30  ;;  %2200 = vmatpush2.msra.mxu1 %v609_v30  ;;  %v580_v30 = vld [vmem:[%s2454_s8 + $0x5a8] sm:$0xff] }
  0x49   : > { %699 = vmatprep.subr.mxu0 %v2253_v1  ;;  %2169 = vmatprep.subr.mxu1 %v2253_v1 }
  0x4a   : > { %700 = vmatpush2.msra.mxu0 %v608_v31  ;;  %2201 = vmatpush2.msra.mxu1 %v608_v31  ;;  %v626_v31 = vld [vmem:[%s2984_s1 + $0x118] sm:$0xff] }
  0x4b   : > { %701 = vmatprep.subr.mxu0 %v2253_v1  ;;  %2170 = vmatprep.subr.mxu1 %v2253_v1  ;;  %v632_v1 = vld [vmem:[%s2984_s1 + $0x148] sm:$0xff] }
  0x4c   : > { %702 = vmatpush2.msra.mxu0 %v607_v32  ;;  %2202 = vmatpush2.msra.mxu1 %v607_v32  ;;  %v435_v32 = vld [vmem:[%s2454_s8 + $0x120] sm:$0xff] }
  0x4d   : > { %703 = vmatprep.mubr.f32.mxu0 %v400_v33  ;;  %943 = vmatprep.mubr.f32.mxu1 %v544_v34  ;;  %v579_v33 = vld [vmem:[%s2454_s8 + $0x5a0] sm:$0xff] }
  0x4e   : > { %704 = vmatmul.mubr.f32.vlgmr.msra.gmra.mxu0 %v399_v35  ;;  %944 = vmatmul.mubr.f32.vlgmr.msra.gmra.mxu1 %v543_v36  ;;  %v439_v34 = vld [vmem:[%s2454_s8 + $0x140] sm:$0xff]  ;;  %v625_v36 = vld [vmem:[%s2984_s1 + $0x110] sm:$0xff] }
  0x4f   : > { %2011 = vmatprep.subr.mxu1 %v638_v37  ;;  %708 = vmatprep.mubr.f32.mxu0 %v403_v38  ;;  %v583_v35 = vld [vmem:[%s2454_s8 + $0x5c0] sm:$0xff]  ;;  %v582_v38 = vld [vmem:[%s2454_s8 + $0x5b8] sm:$0xff] }
  0x50   : > { %2012 = vmatpush3.msra.mxu1 %v638_v37  ;;  %948 = vmatprep.mubr.f32.mxu1 %v547_v39  ;;  %v438_v37 = vld [vmem:[%s2454_s8 + $0x138] sm:$0xff] }
  0x51   : > { %2013 = vmatprep.subr.mxu1 %v637_v40  ;;  %v442_v39 = vld [vmem:[%s2454_s8 + $0x158] sm:$0xff] }
  0x52   : > { %709 = vmatmul.mubr.f32.gmra.mxu0 %v402_v41  ;;  %949 = vmatmul.mubr.f32.gmra.mxu1 %v546_v42  ;;  %v624_v41 = vld [vmem:[%s2984_s1 + $0x108] sm:$0xff]  ;;  %v441_v42 = vld [vmem:[%s2454_s8 + $0x150] sm:$0xff] }
  0x53   : > { %2014 = vmatpush3.msra.mxu1 %v637_v40  ;;  %713 = vmatprep.mubr.f32.mxu0 %v406_v43  ;;  %v586_v40 = vld [vmem:[%s2454_s8 + $0x5d8] sm:$0xff]  ;;  %v585_v43 = vld [vmem:[%s2454_s8 + $0x5d0] sm:$0xff] }
  0x54   : > { %953 = vmatprep.mubr.f32.mxu1 %v550_v44  ;;  %2015 = vmatprep.subr.mxu1 %v636_v45  ;;  %v445_v44 = vld [vmem:[%s2454_s8 + $0x170] sm:$0xff] }
  0x55   : > { %2016 = vmatpush3.msra.mxu1 %v636_v45  ;;  %v589_v45 = vld [vmem:[%s2454_s8 + $0x5f0] sm:$0xff] }
  0x56   : > { %714 = vmatmul.mubr.f32.gmra.mxu0 %v405_v46  ;;  %954 = vmatmul.mubr.f32.gmra.mxu1 %v549_v47  ;;  %v623_v46 = vld [vmem:[%s2984_s1 + $0x100] sm:$0xff]  ;;  %v444_v47 = vld [vmem:[%s2454_s8 + $0x168] sm:$0xff] }
  0x57   : > { %718 = vmatprep.mubr.f32.mxu0 %v409_v48  ;;  %958 = vmatprep.mubr.f32.mxu1 %v553_v49  ;;  %v588_v48 = vld [vmem:[%s2454_s8 + $0x5e8] sm:$0xff] }
  0x58   : > { %2017 = vmatprep.subr.mxu1 %v635_v50  ;;  %v448_v49 = vld [vmem:[%s2454_s8 + $0x188] sm:$0xff] }
  0x59   : > { %2018 = vmatpush3.msra.mxu1 %v635_v50  ;;  %v401_v50 = vld [vmem:[%s2454_s8 + $0x10] sm:$0xff] }
  0x5a   : > { %719 = vmatmul.mubr.f32.gmra.mxu0 %v408_v51  ;;  %959 = vmatmul.mubr.f32.gmra.mxu1 %v552_v52  ;;  %v447_v51 = vld [vmem:[%s2454_s8 + $0x180] sm:$0xff]  ;;  %v404_v52 = vld [vmem:[%s2454_s8 + $0x28] sm:$0xff] }
  0x5b   : > { %723 = vmatprep.mubr.f32.mxu0 %v412_v53  ;;  %963 = vmatprep.mubr.f32.mxu1 %v556_v54  ;;  %v451_v53 = vld [vmem:[%s2454_s8 + $0x1a0] sm:$0xff] }
  0x5c   : > { %2019 = vmatprep.subr.mxu1 %v634_v55  ;;  %v407_v54 = vld [vmem:[%s2454_s8 + $0x40] sm:$0xff] }
  0x5d   : > { %2020 = vmatpush3.msra.mxu1 %v634_v55  ;;  %v450_v55 = vld [vmem:[%s2454_s8 + $0x198] sm:$0xff] }
  0x5e   : > { %724 = vmatmul.mubr.f32.gmra.mxu0 %v411_v56  ;;  %964 = vmatmul.mubr.f32.gmra.mxu1 %v555_v57  ;;  %v410_v56 = vld [vmem:[%s2454_s8 + $0x58] sm:$0xff] }
  0x5f   : > { %728 = vmatprep.mubr.f32.mxu0 %v415_v58  ;;  %968 = vmatprep.mubr.f32.mxu1 %v559_v59  ;;  %v454_v57 = vld [vmem:[%s2454_s8 + $0x1b8] sm:$0xff]  ;;  %v413_v58 = vld [vmem:[%s2454_s8 + $0x70] sm:$0xff] }
  0x60   : > { %2021 = vmatprep.subr.mxu1 %v633_v60  ;;  %v453_v59 = vld [vmem:[%s2454_s8 + $0x1b0] sm:$0xff] }
  0x61   : > { %2022 = vmatpush3.msra.mxu1 %v633_v60  ;;  %v416_v60 = vld [vmem:[%s2454_s8 + $0x88] sm:$0xff] }
  0x62   : > { %729 = vmatmul.mubr.f32.gmra.mxu0 %v414_v61  ;;  %969 = vmatmul.mubr.f32.gmra.mxu1 %v558_v62  ;;  %v457_v61 = vld [vmem:[%s2454_s8 + $0x1d0] sm:$0xff]  ;;  %v419_v62 = vld [vmem:[%s2454_s8 + $0xa0] sm:$0xff] }
  0x63   : > { %733 = vmatprep.mubr.f32.mxu0 %v418_v63  ;;  %973 = vmatprep.mubr.f32.mxu1 %v562_v0  ;;  %v456_v63 = vld [vmem:[%s2454_s8 + $0x1c8] sm:$0xff]  ;;  %v422_v0 = vld [vmem:[%s2454_s8 + $0xb8] sm:$0xff] }
  0x64   : > { %2023 = vmatprep.subr.mxu1 %v632_v1 }
  0x65   : > { %2024 = vmatpush3.msra.mxu1 %v632_v1  ;;  %v460_v1 = vld [vmem:[%s2454_s8 + $0x1e8] sm:$0xff] }
  0x66   : > { %734 = vmatmul.mubr.f32.gmra.mxu0 %v417_v2  ;;  %974 = vmatmul.mubr.f32.gmra.mxu1 %v561_v3  ;;  %v425_v2 = vld [vmem:[%s2454_s8 + $0xd0] sm:$0xff]  ;;  %v459_v3 = vld [vmem:[%s2454_s8 + $0x1e0] sm:$0xff] }
  0x67   : > { %738 = vmatprep.mubr.f32.mxu0 %v421_v4  ;;  %978 = vmatprep.mubr.f32.mxu1 %v565_v5  ;;  %v428_v4 = vld [vmem:[%s2454_s8 + $0xe8] sm:$0xff]  ;;  %v463_v5 = vld [vmem:[%s2454_s8 + $0x200] sm:$0xff] }
  0x68   : > { %2025 = vmatprep.subr.mxu1 %v631_v6 }
  0x69   : > { %2026 = vmatpush3.msra.mxu1 %v631_v6  ;;  %v431_v6 = vld [vmem:[%s2454_s8 + $0x100] sm:$0xff] }
  0x6a   : > { %739 = vmatmul.mubr.f32.gmra.mxu0 %v420_v7  ;;  %979 = vmatmul.mubr.f32.gmra.mxu1 %v564_v8  ;;  %v462_v7 = vld [vmem:[%s2454_s8 + $0x1f8] sm:$0xff] }
  0x6b   : > { %743 = vmatprep.mubr.f32.mxu0 %v424_v9  ;;  %983 = vmatprep.mubr.f32.mxu1 %v568_v10  ;;  %v434_v8 = vld [vmem:[%s2454_s8 + $0x118] sm:$0xff]  ;;  %v437_v10 = vld [vmem:[%s2454_s8 + $0x130] sm:$0xff] }
  0x6c   : > { %2027 = vmatprep.subr.mxu1 %v630_v11  ;;  %v466_v9 = vld [vmem:[%s2454_s8 + $0x218] sm:$0xff] }
  0x6d   : > { %2028 = vmatpush3.msra.mxu1 %v630_v11  ;;  %v465_v11 = vld [vmem:[%s2454_s8 + $0x210] sm:$0xff] }
  0x6e   : > { %744 = vmatmul.mubr.f32.gmra.mxu0 %v423_v12  ;;  %984 = vmatmul.mubr.f32.gmra.mxu1 %v567_v13  ;;  %v440_v12 = vld [vmem:[%s2454_s8 + $0x148] sm:$0xff]  ;;  %v469_v13 = vld [vmem:[%s2454_s8 + $0x230] sm:$0xff] }
  0x6f   : > { %748 = vmatprep.mubr.f32.mxu0 %v427_v14  ;;  %988 = vmatprep.mubr.f32.mxu1 %v571_v15  ;;  %v443_v14 = vld [vmem:[%s2454_s8 + $0x160] sm:$0xff]  ;;  %v468_v15 = vld [vmem:[%s2454_s8 + $0x228] sm:$0xff] }
  0x70   : > { %2029 = vmatprep.subr.mxu1 %v629_v16 }
  0x71   : > { %2030 = vmatpush3.msra.mxu1 %v629_v16  ;;  %v446_v16 = vld [vmem:[%s2454_s8 + $0x178] sm:$0xff] }
  0x72   : > { %749 = vmatmul.mubr.f32.gmra.mxu0 %v426_v17  ;;  %989 = vmatmul.mubr.f32.gmra.mxu1 %v570_v18  ;;  %v472_v17 = vld [vmem:[%s2454_s8 + $0x248] sm:$0xff]  ;;  %v449_v18 = vld [vmem:[%s2454_s8 + $0x190] sm:$0xff] }
  0x73   : > { %753 = vmatprep.mubr.f32.mxu0 %v430_v19  ;;  %993 = vmatprep.mubr.f32.mxu1 %v574_v20  ;;  %v471_v19 = vld [vmem:[%s2454_s8 + $0x240] sm:$0xff]  ;;  %v452_v20 = vld [vmem:[%s2454_s8 + $0x1a8] sm:$0xff] }
  0x74   : > { %2031 = vmatprep.subr.mxu1 %v628_v21 }
  0x75   : > { %2032 = vmatpush3.msra.mxu1 %v628_v21  ;;  %v475_v21 = vld [vmem:[%s2454_s8 + $0x260] sm:$0xff] }
  0x76   : > { %754 = vmatmul.mubr.f32.gmra.mxu0 %v429_v22  ;;  %994 = vmatmul.mubr.f32.gmra.mxu1 %v573_v23  ;;  %v455_v22 = vld [vmem:[%s2454_s8 + $0x1c0] sm:$0xff]  ;;  %v474_v23 = vld [vmem:[%s2454_s8 + $0x258] sm:$0xff] }
  0x77   : > { %758 = vmatprep.mubr.f32.mxu0 %v433_v24  ;;  %998 = vmatprep.mubr.f32.mxu1 %v577_v25  ;;  %v458_v24 = vld [vmem:[%s2454_s8 + $0x1d8] sm:$0xff] }
  0x78   : > { %2033 = vmatprep.subr.mxu1 %v627_v26  ;;  %v478_v25 = vld [vmem:[%s2454_s8 + $0x278] sm:$0xff] }
  0x79   : > { %2034 = vmatpush3.msra.mxu1 %v627_v26  ;;  %v461_v26 = vld [vmem:[%s2454_s8 + $0x1f0] sm:$0xff] }
  0x7a   : > { %759 = vmatmul.mubr.f32.gmra.mxu0 %v432_v27  ;;  %999 = vmatmul.mubr.f32.gmra.mxu1 %v576_v28  ;;  %v477_v27 = vld [vmem:[%s2454_s8 + $0x270] sm:$0xff]  ;;  %v464_v28 = vld [vmem:[%s2454_s8 + $0x208] sm:$0xff] }
  0x7b   : > { %763 = vmatprep.mubr.f32.mxu0 %v436_v29  ;;  %1003 = vmatprep.mubr.f32.mxu1 %v580_v30  ;;  %v481_v29 = vld [vmem:[%s2454_s8 + $0x290] sm:$0xff]  ;;  %v467_v30 = vld [vmem:[%s2454_s8 + $0x220] sm:$0xff] }
  0x7c   : > { %2035 = vmatprep.subr.mxu1 %v626_v31 }
  0x7d   : > { %2036 = vmatpush3.msra.mxu1 %v626_v31  ;;  %v480_v31 = vld [vmem:[%s2454_s8 + $0x288] sm:$0xff] }
  0x7e   : > { %764 = vmatmul.mubr.f32.gmra.mxu0 %v435_v32  ;;  %1004 = vmatmul.mubr.f32.gmra.mxu1 %v579_v33  ;;  %v470_v32 = vld [vmem:[%s2454_s8 + $0x238] sm:$0xff]  ;;  %v484_v33 = vld [vmem:[%s2454_s8 + $0x2a8] sm:$0xff] }
  0x7f   : > { %768 = vmatprep.mubr.f32.mxu0 %v439_v34  ;;  %1008 = vmatprep.mubr.f32.mxu1 %v583_v35  ;;  %v473_v34 = vld [vmem:[%s2454_s8 + $0x250] sm:$0xff]  ;;  %v483_v35 = vld [vmem:[%s2454_s8 + $0x2a0] sm:$0xff] }
  0x80   : > { %2037 = vmatprep.subr.mxu1 %v625_v36 }
  0x81   : > { %2038 = vmatpush3.msra.mxu1 %v625_v36  ;;  %v476_v36 = vld [vmem:[%s2454_s8 + $0x268] sm:$0xff] }
  0x82   : > { %769 = vmatmul.mubr.f32.gmra.mxu0 %v438_v37  ;;  %1009 = vmatmul.mubr.f32.gmra.mxu1 %v582_v38  ;;  %v487_v37 = vld [vmem:[%s2454_s8 + $0x2c0] sm:$0xff] }
  0x83   : > { %773 = vmatprep.mubr.f32.mxu0 %v442_v39  ;;  %1013 = vmatprep.mubr.f32.mxu1 %v586_v40  ;;  %v479_v38 = vld [vmem:[%s2454_s8 + $0x280] sm:$0xff]  ;;  %v486_v39 = vld [vmem:[%s2454_s8 + $0x2b8] sm:$0xff] }
  0x84   : > { %2039 = vmatprep.subr.mxu1 %v624_v41  ;;  %v482_v40 = vld [vmem:[%s2454_s8 + $0x298] sm:$0xff] }
  0x85   : > { %2040 = vmatpush3.msra.mxu1 %v624_v41  ;;  %v490_v41 = vld [vmem:[%s2454_s8 + $0x2d8] sm:$0xff] }
  0x86   : > { %774 = vmatmul.mubr.f32.gmra.mxu0 %v441_v42  ;;  %1014 = vmatmul.mubr.f32.gmra.mxu1 %v585_v43  ;;  %v485_v42 = vld [vmem:[%s2454_s8 + $0x2b0] sm:$0xff] }
  0x87   : > { %778 = vmatprep.mubr.f32.mxu0 %v445_v44  ;;  %1018 = vmatprep.mubr.f32.mxu1 %v589_v45  ;;  %v489_v43 = vld [vmem:[%s2454_s8 + $0x2d0] sm:$0xff]  ;;  %v488_v44 = vld [vmem:[%s2454_s8 + $0x2c8] sm:$0xff] }
  0x88   : > { %2041 = vmatprep.subr.mxu1 %v623_v46  ;;  %v493_v45 = vld [vmem:[%s2454_s8 + $0x2f0] sm:$0xff] }
  0x89   : > { %2042 = vmatpush3.msra.mxu1 %v623_v46  ;;  %v491_v46 = vld [vmem:[%s2454_s8 + $0x2e0] sm:$0xff] }
  0x8a   : > { %779 = vmatmul.mubr.f32.gmra.mxu0 %v444_v47  ;;  %1019 = vmatmul.mubr.f32.gmra.mxu1 %v588_v48  ;;  %v492_v47 = vld [vmem:[%s2454_s8 + $0x2e8] sm:$0xff]  ;;  %v494_v48 = vld [vmem:[%s2454_s8 + $0x2f8] sm:$0xff] }
  0x8b   : > { %783 = vmatprep.mubr.f32.mxu0 %v448_v49  ;;  %2043 = vmatprep.mubr.f32.mxu1 %v401_v50  ;;  %v496_v49 = vld [vmem:[%s2454_s8 + $0x308] sm:$0xff]  ;;  %v497_v50 = vld [vmem:[%s2454_s8 + $0x310] sm:$0xff] }
  0x8e   : > { %784 = vmatmul.mubr.f32.gmra.mxu0 %v447_v51  ;;  %2044 = vmatmul.mubr.f32.vlgmr.msra.gmra.mxu1 %v404_v52  ;;  %v495_v51 = vld [vmem:[%s2454_s8 + $0x300] sm:$0xff]  ;;  %v500_v52 = vld [vmem:[%s2454_s8 + $0x328] sm:$0xff] }
  0x8f   : > { %788 = vmatprep.mubr.f32.mxu0 %v451_v53  ;;  %2046 = vmatprep.mubr.f32.mxu1 %v407_v54  ;;  %v499_v53 = vld [vmem:[%s2454_s8 + $0x320] sm:$0xff] }
  0x90   : > { %v503_v54 = vld [vmem:[%s2454_s8 + $0x340] sm:$0xff] }
  0x92   : > { %789 = vmatmul.mubr.f32.gmra.mxu0 %v450_v55  ;;  %2047 = vmatmul.mubr.f32.gmra.mxu1 %v410_v56  ;;  %v498_v55 = vld [vmem:[%s2454_s8 + $0x318] sm:$0xff] }
  0x93   : > { %793 = vmatprep.mubr.f32.mxu0 %v454_v57  ;;  %2049 = vmatprep.mubr.f32.mxu1 %v413_v58  ;;  %v506_v56 = vld [vmem:[%s2454_s8 + $0x358] sm:$0xff]  ;;  %v509_v58 = vld [vmem:[%s2454_s8 + $0x370] sm:$0xff] }
  0x94   : > { %v502_v57 = vld [vmem:[%s2454_s8 + $0x338] sm:$0xff] }
  0x96   : > { %794 = vmatmul.mubr.f32.gmra.mxu0 %v453_v59  ;;  %2050 = vmatmul.mubr.f32.gmra.mxu1 %v416_v60  ;;  %v501_v59 = vld [vmem:[%s2454_s8 + $0x330] sm:$0xff]  ;;  %v512_v60 = vld [vmem:[%s2454_s8 + $0x388] sm:$0xff] }
  0x97   : > { %798 = vmatprep.mubr.f32.mxu0 %v457_v61  ;;  %2052 = vmatprep.mubr.f32.mxu1 %v419_v62  ;;  %v505_v61 = vld [vmem:[%s2454_s8 + $0x350] sm:$0xff]  ;;  %v515_v62 = vld [vmem:[%s2454_s8 + $0x3a0] sm:$0xff] }
  0x9a   : > { %799 = vmatmul.mubr.f32.gmra.mxu0 %v456_v63  ;;  %2053 = vmatmul.mubr.f32.gmra.mxu1 %v422_v0  ;;  %v504_v63 = vld [vmem:[%s2454_s8 + $0x348] sm:$0xff]  ;;  %v518_v0 = vld [vmem:[%s2454_s8 + $0x3b8] sm:$0xff] }
  0x9b   : > { %803 = vmatprep.mubr.f32.mxu0 %v460_v1  ;;  %2055 = vmatprep.mubr.f32.mxu1 %v425_v2  ;;  %v508_v1 = vld [vmem:[%s2454_s8 + $0x368] sm:$0xff]  ;;  %v521_v2 = vld [vmem:[%s2454_s8 + $0x3d0] sm:$0xff] }
  0x9e   : > { %804 = vmatmul.mubr.f32.gmra.mxu0 %v459_v3  ;;  %2056 = vmatmul.mubr.f32.gmra.mxu1 %v428_v4  ;;  %v507_v3 = vld [vmem:[%s2454_s8 + $0x360] sm:$0xff]  ;;  %v524_v4 = vld [vmem:[%s2454_s8 + $0x3e8] sm:$0xff] }
  0x9f   : > { %808 = vmatprep.mubr.f32.mxu0 %v463_v5  ;;  %2058 = vmatprep.mubr.f32.mxu1 %v431_v6  ;;  %v511_v5 = vld [vmem:[%s2454_s8 + $0x380] sm:$0xff] }
  0xa0   : > { %v527_v6 = vld [vmem:[%s2454_s8 + $0x400] sm:$0xff] }
  0xa2   : > { %809 = vmatmul.mubr.f32.gmra.mxu0 %v462_v7  ;;  %2059 = vmatmul.mubr.f32.gmra.mxu1 %v434_v8  ;;  %v510_v7 = vld [vmem:[%s2454_s8 + $0x378] sm:$0xff] }
  0xa3   : > { %813 = vmatprep.mubr.f32.mxu0 %v466_v9  ;;  %2061 = vmatprep.mubr.f32.mxu1 %v437_v10  ;;  %v530_v8 = vld [vmem:[%s2454_s8 + $0x418] sm:$0xff]  ;;  %v533_v10 = vld [vmem:[%s2454_s8 + $0x430] sm:$0xff] }
  0xa4   : > { %v514_v9 = vld [vmem:[%s2454_s8 + $0x398] sm:$0xff] }
  0xa6   : > { %814 = vmatmul.mubr.f32.gmra.mxu0 %v465_v11  ;;  %2062 = vmatmul.mubr.f32.gmra.mxu1 %v440_v12  ;;  %v513_v11 = vld [vmem:[%s2454_s8 + $0x390] sm:$0xff]  ;;  %v536_v12 = vld [vmem:[%s2454_s8 + $0x448] sm:$0xff] }
  0xa7   : > { %818 = vmatprep.mubr.f32.mxu0 %v469_v13  ;;  %2064 = vmatprep.mubr.f32.mxu1 %v443_v14  ;;  %v517_v13 = vld [vmem:[%s2454_s8 + $0x3b0] sm:$0xff]  ;;  %v539_v14 = vld [vmem:[%s2454_s8 + $0x460] sm:$0xff] }
  0xaa   : > { %819 = vmatmul.mubr.f32.gmra.mxu0 %v468_v15  ;;  %2065 = vmatmul.mubr.f32.gmra.mxu1 %v446_v16  ;;  %v516_v15 = vld [vmem:[%s2454_s8 + $0x3a8] sm:$0xff]  ;;  %v542_v16 = vld [vmem:[%s2454_s8 + $0x478] sm:$0xff] }
  0xab   : > { %823 = vmatprep.mubr.f32.mxu0 %v472_v17  ;;  %2067 = vmatprep.mubr.f32.mxu1 %v449_v18  ;;  %v520_v17 = vld [vmem:[%s2454_s8 + $0x3c8] sm:$0xff]  ;;  %v545_v18 = vld [vmem:[%s2454_s8 + $0x490] sm:$0xff] }
  0xae   : > { %824 = vmatmul.mubr.f32.gmra.mxu0 %v471_v19  ;;  %2068 = vmatmul.mubr.f32.gmra.mxu1 %v452_v20  ;;  %v519_v19 = vld [vmem:[%s2454_s8 + $0x3c0] sm:$0xff]  ;;  %v548_v20 = vld [vmem:[%s2454_s8 + $0x4a8] sm:$0xff] }
  0xaf   : > { %828 = vmatprep.mubr.f32.mxu0 %v475_v21  ;;  %2070 = vmatprep.mubr.f32.mxu1 %v455_v22  ;;  %v523_v21 = vld [vmem:[%s2454_s8 + $0x3e0] sm:$0xff] }
  0xb0   : > { %v551_v22 = vld [vmem:[%s2454_s8 + $0x4c0] sm:$0xff] }
  0xb2   : > { %829 = vmatmul.mubr.f32.gmra.mxu0 %v474_v23  ;;  %2071 = vmatmul.mubr.f32.gmra.mxu1 %v458_v24  ;;  %v522_v23 = vld [vmem:[%s2454_s8 + $0x3d8] sm:$0xff] }
  0xb3   : > { %833 = vmatprep.mubr.f32.mxu0 %v478_v25  ;;  %2073 = vmatprep.mubr.f32.mxu1 %v461_v26  ;;  %v554_v24 = vld [vmem:[%s2454_s8 + $0x4d8] sm:$0xff]  ;;  %v557_v26 = vld [vmem:[%s2454_s8 + $0x4f0] sm:$0xff] }
  0xb4   : > { %v526_v25 = vld [vmem:[%s2454_s8 + $0x3f8] sm:$0xff] }
  0xb6   : > { %834 = vmatmul.mubr.f32.gmra.mxu0 %v477_v27  ;;  %2074 = vmatmul.mubr.f32.gmra.mxu1 %v464_v28  ;;  %v525_v27 = vld [vmem:[%s2454_s8 + $0x3f0] sm:$0xff]  ;;  %v560_v28 = vld [vmem:[%s2454_s8 + $0x508] sm:$0xff] }
  0xb7   : > { %838 = vmatprep.mubr.f32.mxu0 %v481_v29  ;;  %2076 = vmatprep.mubr.f32.mxu1 %v467_v30  ;;  %v529_v29 = vld [vmem:[%s2454_s8 + $0x410] sm:$0xff]  ;;  %v563_v30 = vld [vmem:[%s2454_s8 + $0x520] sm:$0xff] }
  0xba   : > { %839 = vmatmul.mubr.f32.gmra.mxu0 %v480_v31  ;;  %2077 = vmatmul.mubr.f32.gmra.mxu1 %v470_v32  ;;  %v528_v31 = vld [vmem:[%s2454_s8 + $0x408] sm:$0xff]  ;;  %v566_v32 = vld [vmem:[%s2454_s8 + $0x538] sm:$0xff] }
  0xbb   : > { %843 = vmatprep.mubr.f32.mxu0 %v484_v33  ;;  %2079 = vmatprep.mubr.f32.mxu1 %v473_v34  ;;  %v532_v33 = vld [vmem:[%s2454_s8 + $0x428] sm:$0xff]  ;;  %v569_v34 = vld [vmem:[%s2454_s8 + $0x550] sm:$0xff] }
  0xbe   : > { %844 = vmatmul.mubr.f32.gmra.mxu0 %v483_v35  ;;  %2080 = vmatmul.mubr.f32.gmra.mxu1 %v476_v36  ;;  %v531_v35 = vld [vmem:[%s2454_s8 + $0x420] sm:$0xff]  ;;  %v572_v36 = vld [vmem:[%s2454_s8 + $0x568] sm:$0xff] }
  0xbf   : > { %848 = vmatprep.mubr.f32.mxu0 %v487_v37  ;;  %2082 = vmatprep.mubr.f32.mxu1 %v479_v38  ;;  %v535_v37 = vld [vmem:[%s2454_s8 + $0x440] sm:$0xff] }
  0xc0   : > { %v575_v38 = vld [vmem:[%s2454_s8 + $0x580] sm:$0xff] }
  0xc2   : > { %849 = vmatmul.mubr.f32.gmra.mxu0 %v486_v39  ;;  %2083 = vmatmul.mubr.f32.gmra.mxu1 %v482_v40  ;;  %v534_v39 = vld [vmem:[%s2454_s8 + $0x438] sm:$0xff] }
  0xc3   : > { %853 = vmatprep.mubr.f32.mxu0 %v490_v41  ;;  %2085 = vmatprep.mubr.f32.mxu1 %v485_v42  ;;  %v578_v40 = vld [vmem:[%s2454_s8 + $0x598] sm:$0xff]  ;;  %v581_v42 = vld [vmem:[%s2454_s8 + $0x5b0] sm:$0xff] }
  0xc4   : > { %v538_v41 = vld [vmem:[%s2454_s8 + $0x458] sm:$0xff] }
  0xc6   : > { %854 = vmatmul.mubr.f32.gmra.mxu0 %v489_v43  ;;  %2086 = vmatmul.mubr.f32.gmra.mxu1 %v488_v44  ;;  %v537_v43 = vld [vmem:[%s2454_s8 + $0x450] sm:$0xff]  ;;  %v584_v44 = vld [vmem:[%s2454_s8 + $0x5c8] sm:$0xff] }
  0xc7   : > { %858 = vmatprep.mubr.f32.mxu0 %v493_v45  ;;  %2088 = vmatprep.mubr.f32.mxu1 %v491_v46  ;;  %v541_v45 = vld [vmem:[%s2454_s8 + $0x470] sm:$0xff]  ;;  %v587_v46 = vld [vmem:[%s2454_s8 + $0x5e0] sm:$0xff] }
  0xca   : > { %859 = vmatmul.mubr.f32.gmra.mxu0 %v492_v47  ;;  %2089 = vmatmul.mubr.f32.gmra.mxu1 %v494_v48  ;;  %v540_v47 = vld [vmem:[%s2454_s8 + $0x468] sm:$0xff]  ;;  %v590_v48 = vld [vmem:[%s2454_s8 + $0x5f8] sm:$0xff] }
  0xcb   : > { %863 = vmatprep.mubr.f32.mxu0 %v496_v49  ;;  %2091 = vmatprep.mubr.f32.mxu1 %v497_v50 }
  0xce   : > { %864 = vmatmul.mubr.f32.gmra.mxu0 %v495_v51  ;;  %2092 = vmatmul.mubr.f32.gmra.mxu1 %v500_v52 }
  0xcf   : > { %868 = vmatprep.mubr.f32.mxu0 %v499_v53  ;;  %2094 = vmatprep.mubr.f32.mxu1 %v503_v54 }
  0xd2   : > { %869 = vmatmul.mubr.f32.gmra.mxu0 %v498_v55  ;;  %2095 = vmatmul.mubr.f32.gmra.mxu1 %v506_v56 }
  0xd3   : > { %873 = vmatprep.mubr.f32.mxu0 %v502_v57  ;;  %2097 = vmatprep.mubr.f32.mxu1 %v509_v58 }
  0xd6   : > { %874 = vmatmul.mubr.f32.gmra.mxu0 %v501_v59  ;;  %2098 = vmatmul.mubr.f32.gmra.mxu1 %v512_v60 }
  0xd7   : > { %878 = vmatprep.mubr.f32.mxu0 %v505_v61  ;;  %2100 = vmatprep.mubr.f32.mxu1 %v515_v62 }
  0xda   : > { %879 = vmatmul.mubr.f32.gmra.mxu0 %v504_v63  ;;  %2101 = vmatmul.mubr.f32.gmra.mxu1 %v518_v0 }
  0xdb   : > { %883 = vmatprep.mubr.f32.mxu0 %v508_v1  ;;  %2103 = vmatprep.mubr.f32.mxu1 %v521_v2 }
  0xde   : > { %884 = vmatmul.mubr.f32.gmra.mxu0 %v507_v3  ;;  %2104 = vmatmul.mubr.f32.gmra.mxu1 %v524_v4 }
  0xdf   : > { %888 = vmatprep.mubr.f32.mxu0 %v511_v5  ;;  %2106 = vmatprep.mubr.f32.mxu1 %v527_v6 }
  0xe2   : > { %889 = vmatmul.mubr.f32.gmra.mxu0 %v510_v7  ;;  %2107 = vmatmul.mubr.f32.gmra.mxu1 %v530_v8 }
  0xe3   : > { %893 = vmatprep.mubr.f32.mxu0 %v514_v9  ;;  %2109 = vmatprep.mubr.f32.mxu1 %v533_v10 }
  0xe6   : > { %894 = vmatmul.mubr.f32.gmra.mxu0 %v513_v11  ;;  %2110 = vmatmul.mubr.f32.gmra.mxu1 %v536_v12 }
  0xe7   : > { %898 = vmatprep.mubr.f32.mxu0 %v517_v13  ;;  %2112 = vmatprep.mubr.f32.mxu1 %v539_v14 }
  0xea   : > { %899 = vmatmul.mubr.f32.gmra.mxu0 %v516_v15  ;;  %2113 = vmatmul.mubr.f32.gmra.mxu1 %v542_v16 }
  0xeb   : > { %903 = vmatprep.mubr.f32.mxu0 %v520_v17  ;;  %2115 = vmatprep.mubr.f32.mxu1 %v545_v18 }
  0xee   : > { %904 = vmatmul.mubr.f32.gmra.mxu0 %v519_v19  ;;  %2116 = vmatmul.mubr.f32.gmra.mxu1 %v548_v20 }
  0xef   : > { %908 = vmatprep.mubr.f32.mxu0 %v523_v21  ;;  %2118 = vmatprep.mubr.f32.mxu1 %v551_v22 }
  0xf2   : > { %909 = vmatmul.mubr.f32.gmra.mxu0 %v522_v23  ;;  %2119 = vmatmul.mubr.f32.gmra.mxu1 %v554_v24 }
  0xf3   : > { %913 = vmatprep.mubr.f32.mxu0 %v526_v25  ;;  %2121 = vmatprep.mubr.f32.mxu1 %v557_v26 }
  0xf6   : > { %914 = vmatmul.mubr.f32.gmra.mxu0 %v525_v27  ;;  %2122 = vmatmul.mubr.f32.gmra.mxu1 %v560_v28 }
  0xf7   : > { %918 = vmatprep.mubr.f32.mxu0 %v529_v29  ;;  %2124 = vmatprep.mubr.f32.mxu1 %v563_v30 }
  0xfa   : > { %919 = vmatmul.mubr.f32.gmra.mxu0 %v528_v31  ;;  %2125 = vmatmul.mubr.f32.gmra.mxu1 %v566_v32 }
  0xfb   : > { %923 = vmatprep.mubr.f32.mxu0 %v532_v33  ;;  %2127 = vmatprep.mubr.f32.mxu1 %v569_v34 }
  0xfe   : > { %924 = vmatmul.mubr.f32.gmra.mxu0 %v531_v35  ;;  %2128 = vmatmul.mubr.f32.gmra.mxu1 %v572_v36 }
  0xff   : > { %928 = vmatprep.mubr.f32.mxu0 %v535_v37  ;;  %2130 = vmatprep.mubr.f32.mxu1 %v575_v38 }
 0x102   : > { %929 = vmatmul.mubr.f32.gmra.mxu0 %v534_v39  ;;  %2131 = vmatmul.mubr.f32.gmra.mxu1 %v578_v40 }
 0x103   : > { %933 = vmatprep.mubr.f32.mxu0 %v538_v41  ;;  %2133 = vmatprep.mubr.f32.mxu1 %v581_v42 }
 0x106   : > { %934 = vmatmul.mubr.f32.gmra.mxu0 %v537_v43  ;;  %2134 = vmatmul.mubr.f32.gmra.mxu1 %v584_v44 }
 0x107   : > { %938 = vmatprep.mubr.f32.mxu0 %v541_v45  ;;  %2136 = vmatprep.mubr.f32.mxu1 %v587_v46 }
 0x10a   : > { %939 = vmatmul.mubr.f32.gmra.mxu0 %v540_v47  ;;  %2137 = vmatmul.mubr.f32.gmra.mxu1 %v590_v48 }
 0x10e   : > { %v2703_v49 = vpop.f32.mrf.mxu0  ;;  %v2705_v50 = vpop.f32.mrf.mxu1 }
 0x110   : > { %v707_v51 = vpop.f32.mrf.mxu0  ;;  %v947_v52 = vpop.f32.mrf.mxu1 }
 0x112   : > { %v2707_v53 = vpop.f32.mrf.mxu0  ;;  %v2709_v54 = vpop.f32.mrf.mxu1 }
 0x114   : > { %v712_v55 = vpop.f32.mrf.mxu0  ;;  %v952_v56 = vpop.f32.mrf.mxu1 }
 0x115   : > { %v2772_v55 = vld [vmem:[%s2985_s2] ss:$0 sm:$0xff] }
 0x116   : > { %v2711_v57 = vpop.f32.mrf.mxu0  ;;  %v2713_v58 = vpop.f32.mrf.mxu1 }
 0x118   : > { %v717_v59 = vpop.f32.mrf.mxu0  ;;  %v957_v60 = vpop.f32.mrf.mxu1 }
 0x11a   : > { %v2715_v61 = vpop.f32.mrf.mxu0  ;;  %v2717_v62 = vpop.f32.mrf.mxu1 }
 0x11c   : > { %v722_v63 = vpop.f32.mrf.mxu0  ;;  %v962_v0 = vpop.f32.mrf.mxu1 }
 0x11e   : > { %v2719_v1 = vpop.f32.mrf.mxu0  ;;  %v2721_v2 = vpop.f32.mrf.mxu1 }
 0x120   : > { %v727_v3 = vpop.f32.mrf.mxu0  ;;  %v967_v4 = vpop.f32.mrf.mxu1 }
 0x122   : > { %v2723_v5 = vpop.f32.mrf.mxu0  ;;  %v2725_v6 = vpop.f32.mrf.mxu1 }
 0x124   : > { %v732_v7 = vpop.f32.mrf.mxu0  ;;  %v972_v8 = vpop.f32.mrf.mxu1 }
 0x126   : > { %v2727_v9 = vpop.f32.mrf.mxu0  ;;  %v2729_v10 = vpop.f32.mrf.mxu1 }
 0x128   : > { %v737_v11 = vpop.f32.mrf.mxu0  ;;  %v977_v12 = vpop.f32.mrf.mxu1 }
 0x12a   : > { %v2731_v13 = vpop.f32.mrf.mxu0  ;;  %v2733_v14 = vpop.f32.mrf.mxu1 }
 0x12c   : > { %v742_v15 = vpop.f32.mrf.mxu0  ;;  %v982_v16 = vpop.f32.mrf.mxu1 }
 0x12e   : > { %v2735_v17 = vpop.f32.mrf.mxu0  ;;  %v2737_v18 = vpop.f32.mrf.mxu1 }
 0x130   : > { %v747_v19 = vpop.f32.mrf.mxu0  ;;  %v987_v20 = vpop.f32.mrf.mxu1 }
 0x132   : > { %v2739_v21 = vpop.f32.mrf.mxu0  ;;  %v2741_v22 = vpop.f32.mrf.mxu1 }
 0x134   : > { %v752_v23 = vpop.f32.mrf.mxu0  ;;  %v992_v24 = vpop.f32.mrf.mxu1 }
 0x136   : > { %v2743_v25 = vpop.f32.mrf.mxu0  ;;  %v2745_v26 = vpop.f32.mrf.mxu1 }
 0x138   : > { %v757_v27 = vpop.f32.mrf.mxu0  ;;  %v997_v28 = vpop.f32.mrf.mxu1 }
 0x13a   : > { %v2747_v29 = vpop.f32.mrf.mxu0  ;;  %v2749_v30 = vpop.f32.mrf.mxu1 }
 0x13c   : > { %v762_v31 = vpop.f32.mrf.mxu0  ;;  %v1002_v32 = vpop.f32.mrf.mxu1 }
 0x13e   : > { %v2751_v33 = vpop.f32.mrf.mxu0  ;;  %v2753_v34 = vpop.f32.mrf.mxu1 }
 0x140   : > { %v767_v35 = vpop.f32.mrf.mxu0  ;;  %v1007_v36 = vpop.f32.mrf.mxu1 }
 0x142   : > { %v2755_v37 = vpop.f32.mrf.mxu0  ;;  %v2757_v38 = vpop.f32.mrf.mxu1 }
 0x144   : > { %v772_v39 = vpop.f32.mrf.mxu0  ;;  %v1012_v40 = vpop.f32.mrf.mxu1 }
 0x146   : > { %v2759_v41 = vpop.f32.mrf.mxu0  ;;  %v2761_v42 = vpop.f32.mrf.mxu1 }
 0x148   : > { %v777_v43 = vpop.f32.mrf.mxu0  ;;  %v1017_v44 = vpop.f32.mrf.mxu1 }
 0x14a   : > { %v2763_v45 = vpop.f32.mrf.mxu0  ;;  %v2765_v46 = vpop.f32.mrf.mxu1 }
 0x14c   : > { %v782_v47 = vpop.f32.mrf.mxu0  ;;  %v1022_v48 = vpop.f32.mrf.mxu1 }
 0x14e   : > { %v2767_v51 = vpop.f32.mrf.mxu0  ;;  %v2045_v52 = vpop.f32.mrf.mxu1 }
 0x14f   : > { %v1096_v56 = vadd.f32 %v2045_v52, %v2707_v53 }
 0x150   : > { %v787_v59 = vpop.f32.mrf.mxu0  ;;  %v1090_v60 = vpop.f32.mrf.mxu1 }
 0x151   : > { %v1612_v63 = vadd.f32 %v2772_v55, %v1096_v56  ;;  %v1091_v0 = vadd.f32 %v1090_v60, %v2703_v49 }
 0x152   : > { %v2783_v3 = vpop.f32.mrf.mxu0  ;;  %v2048_v4 = vpop.f32.mrf.mxu1 }
 0x153   : > { %v1676_v7 = vmax.f32 %v1612_v63, 0.0  ;;  %v1611_v8 = vadd.f32 %v2772_v55, %v1091_v0  ;;  %v1106_v53 = vadd.f32 %v2048_v4, %v2715_v61 }
 0x154   : > { %v792_v11 = vpop.f32.mrf.mxu0  ;;  %v1100_v12 = vpop.f32.mrf.mxu1 }
 0x155   : > { %1740 = vst [vmem:[%s2781_s29 + $0x8] sm:$0xff] %v1676_v7  ;;  %v1675_v49 = vmax.f32 %v1611_v8, 0.0  ;;  %v1614_v15 = vadd.f32 %v2772_v55, %v1106_v53  ;;  %v1101_v16 = vadd.f32 %v1100_v12, %v2711_v57 }
 0x156   : > { %v2790_v19 = vpop.f32.mrf.mxu0  ;;  %v2051_v20 = vpop.f32.mrf.mxu1 }
 0x157   : > { %1739 = vst [vmem:[%s2781_s29] sm:$0xff] %v1675_v49  ;;  %v1678_v23 = vmax.f32 %v1614_v15, 0.0  ;;  %v1613_v24 = vadd.f32 %v2772_v55, %v1101_v16  ;;  %v1116_v27 = vadd.f32 %v2051_v20, %v2723_v5 }
 0x158   : > { %v797_v61 = vpop.f32.mrf.mxu0  ;;  %v1110_v28 = vpop.f32.mrf.mxu1 }
 0x159   : > { %1742 = vst [vmem:[%s2781_s29 + $0x18] sm:$0xff] %v1678_v23  ;;  %v1677_v31 = vmax.f32 %v1613_v24, 0.0  ;;  %v1616_v32 = vadd.f32 %v2772_v55, %v1116_v27  ;;  %v1111_v35 = vadd.f32 %v1110_v28, %v2719_v1 }
 0x15a   : > { %v2798_v57 = vpop.f32.mrf.mxu0  ;;  %v2054_v36 = vpop.f32.mrf.mxu1 }
 0x15b   : > { %1741 = vst [vmem:[%s2781_s29 + $0x10] sm:$0xff] %v1677_v31  ;;  %v1680_v39 = vmax.f32 %v1616_v32, 0.0  ;;  %v1615_v40 = vadd.f32 %v2772_v55, %v1111_v35  ;;  %v1126_v43 = vadd.f32 %v2054_v36, %v2731_v13 }
 0x15c   : > { %v802_v5 = vpop.f32.mrf.mxu0  ;;  %v1120_v44 = vpop.f32.mrf.mxu1 }
 0x15d   : > { %1744 = vst [vmem:[%s2781_s29 + $0x28] sm:$0xff] %v1680_v39  ;;  %v1679_v47 = vmax.f32 %v1615_v40, 0.0  ;;  %v1618_v48 = vadd.f32 %v2772_v55, %v1126_v43  ;;  %v1121_v52 = vadd.f32 %v1120_v44, %v2727_v9 }
 0x15e   : > { %v2806_v1 = vpop.f32.mrf.mxu0  ;;  %v2057_v56 = vpop.f32.mrf.mxu1 }
 0x15f   : > { %1743 = vst [vmem:[%s2781_s29 + $0x20] sm:$0xff] %v1679_v47  ;;  %v1682_v59 = vmax.f32 %v1618_v48, 0.0  ;;  %v1617_v60 = vadd.f32 %v2772_v55, %v1121_v52  ;;  %v1136_v63 = vadd.f32 %v2057_v56, %v2739_v21 }
 0x160   : > { %v807_v13 = vpop.f32.mrf.mxu0  ;;  %v1130_v0 = vpop.f32.mrf.mxu1 }
 0x161   : > { %1746 = vst [vmem:[%s2781_s29 + $0x38] sm:$0xff] %v1682_v59  ;;  %v1681_v4 = vmax.f32 %v1617_v60, 0.0  ;;  %v1620_v7 = vadd.f32 %v2772_v55, %v1136_v63  ;;  %v1131_v8 = vadd.f32 %v1130_v0, %v2735_v17 }
 0x162   : > { %v2814_v9 = vpop.f32.mrf.mxu0  ;;  %v2060_v53 = vpop.f32.mrf.mxu1 }
 0x163   : > { %1745 = vst [vmem:[%s2781_s29 + $0x30] sm:$0xff] %v1681_v4  ;;  %v1684_v11 = vmax.f32 %v1620_v7, 0.0  ;;  %v1619_v12 = vadd.f32 %v2772_v55, %v1131_v8  ;;  %v1146_v49 = vadd.f32 %v2060_v53, %v2747_v29 }
 0x164   : > { %v812_v21 = vpop.f32.mrf.mxu0  ;;  %v1140_v15 = vpop.f32.mrf.mxu1 }
 0x165   : > { %1748 = vst [vmem:[%s2781_s29 + $0x48] sm:$0xff] %v1684_v11  ;;  %v1683_v16 = vmax.f32 %v1619_v12, 0.0  ;;  %v1622_v20 = vadd.f32 %v2772_v55, %v1146_v49  ;;  %v1141_v23 = vadd.f32 %v1140_v15, %v2743_v25 }
 0x166   : > { %v2822_v17 = vpop.f32.mrf.mxu0  ;;  %v2063_v24 = vpop.f32.mrf.mxu1 }
 0x167   : > { %1747 = vst [vmem:[%s2781_s29 + $0x40] sm:$0xff] %v1683_v16  ;;  %v1686_v27 = vmax.f32 %v1622_v20, 0.0  ;;  %v1621_v61 = vadd.f32 %v2772_v55, %v1141_v23  ;;  %v1156_v28 = vadd.f32 %v2063_v24, %v2755_v37 }
 0x168   : > { %v817_v29 = vpop.f32.mrf.mxu0  ;;  %v1150_v31 = vpop.f32.mrf.mxu1 }
 0x169   : > { %1750 = vst [vmem:[%s2781_s29 + $0x58] sm:$0xff] %v1686_v27  ;;  %v1685_v32 = vmax.f32 %v1621_v61, 0.0  ;;  %v1624_v35 = vadd.f32 %v2772_v55, %v1156_v28  ;;  %v1151_v36 = vadd.f32 %v1150_v31, %v2751_v33 }
 0x16a   : > { %v820_v25 = vpop.f32.mrf.mxu0  ;;  %v2066_v39 = vpop.f32.mrf.mxu1 }
 0x16b   : > { %1749 = vst [vmem:[%s2781_s29 + $0x50] sm:$0xff] %v1685_v32  ;;  %v1688_v40 = vmax.f32 %v1624_v35, 0.0  ;;  %v1623_v43 = vadd.f32 %v2772_v55, %v1151_v36  ;;  %v1166_v5 = vadd.f32 %v2066_v39, %v2763_v45 }
 0x16c   : > { %v822_v44 = vpop.f32.mrf.mxu0  ;;  %v1160_v37 = vpop.f32.mrf.mxu1 }
 0x16d   : > { %1752 = vst [vmem:[%s2781_s29 + $0x68] sm:$0xff] %v1688_v40  ;;  %v1687_v47 = vmax.f32 %v1623_v43, 0.0  ;;  %v1626_v48 = vadd.f32 %v2772_v55, %v1166_v5  ;;  %v1161_v52 = vadd.f32 %v1160_v37, %v2759_v41 }
 0x16e   : > { %v825_v56 = vpop.f32.mrf.mxu0  ;;  %v2069_v33 = vpop.f32.mrf.mxu1 }
 0x16f   : > { %1751 = vst [vmem:[%s2781_s29 + $0x60] sm:$0xff] %v1687_v47  ;;  %v1690_v59 = vmax.f32 %v1626_v48, 0.0  ;;  %v1625_v60 = vadd.f32 %v2772_v55, %v1161_v52  ;;  %v1176_v63 = vadd.f32 %v2069_v33, %v2783_v3 }
 0x170   : > { %v827_v13 = vpop.f32.mrf.mxu0  ;;  %v1170_v45 = vpop.f32.mrf.mxu1 }
 0x171   : > { %1754 = vst [vmem:[%s2781_s29 + $0x78] sm:$0xff] %v1690_v59  ;;  %v1689_v0 = vmax.f32 %v1625_v60, 0.0  ;;  %v1628_v4 = vadd.f32 %v2772_v55, %v1176_v63  ;;  %v1171_v7 = vadd.f32 %v1170_v45, %v2767_v51 }
 0x172   : > { %v830_v8 = vpop.f32.mrf.mxu0  ;;  %v2072_v41 = vpop.f32.mrf.mxu1 }
 0x173   : > { %1753 = vst [vmem:[%s2781_s29 + $0x70] sm:$0xff] %v1689_v0  ;;  %v1692_v53 = vmax.f32 %v1628_v4, 0.0  ;;  %v1627_v11 = vadd.f32 %v2772_v55, %v1171_v7  ;;  %v1186_v12 = vadd.f32 %v2072_v41, %v2798_v57 }
 0x174   : > { %v832_v49 = vpop.f32.mrf.mxu0  ;;  %v1180_v3 = vpop.f32.mrf.mxu1 }
 0x175   : > { %1756 = vst [vmem:[%s2781_s29 + $0x88] sm:$0xff] %v1692_v53  ;;  %v1691_v21 = vmax.f32 %v1627_v11, 0.0  ;;  %v1630_v15 = vadd.f32 %v2772_v55, %v1186_v12  ;;  %v1181_v16 = vadd.f32 %v1180_v3, %v2790_v19 }
 0x176   : > { %v835_v20 = vpop.f32.mrf.mxu0  ;;  %v2075_v51 = vpop.f32.mrf.mxu1 }
 0x177   : > { %1755 = vst [vmem:[%s2781_s29 + $0x80] sm:$0xff] %v1691_v21  ;;  %v1694_v23 = vmax.f32 %v1630_v15, 0.0  ;;  %v1629_v24 = vadd.f32 %v2772_v55, %v1181_v16  ;;  %v1196_v27 = vadd.f32 %v2075_v51, %v2814_v9 }
 0x178   : > { %v837_v61 = vpop.f32.mrf.mxu0  ;;  %v1190_v57 = vpop.f32.mrf.mxu1 }
 0x179   : > { %1758 = vst [vmem:[%s2781_s29 + $0x98] sm:$0xff] %v1694_v23  ;;  %v1693_v28 = vmax.f32 %v1629_v24, 0.0  ;;  %v1632_v29 = vadd.f32 %v2772_v55, %v1196_v27  ;;  %v1191_v31 = vadd.f32 %v1190_v57, %v2806_v1 }
 0x17a   : > { %v840_v32 = vpop.f32.mrf.mxu0  ;;  %v2078_v19 = vpop.f32.mrf.mxu1 }
 0x17b   : > { %1757 = vst [vmem:[%s2781_s29 + $0x90] sm:$0xff] %v1693_v28  ;;  %v1696_v35 = vmax.f32 %v1632_v29, 0.0  ;;  %v1631_v36 = vadd.f32 %v2772_v55, %v1191_v31  ;;  %v1206_v39 = vadd.f32 %v2078_v19, %v820_v25 }
 0x17c   : > { %v842_v40 = vpop.f32.mrf.mxu0  ;;  %v1200_v43 = vpop.f32.mrf.mxu1 }
 0x17d   : > { %1760 = vst [vmem:[%s2781_s29 + $0xa8] sm:$0xff] %v1696_v35  ;;  %v1695_v9 = vmax.f32 %v1631_v36, 0.0  ;;  %v1634_v5 = vadd.f32 %v2772_v55, %v1206_v39  ;;  %v1201_v44 = vadd.f32 %v1200_v43, %v2822_v17 }
 0x17e   : > { %v845_v37 = vpop.f32.mrf.mxu0  ;;  %v2081_v47 = vpop.f32.mrf.mxu1 }
 0x17f   : > { %1759 = vst [vmem:[%s2781_s29 + $0xa0] sm:$0xff] %v1695_v9  ;;  %v1698_v1 = vmax.f32 %v1634_v5, 0.0  ;;  %v1633_v48 = vadd.f32 %v2772_v55, %v1201_v44  ;;  %v1216_v52 = vadd.f32 %v2081_v47, %v830_v8 }
 0x180   : > { %v847_v33 = vpop.f32.mrf.mxu0  ;;  %v1210_v59 = vpop.f32.mrf.mxu1 }
 0x181   : > { %1762 = vst [vmem:[%s2781_s29 + $0xb8] sm:$0xff] %v1698_v1  ;;  %v1697_v25 = vmax.f32 %v1633_v48, 0.0  ;;  %v1636_v60 = vadd.f32 %v2772_v55, %v1216_v52  ;;  %v1211_v63 = vadd.f32 %v1210_v59, %v825_v56 }
 0x182   : > { %v850_v13 = vpop.f32.mrf.mxu0  ;;  %v2084_v45 = vpop.f32.mrf.mxu1 }
 0x183   : > { %1761 = vst [vmem:[%s2781_s29 + $0xb0] sm:$0xff] %v1697_v25  ;;  %v1700_v17 = vmax.f32 %v1636_v60, 0.0  ;;  %v1635_v0 = vadd.f32 %v2772_v55, %v1211_v63  ;;  %v1226_v4 = vadd.f32 %v2084_v45, %v840_v32 }
 0x184   : > { %v852_v7 = vpop.f32.mrf.mxu0  ;;  %v1220_v41 = vpop.f32.mrf.mxu1 }
 0x185   : > { %1764 = vst [vmem:[%s2781_s29 + $0xc8] sm:$0xff] %v1700_v17  ;;  %v1699_v8 = vmax.f32 %v1635_v0, 0.0  ;;  %v1638_v53 = vadd.f32 %v2772_v55, %v1226_v4  ;;  %v1221_v11 = vadd.f32 %v1220_v41, %v835_v20 }
 0x186   : > { %v855_v12 = vpop.f32.mrf.mxu0  ;;  %v2087_v49 = vpop.f32.mrf.mxu1 }
 0x187   : > { %1763 = vst [vmem:[%s2781_s29 + $0xc0] sm:$0xff] %v1699_v8  ;;  %v1702_v56 = vmax.f32 %v1638_v53, 0.0  ;;  %v1637_v3 = vadd.f32 %v2772_v55, %v1221_v11  ;;  %v1236_v21 = vadd.f32 %v2087_v49, %v850_v13 }
 0x188   : > { %v857_v15 = vpop.f32.mrf.mxu0  ;;  %v1230_v16 = vpop.f32.mrf.mxu1 }
 0x189   : > { %1766 = vst [vmem:[%s2781_s29 + $0xd8] sm:$0xff] %v1702_v56  ;;  %v1701_v51 = vmax.f32 %v1637_v3, 0.0  ;;  %v1640_v23 = vadd.f32 %v2772_v55, %v1236_v21  ;;  %v1231_v24 = vadd.f32 %v1230_v16, %v845_v37 }
 0x18a   : > { %v860_v27 = vpop.f32.mrf.mxu0  ;;  %v2090_v61 = vpop.f32.mrf.mxu1 }
 0x18b   : > { %1765 = vst [vmem:[%s2781_s29 + $0xd0] sm:$0xff] %v1701_v51  ;;  %v1704_v20 = vmax.f32 %v1640_v23, 0.0  ;;  %v1639_v57 = vadd.f32 %v2772_v55, %v1231_v24  ;;  %v1246_v28 = vadd.f32 %v2090_v61, %v860_v27 }
 0x18c   : > { %v862_v29 = vpop.f32.mrf.mxu0  ;;  %v1240_v31 = vpop.f32.mrf.mxu1 }
 0x18d   : > { %1768 = vst [vmem:[%s2781_s29 + $0xe8] sm:$0xff] %v1704_v20  ;;  %v1703_v32 = vmax.f32 %v1639_v57, 0.0  ;;  %v1642_v19 = vadd.f32 %v2772_v55, %v1246_v28  ;;  %v1241_v35 = vadd.f32 %v1240_v31, %v855_v12 }
 0x18e   : > { %v865_v36 = vpop.f32.mrf.mxu0  ;;  %v2093_v39 = vpop.f32.mrf.mxu1 }
 0x18f   : > { %1767 = vst [vmem:[%s2781_s29 + $0xe0] sm:$0xff] %v1703_v32  ;;  %v1706_v40 = vmax.f32 %v1642_v19, 0.0  ;;  %v1641_v43 = vadd.f32 %v2772_v55, %v1241_v35 }
 0x190   : > { %v867_v9 = vpop.f32.mrf.mxu0  ;;  %v1250_v5 = vpop.f32.mrf.mxu1 }
 0x191   : > { %1770 = vst [vmem:[%s2781_s29 + $0xf8] sm:$0xff] %v1706_v40  ;;  %v1705_v44 = vmax.f32 %v1641_v43, 0.0  ;;  %v1251_v37 = vadd.f32 %v1250_v5, %v865_v36 }
 0x192   : > { %v870_v47 = vpop.f32.mrf.mxu0  ;;  %v2096_v1 = vpop.f32.mrf.mxu1 }
 0x193   : > { %1769 = vst [vmem:[%s2781_s29 + $0xf0] sm:$0xff] %v1705_v44  ;;  %v1643_v48 = vadd.f32 %v2772_v55, %v1251_v37  ;;  %v1256_v52 = vadd.f32 %v2093_v39, %v870_v47 }
 0x194   : > { %v872_v33 = vpop.f32.mrf.mxu0  ;;  %v1260_v59 = vpop.f32.mrf.mxu1 }
 0x195   : > { %v1707_v25 = vmax.f32 %v1643_v48, 0.0  ;;  %v1644_v60 = vadd.f32 %v2772_v55, %v1256_v52 }
 0x196   : > { %v875_v63 = vpop.f32.mrf.mxu0  ;;  %v2099_v13 = vpop.f32.mrf.mxu1 }
 0x197   : > { %1771 = vst [vmem:[%s2781_s29 + $0x100] sm:$0xff] %v1707_v25  ;;  %v1708_v45 = vmax.f32 %v1644_v60, 0.0  ;;  %v1261_v17 = vadd.f32 %v1260_v59, %v875_v63 }
 0x198   : > { %v877_v0 = vpop.f32.mrf.mxu0  ;;  %v1270_v4 = vpop.f32.mrf.mxu1 }
 0x199   : > { %1772 = vst [vmem:[%s2781_s29 + $0x108] sm:$0xff] %v1708_v45  ;;  %v1645_v7 = vadd.f32 %v2772_v55, %v1261_v17 }
 0x19a   : > { %v880_v41 = vpop.f32.mrf.mxu0  ;;  %v2102_v8 = vpop.f32.mrf.mxu1 }
 0x19b   : > { %v1709_v53 = vmax.f32 %v1645_v7, 0.0  ;;  %v1266_v11 = vadd.f32 %v2096_v1, %v880_v41 }
 0x19c   : > { %v882_v12 = vpop.f32.mrf.mxu0  ;;  %v1280_v49 = vpop.f32.mrf.mxu1 }
 0x19d   : > { %1773 = vst [vmem:[%s2781_s29 + $0x110] sm:$0xff] %v1709_v53  ;;  %v1646_v56 = vadd.f32 %v2772_v55, %v1266_v11 }
 0x19e   : > { %v885_v3 = vpop.f32.mrf.mxu0  ;;  %v2105_v21 = vpop.f32.mrf.mxu1 }
 0x19f   : > { %v1710_v15 = vmax.f32 %v1646_v56, 0.0  ;;  %v1271_v16 = vadd.f32 %v1270_v4, %v885_v3 }
 0x1a0   : > { %v887_v51 = vpop.f32.mrf.mxu0  ;;  %v1290_v23 = vpop.f32.mrf.mxu1 }
 0x1a1   : > { %1774 = vst [vmem:[%s2781_s29 + $0x118] sm:$0xff] %v1710_v15  ;;  %v1647_v24 = vadd.f32 %v2772_v55, %v1271_v16 }
 0x1a2   : > { %v890_v27 = vpop.f32.mrf.mxu0  ;;  %v2888_v61 = vpop.f32.mrf.mxu1 }
 0x1a3   : > { %v1711_v20 = vmax.f32 %v1647_v24, 0.0  ;;  %v1276_v57 = vadd.f32 %v2099_v13, %v890_v27 }
 0x1a4   : > { %v892_v28 = vpop.f32.mrf.mxu0  ;;  %v1300_v29 = vpop.f32.mrf.mxu1 }
 0x1a5   : > { %1775 = vst [vmem:[%s2781_s29 + $0x120] sm:$0xff] %v1711_v20  ;;  %v1648_v31 = vadd.f32 %v2772_v55, %v1276_v57 }
 0x1a6   : > { %v895_v32 = vpop.f32.mrf.mxu0  ;;  %v2892_v19 = vpop.f32.mrf.mxu1 }
 0x1a7   : > { %v1712_v35 = vmax.f32 %v1648_v31, 0.0  ;;  %v1281_v36 = vadd.f32 %v1280_v49, %v895_v32 }
 0x1a8   : > { %v897_v39 = vpop.f32.mrf.mxu0  ;;  %v2894_v40 = vpop.f32.mrf.mxu1 }
 0x1a9   : > { %1776 = vst [vmem:[%s2781_s29 + $0x128] sm:$0xff] %v1712_v35  ;;  %v1649_v43 = vadd.f32 %v2772_v55, %v1281_v36 }
 0x1aa   : > { %v900_v9 = vpop.f32.mrf.mxu0  ;;  %v2898_v5 = vpop.f32.mrf.mxu1 }
 0x1ab   : > { %v1713_v44 = vmax.f32 %v1649_v43, 0.0  ;;  %v1286_v37 = vadd.f32 %v2102_v8, %v900_v9 }
 0x1ac   : > { %v902_v47 = vpop.f32.mrf.mxu0  ;;  %v2900_v1 = vpop.f32.mrf.mxu1 }
 0x1ad   : > { %1777 = vst [vmem:[%s2781_s29 + $0x130] sm:$0xff] %v1713_v44  ;;  %v1650_v48 = vadd.f32 %v2772_v55, %v1286_v37 }
 0x1ae   : > { %v905_v52 = vpop.f32.mrf.mxu0  ;;  %v2117_v33 = vpop.f32.mrf.mxu1 }
 0x1af   : > { %v1714_v59 = vmax.f32 %v1650_v48, 0.0  ;;  %v1291_v25 = vadd.f32 %v1290_v23, %v905_v52  ;;  %v1336_v60 = vadd.f32 %v2117_v33, %v2709_v54 }
 0x1b0   : > { %v907_v63 = vpop.f32.mrf.mxu0  ;;  %v1330_v13 = vpop.f32.mrf.mxu1 }
 0x1b1   : > { %1778 = vst [vmem:[%s2781_s29 + $0x138] sm:$0xff] %v1714_v59  ;;  %v1651_v45 = vadd.f32 %v2772_v55, %v1291_v25  ;;  %v1660_v17 = vadd.f32 %v2772_v55, %v1336_v60  ;;  %v1331_v0 = vadd.f32 %v1330_v13, %v2705_v50 }
 0x1b2   : > { %v910_v4 = vpop.f32.mrf.mxu0  ;;  %v2120_v7 = vpop.f32.mrf.mxu1 }
 0x1b3   : > { %v1715_v41 = vmax.f32 %v1651_v45, 0.0  ;;  %v1724_v8 = vmax.f32 %v1660_v17, 0.0  ;;  %v1659_v53 = vadd.f32 %v2772_v55, %v1331_v0  ;;  %v1296_v11 = vadd.f32 %v2105_v21, %v910_v4 }
 0x1b4   : > { %v1346_v54 = vadd.f32 %v2120_v7, %v2717_v62  ;;  %v912_v12 = vpop.f32.mrf.mxu0  ;;  %v1340_v49 = vpop.f32.mrf.mxu1 }
 0x1b5   : > { %1779 = vst [vmem:[%s2781_s29 + $0x140] sm:$0xff] %v1715_v41  ;;  %1788 = vst [vmem:[%s2781_s29 + $0x188] sm:$0xff] %v1724_v8  ;;  %v1723_v56 = vmax.f32 %v1659_v53, 0.0  ;;  %v1652_v3 = vadd.f32 %v2772_v55, %v1296_v11  ;;  %v1341_v50 = vadd.f32 %v1340_v49, %v2713_v58 }
 0x1b6   : > { %v1662_v15 = vadd.f32 %v2772_v55, %v1346_v54  ;;  %v915_v16 = vpop.f32.mrf.mxu0  ;;  %v2123_v51 = vpop.f32.mrf.mxu1 }
 0x1b7   : > { %1787 = vst [vmem:[%s2781_s29 + $0x180] sm:$0xff] %v1723_v56  ;;  %v1716_v21 = vmax.f32 %v1652_v3, 0.0  ;;  %v1661_v62 = vadd.f32 %v2772_v55, %v1341_v50  ;;  %v1301_v23 = vadd.f32 %v1300_v29, %v915_v16  ;;  %v1356_v24 = vadd.f32 %v2123_v51, %v2725_v6 }
 0x1b8   : > { %v1726_v27 = vmax.f32 %v1662_v15, 0.0  ;;  %v917_v20 = vpop.f32.mrf.mxu0  ;;  %v1350_v57 = vpop.f32.mrf.mxu1 }
 0x1b9   : > { %1780 = vst [vmem:[%s2781_s29 + $0x148] sm:$0xff] %v1716_v21  ;;  %v1725_v28 = vmax.f32 %v1661_v62, 0.0  ;;  %v1653_v58 = vadd.f32 %v2772_v55, %v1301_v23  ;;  %v1664_v31 = vadd.f32 %v2772_v55, %v1356_v24  ;;  %v1351_v32 = vadd.f32 %v1350_v57, %v2721_v2 }
 0x1ba   : > { %1790 = vst [vmem:[%s2781_s29 + $0x198] sm:$0xff] %v1726_v27  ;;  %v920_v35 = vpop.f32.mrf.mxu0  ;;  %v2126_v36 = vpop.f32.mrf.mxu1 }
 0x1bb   : > { %1789 = vst [vmem:[%s2781_s29 + $0x190] sm:$0xff] %v1725_v28  ;;  %v1717_v29 = vmax.f32 %v1653_v58, 0.0  ;;  %v1728_v6 = vmax.f32 %v1664_v31, 0.0  ;;  %v1663_v39 = vadd.f32 %v2772_v55, %v1351_v32  ;;  %v1306_v43 = vadd.f32 %v2888_v61, %v920_v35 }
 0x1bc   : > { %v1366_v9 = vadd.f32 %v2126_v36, %v2733_v14  ;;  %v922_v44 = vpop.f32.mrf.mxu0  ;;  %v1360_v37 = vpop.f32.mrf.mxu1 }
 0x1bd   : > { %1781 = vst [vmem:[%s2781_s29 + $0x150] sm:$0xff] %v1717_v29  ;;  %1792 = vst [vmem:[%s2781_s29 + $0x1a8] sm:$0xff] %v1728_v6  ;;  %v1727_v47 = vmax.f32 %v1663_v39, 0.0  ;;  %v1654_v2 = vadd.f32 %v2772_v55, %v1306_v43  ;;  %v1361_v48 = vadd.f32 %v1360_v37, %v2729_v10 }
 0x1be   : > { %v1666_v52 = vadd.f32 %v2772_v55, %v1366_v9  ;;  %v925_v33 = vpop.f32.mrf.mxu0  ;;  %v2129_v59 = vpop.f32.mrf.mxu1 }
 0x1bf   : > { %1791 = vst [vmem:[%s2781_s29 + $0x1a0] sm:$0xff] %v1727_v47  ;;  %v1718_v61 = vmax.f32 %v1654_v2, 0.0  ;;  %v1665_v14 = vadd.f32 %v2772_v55, %v1361_v48  ;;  %v1311_v25 = vadd.f32 %v2894_v40, %v925_v33  ;;  %v1376_v60 = vadd.f32 %v2129_v59, %v2741_v22 }
 0x1c0   : > { %v1730_v63 = vmax.f32 %v1666_v52, 0.0  ;;  %v927_v13 = vpop.f32.mrf.mxu0  ;;  %v1370_v45 = vpop.f32.mrf.mxu1 }
 0x1c1   : > { %1782 = vst [vmem:[%s2781_s29 + $0x158] sm:$0xff] %v1718_v61  ;;  %v1729_v10 = vmax.f32 %v1665_v14, 0.0  ;;  %v1655_v17 = vadd.f32 %v2772_v55, %v1311_v25  ;;  %v1668_v0 = vadd.f32 %v2772_v55, %v1376_v60  ;;  %v1371_v4 = vadd.f32 %v1370_v45, %v2737_v18 }
 0x1c2   : > { %1794 = vst [vmem:[%s2781_s29 + $0x1b8] sm:$0xff] %v1730_v63  ;;  %v930_v7 = vpop.f32.mrf.mxu0  ;;  %v2132_v41 = vpop.f32.mrf.mxu1 }
 0x1c3   : > { %1793 = vst [vmem:[%s2781_s29 + $0x1b0] sm:$0xff] %v1729_v10  ;;  %v1719_v40 = vmax.f32 %v1655_v17, 0.0  ;;  %v1732_v22 = vmax.f32 %v1668_v0, 0.0  ;;  %v1667_v8 = vadd.f32 %v2772_v55, %v1371_v4  ;;  %v1316_v53 = vadd.f32 %v2892_v19, %v930_v7 }
 0x1c4   : > { %v1386_v11 = vadd.f32 %v2132_v41, %v2749_v30  ;;  %v932_v54 = vpop.f32.mrf.mxu0  ;;  %v1380_v12 = vpop.f32.mrf.mxu1 }
 0x1c5   : > { %1783 = vst [vmem:[%s2781_s29 + $0x160] sm:$0xff] %v1719_v40  ;;  %1796 = vst [vmem:[%s2781_s29 + $0x1c8] sm:$0xff] %v1732_v22  ;;  %v1731_v49 = vmax.f32 %v1667_v8, 0.0  ;;  %v1656_v18 = vadd.f32 %v2772_v55, %v1316_v53  ;;  %v1381_v56 = vadd.f32 %v1380_v12, %v2745_v26 }
 0x1c6   : > { %v1670_v3 = vadd.f32 %v2772_v55, %v1386_v11  ;;  %v935_v50 = vpop.f32.mrf.mxu0  ;;  %v2135_v15 = vpop.f32.mrf.mxu1 }
 0x1c7   : > { %1795 = vst [vmem:[%s2781_s29 + $0x1c0] sm:$0xff] %v1731_v49  ;;  %v1720_v19 = vmax.f32 %v1656_v18, 0.0  ;;  %v1669_v30 = vadd.f32 %v2772_v55, %v1381_v56  ;;  %v1321_v16 = vadd.f32 %v2900_v1, %v935_v50  ;;  %v1396_v51 = vadd.f32 %v2135_v15, %v2757_v38 }
 0x1c8   : > { %v1734_v21 = vmax.f32 %v1670_v3, 0.0  ;;  %v937_v62 = vpop.f32.mrf.mxu0  ;;  %v1390_v23 = vpop.f32.mrf.mxu1 }
 0x1c9   : > { %1784 = vst [vmem:[%s2781_s29 + $0x168] sm:$0xff] %v1720_v19  ;;  %v1733_v26 = vmax.f32 %v1669_v30, 0.0  ;;  %v1657_v24 = vadd.f32 %v2772_v55, %v1321_v16  ;;  %v1672_v27 = vadd.f32 %v2772_v55, %v1396_v51  ;;  %v1391_v20 = vadd.f32 %v1390_v23, %v2753_v34 }
 0x1ca   : > { %1798 = vst [vmem:[%s2781_s29 + $0x1d8] sm:$0xff] %v1734_v21  ;;  %v940_v57 = vpop.f32.mrf.mxu0  ;;  %v2138_v28 = vpop.f32.mrf.mxu1 }
 0x1cb   : > { %1797 = vst [vmem:[%s2781_s29 + $0x1d0] sm:$0xff] %v1733_v26  ;;  %v1721_v1 = vmax.f32 %v1657_v24, 0.0  ;;  %v1736_v38 = vmax.f32 %v1672_v27, 0.0  ;;  %v1671_v58 = vadd.f32 %v2772_v55, %v1391_v20  ;;  %v1326_v31 = vadd.f32 %v2898_v5, %v940_v57 }
 0x1cc   : > { %v1406_v32 = vadd.f32 %v2138_v28, %v2765_v46  ;;  %v1400_v35 = vpop.f32.mrf.mxu1  ;;  %v942_v36 = vpop.f32.mrf.mxu0 }
 0x1cd   : > { %1785 = vst [vmem:[%s2781_s29 + $0x170] sm:$0xff] %v1721_v1  ;;  %1800 = vst [vmem:[%s2781_s29 + $0x1e8] sm:$0xff] %v1736_v38  ;;  %v1735_v34 = vmax.f32 %v1671_v58, 0.0  ;;  %v1658_v29 = vadd.f32 %v2772_v55, %v1326_v31  ;;  %v1401_v6 = vadd.f32 %v1400_v35, %v2761_v42 }
 0x1ce   : > { %v1674_v39 = vadd.f32 %v2772_v55, %v1406_v32 }
 0x1cf   : > { %1799 = vst [vmem:[%s2781_s29 + $0x1e0] sm:$0xff] %v1735_v34  ;;  %v1722_v43 = vmax.f32 %v1658_v29, 0.0  ;;  %v1673_v9 = vadd.f32 %v2772_v55, %v1401_v6 }
 0x1d0   : > { %v1738_v5 = vmax.f32 %v1674_v39, 0.0 }
 0x1d1   : > { %1786 = vst [vmem:[%s2781_s29 + $0x178] sm:$0xff] %v1722_v43  ;;  %v1737_v44 = vmax.f32 %v1673_v9, 0.0 }
 0x1d2   : > { %1802 = vst [vmem:[%s2781_s29 + $0x1f8] sm:$0xff] %v1738_v5 }
 0x1d3   : > { %1801 = vst [vmem:[%s2781_s29 + $0x1f0] sm:$0xff] %v1737_v44 }
 0x1d4 PF: > { %s13_s14 = sadd.s32 1, %s2251_s14   ;;  %s2987_s12 = smov %s2247_s13 }
 0x1d5   : > { %p10_p5 = scmp.ge.s32.totalorder %s13_s14, 4   ;;  %s2988_s13 = smov %s2990_s15 }
 0x1d7   :  { %12 = sbr.rel (!%p10_p5) target bundleno = 2 (0x2), region = 76 }

// kernel: forward.8
= control target key start
LH: loop header
LB: loop body
LE: loop exit
PB: predicated region body
PF: predicated region fallthrough
CT: control target
= control target key end

     0   :  { %v1062_v0 = vmov 0.0   ;;  %vm1063_vm0 = vmmov 0   ;;  %s1935_s1 = inlined_call_operand.vmem [shape: f32[640,128], index: 1, kind: input, shape index: {}]   ;;  %s1936_s0 = inlined_call_operand.vmem [shape: f32[168,640], index: 0, kind: input, shape index: {}]   ;;  %s1937_s2 = inlined_call_operand.vmem [shape: f32[1,128], index: 2, kind: input, shape index: {}]   ;;  %s1938_s3 = inlined_call_operand.vmem [shape: f32[168,128], index: 3, kind: output, shape index: {}]  }
   0x1   :  { %245 = vmatprep.subr.mxu0 %v1062_v0  ;;  %415 = vmatprep.subr.mxu1 %v1062_v0  ;;  %v180_v1 = vld [vmem:[%s1935_s1 + $0x78] sm:$0xff]  ;;  %v179_v3 = vld [vmem:[%s1935_s1 + $0x70] sm:$0xff]  ;;  %v178_v5 = vld [vmem:[%s1935_s1 + $0x68] sm:$0xff] }
   0x2   :  { %v212_v2 = vld [vmem:[%s1935_s1 + $0x178] sm:$0xff]  ;;  %246 = vmatpush1.msra.mxu0 %v180_v1  ;;  %v211_v4 = vld [vmem:[%s1935_s1 + $0x170] sm:$0xff]  ;;  %v210_v6 = vld [vmem:[%s1935_s1 + $0x168] sm:$0xff] }
   0x3   :  { %416 = vmatpush1.msra.mxu1 %v212_v2  ;;  %247 = vmatprep.subr.mxu0 %v1062_v0  ;;  %v177_v7 = vld [vmem:[%s1935_s1 + $0x60] sm:$0xff]  ;;  %v176_v9 = vld [vmem:[%s1935_s1 + $0x58] sm:$0xff]  ;;  %v175_v11 = vld [vmem:[%s1935_s1 + $0x50] sm:$0xff] }
   0x4   :  { %417 = vmatprep.subr.mxu1 %v1062_v0  ;;  %248 = vmatpush1.msra.mxu0 %v179_v3  ;;  %v209_v8 = vld [vmem:[%s1935_s1 + $0x160] sm:$0xff]  ;;  %v208_v10 = vld [vmem:[%s1935_s1 + $0x158] sm:$0xff]  ;;  %v207_v12 = vld [vmem:[%s1935_s1 + $0x150] sm:$0xff] }
   0x5   :  { %418 = vmatpush1.msra.mxu1 %v211_v4  ;;  %249 = vmatprep.subr.mxu0 %v1062_v0  ;;  %v174_v13 = vld [vmem:[%s1935_s1 + $0x48] sm:$0xff]  ;;  %v173_v15 = vld [vmem:[%s1935_s1 + $0x40] sm:$0xff]  ;;  %v172_v17 = vld [vmem:[%s1935_s1 + $0x38] sm:$0xff] }
   0x6   :  { %419 = vmatprep.subr.mxu1 %v1062_v0  ;;  %250 = vmatpush1.msra.mxu0 %v178_v5  ;;  %v206_v14 = vld [vmem:[%s1935_s1 + $0x148] sm:$0xff]  ;;  %v205_v16 = vld [vmem:[%s1935_s1 + $0x140] sm:$0xff]  ;;  %v204_v18 = vld [vmem:[%s1935_s1 + $0x138] sm:$0xff] }
   0x7   :  { %420 = vmatpush1.msra.mxu1 %v210_v6  ;;  %251 = vmatprep.subr.mxu0 %v1062_v0  ;;  %v171_v19 = vld [vmem:[%s1935_s1 + $0x30] sm:$0xff]  ;;  %v170_v21 = vld [vmem:[%s1935_s1 + $0x28] sm:$0xff]  ;;  %v169_v23 = vld [vmem:[%s1935_s1 + $0x20] sm:$0xff] }
   0x8   :  { %421 = vmatprep.subr.mxu1 %v1062_v0  ;;  %252 = vmatpush1.msra.mxu0 %v177_v7  ;;  %v203_v20 = vld [vmem:[%s1935_s1 + $0x130] sm:$0xff]  ;;  %v202_v22 = vld [vmem:[%s1935_s1 + $0x128] sm:$0xff]  ;;  %v201_v24 = vld [vmem:[%s1935_s1 + $0x120] sm:$0xff] }
   0x9   :  { %422 = vmatpush1.msra.mxu1 %v209_v8  ;;  %253 = vmatprep.subr.mxu0 %v1062_v0  ;;  %v168_v25 = vld [vmem:[%s1935_s1 + $0x18] sm:$0xff]  ;;  %v167_v27 = vld [vmem:[%s1935_s1 + $0x10] sm:$0xff]  ;;  %v166_v29 = vld [vmem:[%s1935_s1 + $0x8] sm:$0xff] }
   0xa   :  { %423 = vmatprep.subr.mxu1 %v1062_v0  ;;  %254 = vmatpush1.msra.mxu0 %v176_v9  ;;  %v200_v26 = vld [vmem:[%s1935_s1 + $0x118] sm:$0xff]  ;;  %v199_v28 = vld [vmem:[%s1935_s1 + $0x110] sm:$0xff]  ;;  %v198_v30 = vld [vmem:[%s1935_s1 + $0x108] sm:$0xff] }
   0xb   :  { %424 = vmatpush1.msra.mxu1 %v208_v10  ;;  %255 = vmatprep.subr.mxu0 %v1062_v0  ;;  %v165_v31 = vld [vmem:[%s1935_s1] sm:$0xff]  ;;  %v196_v33 = vld [vmem:[%s1935_s1 + $0xf8] sm:$0xff]  ;;  %v195_v35 = vld [vmem:[%s1935_s1 + $0xf0] sm:$0xff] }
   0xc   :  { %425 = vmatprep.subr.mxu1 %v1062_v0  ;;  %256 = vmatpush1.msra.mxu0 %v175_v11  ;;  %v197_v32 = vld [vmem:[%s1935_s1 + $0x100] sm:$0xff]  ;;  %v228_v34 = vld [vmem:[%s1935_s1 + $0x1f8] sm:$0xff]  ;;  %v227_v36 = vld [vmem:[%s1935_s1 + $0x1f0] sm:$0xff] }
   0xd   :  { %426 = vmatpush1.msra.mxu1 %v207_v12  ;;  %257 = vmatprep.subr.mxu0 %v1062_v0  ;;  %v194_v37 = vld [vmem:[%s1935_s1 + $0xe8] sm:$0xff]  ;;  %v193_v39 = vld [vmem:[%s1935_s1 + $0xe0] sm:$0xff]  ;;  %v192_v41 = vld [vmem:[%s1935_s1 + $0xd8] sm:$0xff] }
   0xe   :  { %427 = vmatprep.subr.mxu1 %v1062_v0  ;;  %258 = vmatpush1.msra.mxu0 %v174_v13  ;;  %v226_v38 = vld [vmem:[%s1935_s1 + $0x1e8] sm:$0xff]  ;;  %v225_v40 = vld [vmem:[%s1935_s1 + $0x1e0] sm:$0xff]  ;;  %v224_v42 = vld [vmem:[%s1935_s1 + $0x1d8] sm:$0xff] }
   0xf   :  { %428 = vmatpush1.msra.mxu1 %v206_v14  ;;  %259 = vmatprep.subr.mxu0 %v1062_v0  ;;  %v191_v43 = vld [vmem:[%s1935_s1 + $0xd0] sm:$0xff]  ;;  %v190_v45 = vld [vmem:[%s1935_s1 + $0xc8] sm:$0xff]  ;;  %v189_v47 = vld [vmem:[%s1935_s1 + $0xc0] sm:$0xff] }
  0x10   :  { %429 = vmatprep.subr.mxu1 %v1062_v0  ;;  %260 = vmatpush1.msra.mxu0 %v173_v15  ;;  %v223_v44 = vld [vmem:[%s1935_s1 + $0x1d0] sm:$0xff]  ;;  %v222_v46 = vld [vmem:[%s1935_s1 + $0x1c8] sm:$0xff]  ;;  %v221_v48 = vld [vmem:[%s1935_s1 + $0x1c0] sm:$0xff] }
  0x11   :  { %430 = vmatpush1.msra.mxu1 %v205_v16  ;;  %261 = vmatprep.subr.mxu0 %v1062_v0  ;;  %v188_v49 = vld [vmem:[%s1935_s1 + $0xb8] sm:$0xff]  ;;  %v187_v51 = vld [vmem:[%s1935_s1 + $0xb0] sm:$0xff]  ;;  %v186_v53 = vld [vmem:[%s1935_s1 + $0xa8] sm:$0xff] }
  0x12   :  { %431 = vmatprep.subr.mxu1 %v1062_v0  ;;  %262 = vmatpush1.msra.mxu0 %v172_v17  ;;  %v220_v50 = vld [vmem:[%s1935_s1 + $0x1b8] sm:$0xff]  ;;  %v219_v52 = vld [vmem:[%s1935_s1 + $0x1b0] sm:$0xff]  ;;  %v218_v54 = vld [vmem:[%s1935_s1 + $0x1a8] sm:$0xff] }
  0x13   :  { %432 = vmatpush1.msra.mxu1 %v204_v18  ;;  %263 = vmatprep.subr.mxu0 %v1062_v0  ;;  %v185_v55 = vld [vmem:[%s1935_s1 + $0xa0] sm:$0xff]  ;;  %v184_v57 = vld [vmem:[%s1935_s1 + $0x98] sm:$0xff]  ;;  %v183_v59 = vld [vmem:[%s1935_s1 + $0x90] sm:$0xff] }
  0x14   :  { %433 = vmatprep.subr.mxu1 %v1062_v0  ;;  %264 = vmatpush1.msra.mxu0 %v171_v19  ;;  %v217_v56 = vld [vmem:[%s1935_s1 + $0x1a0] sm:$0xff]  ;;  %v216_v58 = vld [vmem:[%s1935_s1 + $0x198] sm:$0xff]  ;;  %v215_v60 = vld [vmem:[%s1935_s1 + $0x190] sm:$0xff] }
  0x15   :  { %434 = vmatpush1.msra.mxu1 %v203_v20  ;;  %265 = vmatprep.subr.mxu0 %v1062_v0  ;;  %v182_v61 = vld [vmem:[%s1935_s1 + $0x88] sm:$0xff]  ;;  %v181_v63 = vld [vmem:[%s1935_s1 + $0x80] sm:$0xff]  ;;  %v63_v3 = vld [vmem:[%s1936_s0 + $0x18] sm:$0xff] }
  0x16   :  { %435 = vmatprep.subr.mxu1 %v1062_v0  ;;  %266 = vmatpush1.msra.mxu0 %v170_v21  ;;  %v214_v62 = vld [vmem:[%s1935_s1 + $0x188] sm:$0xff]  ;;  %v213_v2 = vld [vmem:[%s1935_s1 + $0x180] sm:$0xff]  ;;  %v62_v5 = vld [vmem:[%s1936_s0 + $0x10] sm:$0xff] }
  0x17   :  { %436 = vmatpush1.msra.mxu1 %v202_v22  ;;  %267 = vmatprep.subr.mxu0 %v1062_v0  ;;  %v61_v1 = vld [vmem:[%s1936_s0 + $0x8] sm:$0xff]  ;;  %v60_v4 = vld [vmem:[%s1936_s0] sm:$0xff]  ;;  %v66_v6 = vld [vmem:[%s1936_s0 + $0x30] sm:$0xff] }
  0x18   :  { %437 = vmatprep.subr.mxu1 %v1062_v0  ;;  %268 = vmatpush1.msra.mxu0 %v169_v23  ;;  %v244_v7 = vld [vmem:[%s1935_s1 + $0x278] sm:$0xff]  ;;  %v68_v8 = vld [vmem:[%s1936_s0 + $0x40] sm:$0xff]  ;;  %v65_v9 = vld [vmem:[%s1936_s0 + $0x28] sm:$0xff] }
  0x19   :  { %438 = vmatpush1.msra.mxu1 %v201_v24  ;;  %269 = vmatprep.subr.mxu0 %v1062_v0  ;;  %v67_v10 = vld [vmem:[%s1936_s0 + $0x38] sm:$0xff]  ;;  %v73_v12 = vld [vmem:[%s1936_s0 + $0x68] sm:$0xff]  ;;  %v243_v13 = vld [vmem:[%s1935_s1 + $0x270] sm:$0xff] }
  0x1a   :  { %439 = vmatprep.subr.mxu1 %v1062_v0  ;;  %270 = vmatpush1.msra.mxu0 %v168_v25  ;;  %v71_v11 = vld [vmem:[%s1936_s0 + $0x58] sm:$0xff]  ;;  %v70_v14 = vld [vmem:[%s1936_s0 + $0x50] sm:$0xff]  ;;  %v72_v15 = vld [vmem:[%s1936_s0 + $0x60] sm:$0xff] }
  0x1b   :  { %440 = vmatpush1.msra.mxu1 %v200_v26  ;;  %271 = vmatprep.subr.mxu0 %v1062_v0  ;;  %v76_v16 = vld [vmem:[%s1936_s0 + $0x80] sm:$0xff]  ;;  %v78_v17 = vld [vmem:[%s1936_s0 + $0x90] sm:$0xff]  ;;  %v242_v18 = vld [vmem:[%s1935_s1 + $0x268] sm:$0xff] }
  0x1c   :  { %441 = vmatprep.subr.mxu1 %v1062_v0  ;;  %272 = vmatpush1.msra.mxu0 %v167_v27  ;;  %v75_v19 = vld [vmem:[%s1936_s0 + $0x78] sm:$0xff]  ;;  %v77_v20 = vld [vmem:[%s1936_s0 + $0x88] sm:$0xff]  ;;  %v241_v23 = vld [vmem:[%s1935_s1 + $0x260] sm:$0xff] }
  0x1d   :  { %442 = vmatpush1.msra.mxu1 %v199_v28  ;;  %273 = vmatprep.subr.mxu0 %v1062_v0  ;;  %v81_v21 = vld [vmem:[%s1936_s0 + $0xa8] sm:$0xff]  ;;  %v83_v22 = vld [vmem:[%s1936_s0 + $0xb8] sm:$0xff]  ;;  %v80_v24 = vld [vmem:[%s1936_s0 + $0xa0] sm:$0xff] }
  0x1e   :  { %443 = vmatprep.subr.mxu1 %v1062_v0  ;;  %274 = vmatpush1.msra.mxu0 %v166_v29  ;;  %v82_v25 = vld [vmem:[%s1936_s0 + $0xb0] sm:$0xff]  ;;  %v88_v27 = vld [vmem:[%s1936_s0 + $0xe0] sm:$0xff]  ;;  %v240_v28 = vld [vmem:[%s1935_s1 + $0x258] sm:$0xff] }
  0x1f   :  { %444 = vmatpush1.msra.mxu1 %v198_v30  ;;  %275 = vmatprep.subr.mxu0 %v1062_v0  ;;  %v86_v26 = vld [vmem:[%s1936_s0 + $0xd0] sm:$0xff]  ;;  %v85_v29 = vld [vmem:[%s1936_s0 + $0xc8] sm:$0xff]  ;;  %v87_v30 = vld [vmem:[%s1936_s0 + $0xd8] sm:$0xff] }
  0x20   :  { %445 = vmatprep.subr.mxu1 %v1062_v0  ;;  %276 = vmatpush1.msra.mxu0 %v165_v31  ;;  %v91_v31 = vld [vmem:[%s1936_s0 + $0xf8] sm:$0xff] }
  0x21   :  { %446 = vmatpush1.msra.mxu1 %v197_v32  ;;  %277 = vmatprep.subr.mxu0 %v1062_v0  ;;  %v93_v32 = vld [vmem:[%s1936_s0 + $0x108] sm:$0xff] }
  0x22   :  { %447 = vmatprep.subr.mxu1 %v1062_v0  ;;  %278 = vmatpush2.msra.mxu0 %v196_v33  ;;  %v239_v33 = vld [vmem:[%s1935_s1 + $0x250] sm:$0xff] }
  0x23   :  { %448 = vmatpush2.msra.mxu1 %v228_v34  ;;  %279 = vmatprep.subr.mxu0 %v1062_v0  ;;  %v90_v34 = vld [vmem:[%s1936_s0 + $0xf0] sm:$0xff] }
  0x24   :  { %449 = vmatprep.subr.mxu1 %v1062_v0  ;;  %280 = vmatpush2.msra.mxu0 %v195_v35  ;;  %v92_v35 = vld [vmem:[%s1936_s0 + $0x100] sm:$0xff] }
  0x25   :  { %450 = vmatpush2.msra.mxu1 %v227_v36  ;;  %281 = vmatprep.subr.mxu0 %v1062_v0  ;;  %v96_v36 = vld [vmem:[%s1936_s0 + $0x120] sm:$0xff] }
  0x26   :  { %451 = vmatprep.subr.mxu1 %v1062_v0  ;;  %282 = vmatpush2.msra.mxu0 %v194_v37  ;;  %v98_v37 = vld [vmem:[%s1936_s0 + $0x130] sm:$0xff] }
  0x27   :  { %452 = vmatpush2.msra.mxu1 %v226_v38  ;;  %283 = vmatprep.subr.mxu0 %v1062_v0  ;;  %v238_v38 = vld [vmem:[%s1935_s1 + $0x248] sm:$0xff] }
  0x28   :  { %453 = vmatprep.subr.mxu1 %v1062_v0  ;;  %284 = vmatpush2.msra.mxu0 %v193_v39  ;;  %v95_v39 = vld [vmem:[%s1936_s0 + $0x118] sm:$0xff] }
  0x29   :  { %454 = vmatpush2.msra.mxu1 %v225_v40  ;;  %285 = vmatprep.subr.mxu0 %v1062_v0  ;;  %v97_v40 = vld [vmem:[%s1936_s0 + $0x128] sm:$0xff] }
  0x2a   :  { %455 = vmatprep.subr.mxu1 %v1062_v0  ;;  %286 = vmatpush2.msra.mxu0 %v192_v41  ;;  %v101_v41 = vld [vmem:[%s1936_s0 + $0x148] sm:$0xff] }
  0x2b   :  { %456 = vmatpush2.msra.mxu1 %v224_v42  ;;  %287 = vmatprep.subr.mxu0 %v1062_v0  ;;  %v103_v42 = vld [vmem:[%s1936_s0 + $0x158] sm:$0xff] }
  0x2c   :  { %457 = vmatprep.subr.mxu1 %v1062_v0  ;;  %288 = vmatpush2.msra.mxu0 %v191_v43  ;;  %v237_v43 = vld [vmem:[%s1935_s1 + $0x240] sm:$0xff] }
  0x2d   :  { %458 = vmatpush2.msra.mxu1 %v223_v44  ;;  %289 = vmatprep.subr.mxu0 %v1062_v0  ;;  %v100_v44 = vld [vmem:[%s1936_s0 + $0x140] sm:$0xff] }
  0x2e   :  { %459 = vmatprep.subr.mxu1 %v1062_v0  ;;  %290 = vmatpush2.msra.mxu0 %v190_v45  ;;  %v102_v45 = vld [vmem:[%s1936_s0 + $0x150] sm:$0xff] }
  0x2f   :  { %460 = vmatpush2.msra.mxu1 %v222_v46  ;;  %291 = vmatprep.subr.mxu0 %v1062_v0  ;;  %v106_v46 = vld [vmem:[%s1936_s0 + $0x170] sm:$0xff] }
  0x30   :  { %461 = vmatprep.subr.mxu1 %v1062_v0  ;;  %292 = vmatpush2.msra.mxu0 %v189_v47  ;;  %v108_v47 = vld [vmem:[%s1936_s0 + $0x180] sm:$0xff] }
  0x31   :  { %462 = vmatpush2.msra.mxu1 %v221_v48  ;;  %293 = vmatprep.subr.mxu0 %v1062_v0  ;;  %v236_v48 = vld [vmem:[%s1935_s1 + $0x238] sm:$0xff] }
  0x32   :  { %463 = vmatprep.subr.mxu1 %v1062_v0  ;;  %294 = vmatpush2.msra.mxu0 %v188_v49  ;;  %v105_v49 = vld [vmem:[%s1936_s0 + $0x168] sm:$0xff] }
  0x33   :  { %464 = vmatpush2.msra.mxu1 %v220_v50  ;;  %295 = vmatprep.subr.mxu0 %v1062_v0  ;;  %v107_v50 = vld [vmem:[%s1936_s0 + $0x178] sm:$0xff] }
  0x34   :  { %465 = vmatprep.subr.mxu1 %v1062_v0  ;;  %296 = vmatpush2.msra.mxu0 %v187_v51  ;;  %v111_v51 = vld [vmem:[%s1936_s0 + $0x198] sm:$0xff] }
  0x35   :  { %466 = vmatpush2.msra.mxu1 %v219_v52  ;;  %297 = vmatprep.subr.mxu0 %v1062_v0  ;;  %v113_v52 = vld [vmem:[%s1936_s0 + $0x1a8] sm:$0xff] }
  0x36   :  { %467 = vmatprep.subr.mxu1 %v1062_v0  ;;  %298 = vmatpush2.msra.mxu0 %v186_v53  ;;  %v235_v53 = vld [vmem:[%s1935_s1 + $0x230] sm:$0xff] }
  0x37   :  { %468 = vmatpush2.msra.mxu1 %v218_v54  ;;  %299 = vmatprep.subr.mxu0 %v1062_v0  ;;  %v110_v54 = vld [vmem:[%s1936_s0 + $0x190] sm:$0xff] }
  0x38   :  { %469 = vmatprep.subr.mxu1 %v1062_v0  ;;  %300 = vmatpush2.msra.mxu0 %v185_v55  ;;  %v112_v55 = vld [vmem:[%s1936_s0 + $0x1a0] sm:$0xff] }
  0x39   :  { %470 = vmatpush2.msra.mxu1 %v217_v56  ;;  %301 = vmatprep.subr.mxu0 %v1062_v0  ;;  %v116_v56 = vld [vmem:[%s1936_s0 + $0x1c0] sm:$0xff] }
  0x3a   :  { %471 = vmatprep.subr.mxu1 %v1062_v0  ;;  %302 = vmatpush2.msra.mxu0 %v184_v57  ;;  %v118_v57 = vld [vmem:[%s1936_s0 + $0x1d0] sm:$0xff] }
  0x3b   :  { %472 = vmatpush2.msra.mxu1 %v216_v58  ;;  %303 = vmatprep.subr.mxu0 %v1062_v0  ;;  %v234_v58 = vld [vmem:[%s1935_s1 + $0x228] sm:$0xff] }
  0x3c   :  { %473 = vmatprep.subr.mxu1 %v1062_v0  ;;  %304 = vmatpush2.msra.mxu0 %v183_v59  ;;  %v115_v59 = vld [vmem:[%s1936_s0 + $0x1b8] sm:$0xff] }
  0x3d   :  { %474 = vmatpush2.msra.mxu1 %v215_v60  ;;  %305 = vmatprep.subr.mxu0 %v1062_v0  ;;  %v117_v60 = vld [vmem:[%s1936_s0 + $0x1c8] sm:$0xff] }
  0x3e   :  { %475 = vmatprep.subr.mxu1 %v1062_v0  ;;  %306 = vmatpush2.msra.mxu0 %v182_v61  ;;  %v121_v61 = vld [vmem:[%s1936_s0 + $0x1e8] sm:$0xff] }
  0x3f   :  { %476 = vmatpush2.msra.mxu1 %v214_v62  ;;  %307 = vmatprep.subr.mxu0 %v1062_v0  ;;  %v123_v62 = vld [vmem:[%s1936_s0 + $0x1f8] sm:$0xff] }
  0x40   :  { %477 = vmatprep.subr.mxu1 %v1062_v0  ;;  %308 = vmatpush2.msra.mxu0 %v181_v63  ;;  %v233_v63 = vld [vmem:[%s1935_s1 + $0x220] sm:$0xff] }
  0x41   :  { %309 = vmatprep.mubr.f32.mxu0 %v61_v1  ;;  %478 = vmatpush2.msra.mxu1 %v213_v2  ;;  %v120_v1 = vld [vmem:[%s1936_s0 + $0x1e0] sm:$0xff]  ;;  %v122_v2 = vld [vmem:[%s1936_s0 + $0x1f0] sm:$0xff] }
  0x42   :  { %479 = vmatprep.mubr.f32.mxu1 %v63_v3  ;;  %310 = vmatmul.mubr.f32.vlgmr.msra.gmra.mxu0 %v60_v4  ;;  %v126_v3 = vld [vmem:[%s1936_s0 + $0x210] sm:$0xff]  ;;  %v128_v4 = vld [vmem:[%s1936_s0 + $0x220] sm:$0xff] }
  0x43   :  { %480 = vmatmul.mubr.f32.vlgmr.msra.gmra.mxu1 %v62_v5  ;;  %933 = vmatprep.subr.mxu0 %v1062_v0  ;;  %v232_v5 = vld [vmem:[%s1935_s1 + $0x218] sm:$0xff] }
  0x44   :  { %314 = vmatprep.mubr.f32.mxu0 %v66_v6  ;;  %934 = vmatpush3.msra.mxu0 %v244_v7  ;;  %v125_v6 = vld [vmem:[%s1936_s0 + $0x208] sm:$0xff] }
  0x45   :  { %484 = vmatprep.mubr.f32.mxu1 %v68_v8  ;;  %1028 = vmatprep.subr.mxu1 %v1062_v0  ;;  %v131_v8 = vld [vmem:[%s1936_s0 + $0x238] sm:$0xff] }
  0x46   :  { %935 = vmatprep.subr.mxu0 %v1062_v0  ;;  %315 = vmatmul.mubr.f32.gmra.mxu0 %v65_v9  ;;  %v133_v9 = vld [vmem:[%s1936_s0 + $0x248] sm:$0xff] }
  0x47   :  { %485 = vmatmul.mubr.f32.gmra.mxu1 %v67_v10  ;;  %319 = vmatprep.mubr.f32.mxu0 %v71_v11  ;;  %v231_v10 = vld [vmem:[%s1935_s1 + $0x210] sm:$0xff] }
  0x48   :  { %1044 = vmatpush3.msra.mxu1 %v244_v7  ;;  %489 = vmatprep.mubr.f32.mxu1 %v73_v12  ;;  %v127_v7 = vld [vmem:[%s1936_s0 + $0x218] sm:$0xff]  ;;  %v130_v11 = vld [vmem:[%s1936_s0 + $0x230] sm:$0xff]  ;;  %v132_v12 = vld [vmem:[%s1936_s0 + $0x240] sm:$0xff] }
  0x49   :  { %936 = vmatpush3.msra.mxu0 %v243_v13  ;;  %1029 = vmatprep.subr.mxu1 %v1062_v0 }
  0x4a   :  { %937 = vmatprep.subr.mxu0 %v1062_v0  ;;  %320 = vmatmul.mubr.f32.gmra.mxu0 %v70_v14  ;;  %v138_v14 = vld [vmem:[%s1936_s0 + $0x270] sm:$0xff] }
  0x4b   :  { %490 = vmatmul.mubr.f32.gmra.mxu1 %v72_v15  ;;  %324 = vmatprep.mubr.f32.mxu0 %v76_v16  ;;  %v230_v15 = vld [vmem:[%s1935_s1 + $0x208] sm:$0xff]  ;;  %v135_v16 = vld [vmem:[%s1936_s0 + $0x258] sm:$0xff] }
  0x4c   :  { %494 = vmatprep.mubr.f32.mxu1 %v78_v17  ;;  %1045 = vmatpush3.msra.mxu1 %v243_v13  ;;  %v136_v13 = vld [vmem:[%s1936_s0 + $0x260] sm:$0xff]  ;;  %v137_v17 = vld [vmem:[%s1936_s0 + $0x268] sm:$0xff] }
  0x4d   :  { %938 = vmatpush3.msra.mxu0 %v242_v18  ;;  %1030 = vmatprep.subr.mxu1 %v1062_v0 }
  0x4e   :  { %939 = vmatprep.subr.mxu0 %v1062_v0  ;;  %325 = vmatmul.mubr.f32.gmra.mxu0 %v75_v19  ;;  %v143_v19 = vld [vmem:[%s1936_s0 + $0x298] sm:$0xff] }
  0x4f   :  { %495 = vmatmul.mubr.f32.gmra.mxu1 %v77_v20  ;;  %329 = vmatprep.mubr.f32.mxu0 %v81_v21  ;;  %v229_v20 = vld [vmem:[%s1935_s1 + $0x200] sm:$0xff] }
  0x50   :  { %499 = vmatprep.mubr.f32.mxu1 %v83_v22  ;;  %1046 = vmatpush3.msra.mxu1 %v242_v18  ;;  %v141_v18 = vld [vmem:[%s1936_s0 + $0x288] sm:$0xff]  ;;  %v140_v21 = vld [vmem:[%s1936_s0 + $0x280] sm:$0xff]  ;;  %v142_v22 = vld [vmem:[%s1936_s0 + $0x290] sm:$0xff] }
  0x51   :  { %940 = vmatpush3.msra.mxu0 %v241_v23  ;;  %1031 = vmatprep.subr.mxu1 %v1062_v0 }
  0x52   :  { %941 = vmatprep.subr.mxu0 %v1062_v0  ;;  %330 = vmatmul.mubr.f32.gmra.mxu0 %v80_v24  ;;  %v148_v24 = vld [vmem:[%s1936_s0 + $0x2c0] sm:$0xff] }
  0x53   :  { %500 = vmatmul.mubr.f32.gmra.mxu1 %v82_v25  ;;  %334 = vmatprep.mubr.f32.mxu0 %v86_v26  ;;  %v145_v25 = vld [vmem:[%s1936_s0 + $0x2a8] sm:$0xff]  ;;  %v147_v26 = vld [vmem:[%s1936_s0 + $0x2b8] sm:$0xff] }
  0x54   :  { %504 = vmatprep.mubr.f32.mxu1 %v88_v27  ;;  %1047 = vmatpush3.msra.mxu1 %v241_v23  ;;  %v146_v23 = vld [vmem:[%s1936_s0 + $0x2b0] sm:$0xff]  ;;  %v151_v27 = vld [vmem:[%s1936_s0 + $0x2d8] sm:$0xff] }
  0x55   :  { %942 = vmatpush3.msra.mxu0 %v240_v28  ;;  %1032 = vmatprep.subr.mxu1 %v1062_v0 }
  0x56   :  { %943 = vmatprep.subr.mxu0 %v1062_v0  ;;  %335 = vmatmul.mubr.f32.gmra.mxu0 %v85_v29  ;;  %v150_v29 = vld [vmem:[%s1936_s0 + $0x2d0] sm:$0xff] }
  0x57   :  { %505 = vmatmul.mubr.f32.gmra.mxu1 %v87_v30  ;;  %339 = vmatprep.mubr.f32.mxu0 %v91_v31  ;;  %v152_v30 = vld [vmem:[%s1936_s0 + $0x2e0] sm:$0xff] }
  0x58   :  { %509 = vmatprep.mubr.f32.mxu1 %v93_v32  ;;  %1048 = vmatpush3.msra.mxu1 %v240_v28  ;;  %v153_v28 = vld [vmem:[%s1936_s0 + $0x2e8] sm:$0xff]  ;;  %v156_v31 = vld [vmem:[%s1936_s0 + $0x300] sm:$0xff]  ;;  %v158_v32 = vld [vmem:[%s1936_s0 + $0x310] sm:$0xff] }
  0x59   :  { %944 = vmatpush3.msra.mxu0 %v239_v33  ;;  %1033 = vmatprep.subr.mxu1 %v1062_v0 }
  0x5a   :  { %945 = vmatprep.subr.mxu0 %v1062_v0  ;;  %340 = vmatmul.mubr.f32.gmra.mxu0 %v90_v34  ;;  %v157_v34 = vld [vmem:[%s1936_s0 + $0x308] sm:$0xff] }
  0x5b   :  { %510 = vmatmul.mubr.f32.gmra.mxu1 %v92_v35  ;;  %344 = vmatprep.mubr.f32.mxu0 %v96_v36  ;;  %v161_v35 = vld [vmem:[%s1936_s0 + $0x328] sm:$0xff]  ;;  %v163_v36 = vld [vmem:[%s1936_s0 + $0x338] sm:$0xff] }
  0x5c   :  { %514 = vmatprep.mubr.f32.mxu1 %v98_v37  ;;  %1049 = vmatpush3.msra.mxu1 %v239_v33  ;;  %v155_v33 = vld [vmem:[%s1936_s0 + $0x2f8] sm:$0xff]  ;;  %v160_v37 = vld [vmem:[%s1936_s0 + $0x320] sm:$0xff] }
  0x5d   :  { %946 = vmatpush3.msra.mxu0 %v238_v38  ;;  %1034 = vmatprep.subr.mxu1 %v1062_v0 }
  0x5e   :  { %947 = vmatprep.subr.mxu0 %v1062_v0  ;;  %345 = vmatmul.mubr.f32.gmra.mxu0 %v95_v39  ;;  %v64_v39 = vld [vmem:[%s1936_s0 + $0x20] sm:$0xff] }
  0x5f   :  { %515 = vmatmul.mubr.f32.gmra.mxu1 %v97_v40  ;;  %349 = vmatprep.mubr.f32.mxu0 %v101_v41  ;;  %v119_v40 = vld [vmem:[%s1936_s0 + $0x1d8] sm:$0xff]  ;;  %v69_v41 = vld [vmem:[%s1936_s0 + $0x48] sm:$0xff] }
  0x60   :  { %519 = vmatprep.mubr.f32.mxu1 %v103_v42  ;;  %1050 = vmatpush3.msra.mxu1 %v238_v38  ;;  %v162_v38 = vld [vmem:[%s1936_s0 + $0x330] sm:$0xff]  ;;  %v124_v42 = vld [vmem:[%s1936_s0 + $0x200] sm:$0xff] }
  0x61   :  { %948 = vmatpush3.msra.mxu0 %v237_v43  ;;  %1035 = vmatprep.subr.mxu1 %v1062_v0 }
  0x62   :  { %949 = vmatprep.subr.mxu0 %v1062_v0  ;;  %350 = vmatmul.mubr.f32.gmra.mxu0 %v100_v44  ;;  %v129_v44 = vld [vmem:[%s1936_s0 + $0x228] sm:$0xff] }
  0x63   :  { %520 = vmatmul.mubr.f32.gmra.mxu1 %v102_v45  ;;  %354 = vmatprep.mubr.f32.mxu0 %v106_v46  ;;  %v79_v45 = vld [vmem:[%s1936_s0 + $0x98] sm:$0xff]  ;;  %v134_v46 = vld [vmem:[%s1936_s0 + $0x250] sm:$0xff] }
  0x64   :  { %524 = vmatprep.mubr.f32.mxu1 %v108_v47  ;;  %1051 = vmatpush3.msra.mxu1 %v237_v43  ;;  %v74_v43 = vld [vmem:[%s1936_s0 + $0x70] sm:$0xff]  ;;  %v84_v47 = vld [vmem:[%s1936_s0 + $0xc0] sm:$0xff] }
  0x65   :  { %950 = vmatpush3.msra.mxu0 %v236_v48  ;;  %1036 = vmatprep.subr.mxu1 %v1062_v0 }
  0x66   :  { %951 = vmatprep.subr.mxu0 %v1062_v0  ;;  %355 = vmatmul.mubr.f32.gmra.mxu0 %v105_v49  ;;  %v89_v49 = vld [vmem:[%s1936_s0 + $0xe8] sm:$0xff] }
  0x67   :  { %525 = vmatmul.mubr.f32.gmra.mxu1 %v107_v50  ;;  %359 = vmatprep.mubr.f32.mxu0 %v111_v51  ;;  %v144_v50 = vld [vmem:[%s1936_s0 + $0x2a0] sm:$0xff]  ;;  %v94_v51 = vld [vmem:[%s1936_s0 + $0x110] sm:$0xff] }
  0x68   :  { %529 = vmatprep.mubr.f32.mxu1 %v113_v52  ;;  %1052 = vmatpush3.msra.mxu1 %v236_v48  ;;  %v139_v48 = vld [vmem:[%s1936_s0 + $0x278] sm:$0xff]  ;;  %v149_v52 = vld [vmem:[%s1936_s0 + $0x2c8] sm:$0xff] }
  0x69   :  { %952 = vmatpush3.msra.mxu0 %v235_v53  ;;  %1037 = vmatprep.subr.mxu1 %v1062_v0 }
  0x6a   :  { %953 = vmatprep.subr.mxu0 %v1062_v0  ;;  %360 = vmatmul.mubr.f32.gmra.mxu0 %v110_v54  ;;  %v154_v54 = vld [vmem:[%s1936_s0 + $0x2f0] sm:$0xff] }
  0x6b   :  { %530 = vmatmul.mubr.f32.gmra.mxu1 %v112_v55  ;;  %364 = vmatprep.mubr.f32.mxu0 %v116_v56  ;;  %v104_v55 = vld [vmem:[%s1936_s0 + $0x160] sm:$0xff]  ;;  %v159_v56 = vld [vmem:[%s1936_s0 + $0x318] sm:$0xff] }
  0x6c   :  { %534 = vmatprep.mubr.f32.mxu1 %v118_v57  ;;  %1053 = vmatpush3.msra.mxu1 %v235_v53  ;;  %v99_v53 = vld [vmem:[%s1936_s0 + $0x138] sm:$0xff]  ;;  %v109_v57 = vld [vmem:[%s1936_s0 + $0x188] sm:$0xff] }
  0x6d   :  { %954 = vmatpush3.msra.mxu0 %v234_v58  ;;  %1038 = vmatprep.subr.mxu1 %v1062_v0 }
  0x6e   :  { %955 = vmatprep.subr.mxu0 %v1062_v0  ;;  %365 = vmatmul.mubr.f32.gmra.mxu0 %v115_v59  ;;  %v114_v59 = vld [vmem:[%s1936_s0 + $0x1b0] sm:$0xff] }
  0x6f   :  { %535 = vmatmul.mubr.f32.gmra.mxu1 %v117_v60  ;;  %369 = vmatprep.mubr.f32.mxu0 %v121_v61 }
  0x70   :  { %539 = vmatprep.mubr.f32.mxu1 %v123_v62  ;;  %1054 = vmatpush3.msra.mxu1 %v234_v58  ;;  %v164_v58 = vld [vmem:[%s1936_s0 + $0x340] sm:$0xff] }
  0x71   :  { %956 = vmatpush3.msra.mxu0 %v233_v63  ;;  %1039 = vmatprep.subr.mxu1 %v1062_v0 }
  0x72   :  { %957 = vmatprep.subr.mxu0 %v1062_v0  ;;  %370 = vmatmul.mubr.f32.gmra.mxu0 %v120_v1 }
  0x73   :  { %540 = vmatmul.mubr.f32.gmra.mxu1 %v122_v2  ;;  %374 = vmatprep.mubr.f32.mxu0 %v126_v3 }
  0x74   :  { %544 = vmatprep.mubr.f32.mxu1 %v128_v4  ;;  %1055 = vmatpush3.msra.mxu1 %v233_v63 }
  0x75   :  { %958 = vmatpush3.msra.mxu0 %v232_v5  ;;  %1040 = vmatprep.subr.mxu1 %v1062_v0 }
  0x76   :  { %959 = vmatprep.subr.mxu0 %v1062_v0  ;;  %375 = vmatmul.mubr.f32.gmra.mxu0 %v125_v6 }
  0x77   :  { %545 = vmatmul.mubr.f32.gmra.mxu1 %v127_v7  ;;  %379 = vmatprep.mubr.f32.mxu0 %v131_v8 }
  0x78   :  { %549 = vmatprep.mubr.f32.mxu1 %v133_v9  ;;  %1056 = vmatpush3.msra.mxu1 %v232_v5 }
  0x79   :  { %960 = vmatpush3.msra.mxu0 %v231_v10  ;;  %1041 = vmatprep.subr.mxu1 %v1062_v0 }
  0x7a   :  { %961 = vmatprep.subr.mxu0 %v1062_v0  ;;  %380 = vmatmul.mubr.f32.gmra.mxu0 %v130_v11 }
  0x7b   :  { %550 = vmatmul.mubr.f32.gmra.mxu1 %v132_v12  ;;  %384 = vmatprep.mubr.f32.mxu0 %v136_v13 }
  0x7c   :  { %554 = vmatprep.mubr.f32.mxu1 %v138_v14  ;;  %1057 = vmatpush3.msra.mxu1 %v231_v10 }
  0x7d   :  { %962 = vmatpush3.msra.mxu0 %v230_v15  ;;  %1042 = vmatprep.subr.mxu1 %v1062_v0 }
  0x7e   :  { %963 = vmatprep.subr.mxu0 %v1062_v0  ;;  %385 = vmatmul.mubr.f32.gmra.mxu0 %v135_v16 }
  0x7f   :  { %555 = vmatmul.mubr.f32.gmra.mxu1 %v137_v17  ;;  %389 = vmatprep.mubr.f32.mxu0 %v141_v18 }
  0x80   :  { %559 = vmatprep.mubr.f32.mxu1 %v143_v19  ;;  %1058 = vmatpush3.msra.mxu1 %v230_v15 }
  0x81   :  { %964 = vmatpush3.msra.mxu0 %v229_v20  ;;  %1043 = vmatprep.subr.mxu1 %v1062_v0 }
  0x82   :  { %390 = vmatmul.mubr.f32.gmra.mxu0 %v140_v21  ;;  %1059 = vmatpush3.msra.mxu1 %v229_v20 }
  0x83   :  { %560 = vmatmul.mubr.f32.gmra.mxu1 %v142_v22  ;;  %394 = vmatprep.mubr.f32.mxu0 %v146_v23 }
  0x84   :  { %564 = vmatprep.mubr.f32.mxu1 %v148_v24 }
  0x86   :  { %395 = vmatmul.mubr.f32.gmra.mxu0 %v145_v25 }
  0x87   :  { %565 = vmatmul.mubr.f32.gmra.mxu1 %v147_v26  ;;  %399 = vmatprep.mubr.f32.mxu0 %v151_v27 }
  0x88   :  { %569 = vmatprep.mubr.f32.mxu1 %v153_v28 }
  0x8a   :  { %400 = vmatmul.mubr.f32.gmra.mxu0 %v150_v29 }
  0x8b   :  { %570 = vmatmul.mubr.f32.gmra.mxu1 %v152_v30  ;;  %404 = vmatprep.mubr.f32.mxu0 %v156_v31 }
  0x8c   :  { %574 = vmatprep.mubr.f32.mxu1 %v158_v32 }
  0x8e   :  { %405 = vmatmul.mubr.f32.gmra.mxu0 %v155_v33 }
  0x8f   :  { %575 = vmatmul.mubr.f32.gmra.mxu1 %v157_v34  ;;  %409 = vmatprep.mubr.f32.mxu0 %v161_v35 }
  0x90   :  { %579 = vmatprep.mubr.f32.mxu1 %v163_v36 }
  0x92   :  { %410 = vmatmul.mubr.f32.gmra.mxu0 %v160_v37 }
  0x93   :  { %580 = vmatmul.mubr.f32.gmra.mxu1 %v162_v38  ;;  %965 = vmatprep.mubr.msk.f32.mxu0 %vm1063_vm0, %v1062_v0 }
  0x94   :  { %998 = vmatprep.mubr.msk.f32.mxu1 %vm1063_vm0, %v1062_v0 }
  0x96   :  { %966 = vmatmul.mubr.f32.vlgmr.msra.gmra.mxu0 %v64_v39 }
  0x97   :  { %999 = vmatmul.mubr.f32.vlgmr.msra.gmra.mxu1 %v119_v40  ;;  %968 = vmatprep.mubr.msk.f32.mxu0 %vm1063_vm0, %v1062_v0 }
  0x98   :  { %1001 = vmatprep.mubr.msk.f32.mxu1 %vm1063_vm0, %v1062_v0 }
  0x9a   :  { %969 = vmatmul.mubr.f32.gmra.mxu0 %v69_v41 }
  0x9b   :  { %1002 = vmatmul.mubr.f32.gmra.mxu1 %v124_v42  ;;  %971 = vmatprep.mubr.msk.f32.mxu0 %vm1063_vm0, %v1062_v0 }
  0x9c   :  { %1004 = vmatprep.mubr.msk.f32.mxu1 %vm1063_vm0, %v1062_v0 }
  0x9e   :  { %972 = vmatmul.mubr.f32.gmra.mxu0 %v74_v43 }
  0x9f   :  { %1005 = vmatmul.mubr.f32.gmra.mxu1 %v129_v44  ;;  %974 = vmatprep.mubr.msk.f32.mxu0 %vm1063_vm0, %v1062_v0 }
  0xa0   :  { %1007 = vmatprep.mubr.msk.f32.mxu1 %vm1063_vm0, %v1062_v0 }
  0xa2   :  { %975 = vmatmul.mubr.f32.gmra.mxu0 %v79_v45 }
  0xa3   :  { %1008 = vmatmul.mubr.f32.gmra.mxu1 %v134_v46  ;;  %977 = vmatprep.mubr.msk.f32.mxu0 %vm1063_vm0, %v1062_v0 }
  0xa4   :  { %1010 = vmatprep.mubr.msk.f32.mxu1 %vm1063_vm0, %v1062_v0 }
  0xa6   :  { %978 = vmatmul.mubr.f32.gmra.mxu0 %v84_v47 }
  0xa7   :  { %1011 = vmatmul.mubr.f32.gmra.mxu1 %v139_v48  ;;  %980 = vmatprep.mubr.msk.f32.mxu0 %vm1063_vm0, %v1062_v0 }
  0xa8   :  { %1013 = vmatprep.mubr.msk.f32.mxu1 %vm1063_vm0, %v1062_v0 }
  0xaa   :  { %981 = vmatmul.mubr.f32.gmra.mxu0 %v89_v49 }
  0xab   :  { %1014 = vmatmul.mubr.f32.gmra.mxu1 %v144_v50  ;;  %983 = vmatprep.mubr.msk.f32.mxu0 %vm1063_vm0, %v1062_v0 }
  0xac   :  { %1016 = vmatprep.mubr.msk.f32.mxu1 %vm1063_vm0, %v1062_v0 }
  0xae   :  { %984 = vmatmul.mubr.f32.gmra.mxu0 %v94_v51 }
  0xaf   :  { %1017 = vmatmul.mubr.f32.gmra.mxu1 %v149_v52  ;;  %986 = vmatprep.mubr.msk.f32.mxu0 %vm1063_vm0, %v1062_v0 }
  0xb0   :  { %1019 = vmatprep.mubr.msk.f32.mxu1 %vm1063_vm0, %v1062_v0 }
  0xb2   :  { %987 = vmatmul.mubr.f32.gmra.mxu0 %v99_v53 }
  0xb3   :  { %1020 = vmatmul.mubr.f32.gmra.mxu1 %v154_v54  ;;  %989 = vmatprep.mubr.msk.f32.mxu0 %vm1063_vm0, %v1062_v0 }
  0xb4   :  { %1022 = vmatprep.mubr.msk.f32.mxu1 %vm1063_vm0, %v1062_v0 }
  0xb6   :  { %990 = vmatmul.mubr.f32.gmra.mxu0 %v104_v55 }
  0xb7   :  { %1023 = vmatmul.mubr.f32.gmra.mxu1 %v159_v56  ;;  %992 = vmatprep.mubr.msk.f32.mxu0 %vm1063_vm0, %v1062_v0 }
  0xb8   :  { %1025 = vmatprep.mubr.msk.f32.mxu1 %vm1063_vm0, %v1062_v0 }
  0xba   :  { %993 = vmatmul.mubr.f32.gmra.mxu0 %v109_v57 }
  0xbb   :  { %1026 = vmatmul.mubr.f32.gmra.mxu1 %v164_v58  ;;  %995 = vmatprep.mubr.msk.f32.mxu0 %vm1063_vm0, %v1062_v0 }
  0xbe   :  { %996 = vmatmul.mubr.f32.gmra.mxu0 %v114_v59 }
 0x102   :  { %v311_v60 = vpop.f32.mrf.mxu0 }
 0x103   :  { %v481_v61 = vpop.f32.mrf.mxu1 }
 0x104   :  { %v1777_v62 = vadd.f32 %v481_v61, %v311_v60  ;;  %v313_v63 = vpop.f32.mrf.mxu0 }
 0x105   :  { %v483_v1 = vpop.f32.mrf.mxu1 }
 0x106   :  { %v316_v2 = vpop.f32.mrf.mxu0 }
 0x107   :  { %v486_v3 = vpop.f32.mrf.mxu1 }
 0x108   :  { %v1779_v4 = vadd.f32 %v486_v3, %v316_v2  ;;  %v318_v5 = vpop.f32.mrf.mxu0 }
 0x109   :  { %v488_v6 = vpop.f32.mrf.mxu1 }
 0x10a   :  { %v321_v7 = vpop.f32.mrf.mxu0 }
 0x10b   :  { %v491_v8 = vpop.f32.mrf.mxu1 }
 0x10c   :  { %v1781_v0 = vadd.f32 %v491_v8, %v321_v7  ;;  %v323_v9 = vpop.f32.mrf.mxu0 }
 0x10d   :  { %v493_v10 = vpop.f32.mrf.mxu1 }
 0x10e   :  { %v326_v11 = vpop.f32.mrf.mxu0 }
 0x10f   :  { %v496_v12 = vpop.f32.mrf.mxu1 }
 0x110   :  { %v1783_v13 = vadd.f32 %v496_v12, %v326_v11  ;;  %v328_v14 = vpop.f32.mrf.mxu0 }
 0x111   :  { %v498_v15 = vpop.f32.mrf.mxu1 }
 0x112   :  { %v331_v16 = vpop.f32.mrf.mxu0 }
 0x113   :  { %v501_v17 = vpop.f32.mrf.mxu1 }
 0x114   :  { %v1785_v18 = vadd.f32 %v501_v17, %v331_v16  ;;  %v333_v19 = vpop.f32.mrf.mxu0 }
 0x115   :  { %v503_v20 = vpop.f32.mrf.mxu1 }
 0x116   :  { %v336_v21 = vpop.f32.mrf.mxu0 }
 0x117   :  { %v506_v22 = vpop.f32.mrf.mxu1 }
 0x118   :  { %v1787_v23 = vadd.f32 %v506_v22, %v336_v21  ;;  %v338_v24 = vpop.f32.mrf.mxu0 }
 0x119   :  { %v508_v25 = vpop.f32.mrf.mxu1 }
 0x11a   :  { %v341_v26 = vpop.f32.mrf.mxu0 }
 0x11b   :  { %v511_v27 = vpop.f32.mrf.mxu1 }
 0x11c   :  { %v1789_v28 = vadd.f32 %v511_v27, %v341_v26  ;;  %v343_v29 = vpop.f32.mrf.mxu0 }
 0x11d   :  { %v513_v30 = vpop.f32.mrf.mxu1 }
 0x11e   :  { %v346_v31 = vpop.f32.mrf.mxu0 }
 0x11f   :  { %v516_v32 = vpop.f32.mrf.mxu1 }
 0x120   :  { %v1791_v33 = vadd.f32 %v516_v32, %v346_v31  ;;  %v348_v34 = vpop.f32.mrf.mxu0 }
 0x121   :  { %v518_v35 = vpop.f32.mrf.mxu1 }
 0x122   :  { %v351_v36 = vpop.f32.mrf.mxu0 }
 0x123   :  { %v521_v37 = vpop.f32.mrf.mxu1 }
 0x124   :  { %v1793_v38 = vadd.f32 %v521_v37, %v351_v36  ;;  %v353_v39 = vpop.f32.mrf.mxu0  ;;  %v1826_v37 = vld [vmem:[%s1937_s2] ss:$0 sm:$0xff] }
 0x125   :  { %v523_v40 = vpop.f32.mrf.mxu1 }
 0x126   :  { %v356_v41 = vpop.f32.mrf.mxu0 }
 0x127   :  { %v526_v42 = vpop.f32.mrf.mxu1 }
 0x128   :  { %v1795_v43 = vadd.f32 %v526_v42, %v356_v41  ;;  %v358_v44 = vpop.f32.mrf.mxu0 }
 0x129   :  { %v528_v45 = vpop.f32.mrf.mxu1 }
 0x12a   :  { %v361_v46 = vpop.f32.mrf.mxu0 }
 0x12b   :  { %v531_v47 = vpop.f32.mrf.mxu1 }
 0x12c   :  { %v1797_v48 = vadd.f32 %v531_v47, %v361_v46  ;;  %v363_v49 = vpop.f32.mrf.mxu0 }
 0x12d   :  { %v533_v50 = vpop.f32.mrf.mxu1 }
 0x12e   :  { %v366_v51 = vpop.f32.mrf.mxu0 }
 0x12f   :  { %v536_v52 = vpop.f32.mrf.mxu1 }
 0x130   :  { %v368_v53 = vpop.f32.mrf.mxu0  ;;  %v537_v35 = vadd.f32 %v536_v52, %v366_v51 }
 0x131   :  { %v538_v54 = vpop.f32.mrf.mxu1 }
 0x132   :  { %v371_v55 = vpop.f32.mrf.mxu0 }
 0x133   :  { %v541_v56 = vpop.f32.mrf.mxu1 }
 0x134   :  { %v373_v57 = vpop.f32.mrf.mxu0  ;;  %v542_v45 = vadd.f32 %v541_v56, %v371_v55 }
 0x135   :  { %v543_v58 = vpop.f32.mrf.mxu1 }
 0x136   :  { %v376_v59 = vpop.f32.mrf.mxu0 }
 0x137   :  { %v546_v60 = vpop.f32.mrf.mxu1 }
 0x138   :  { %v378_v61 = vpop.f32.mrf.mxu0 }
 0x139   :  { %v548_v63 = vpop.f32.mrf.mxu1  ;;  %v547_v61 = vadd.f32 %v546_v60, %v376_v59 }
 0x13a   :  { %v381_v1 = vpop.f32.mrf.mxu0 }
 0x13b   :  { %v551_v2 = vpop.f32.mrf.mxu1 }
 0x13c   :  { %v383_v3 = vpop.f32.mrf.mxu0 }
 0x13d   :  { %v553_v5 = vpop.f32.mrf.mxu1 }
 0x13e   :  { %v1799_v6 = vpop.f32.mrf.mxu0 }
 0x13f   :  { %v1801_v7 = vpop.f32.mrf.mxu1 }
 0x140   :  { %v388_v8 = vpop.f32.mrf.mxu0 }
 0x141   :  { %v558_v9 = vpop.f32.mrf.mxu1 }
 0x142   :  { %v1803_v10 = vpop.f32.mrf.mxu0  ;;  %v552_v9 = vadd.f32 %v551_v2, %v381_v1 }
 0x143   :  { %v1805_v11 = vpop.f32.mrf.mxu1 }
 0x144   :  { %v393_v12 = vpop.f32.mrf.mxu0 }
 0x145   :  { %v563_v14 = vpop.f32.mrf.mxu1 }
 0x146   :  { %v1807_v15 = vpop.f32.mrf.mxu0 }
 0x147   :  { %v1809_v16 = vpop.f32.mrf.mxu1 }
 0x148   :  { %v398_v17 = vpop.f32.mrf.mxu0 }
 0x149   :  { %v568_v19 = vpop.f32.mrf.mxu1 }
 0x14a   :  { %v1811_v20 = vpop.f32.mrf.mxu0 }
 0x14b   :  { %v1813_v21 = vpop.f32.mrf.mxu1 }
 0x14c   :  { %v403_v22 = vpop.f32.mrf.mxu0 }
 0x14d   :  { %v573_v24 = vpop.f32.mrf.mxu1 }
 0x14e   :  { %v1815_v25 = vpop.f32.mrf.mxu0 }
 0x14f   :  { %v1817_v26 = vpop.f32.mrf.mxu1 }
 0x150   :  { %v408_v27 = vpop.f32.mrf.mxu0 }
 0x151   :  { %v578_v29 = vpop.f32.mrf.mxu1 }
 0x152   :  { %v1819_v30 = vpop.f32.mrf.mxu0  ;;  %v557_v29 = vadd.f32 %v1801_v7, %v1799_v6 }
 0x153   :  { %v1821_v31 = vpop.f32.mrf.mxu1 }
 0x154   :  { %v413_v32 = vpop.f32.mrf.mxu0 }
 0x155   :  { %v583_v34 = vpop.f32.mrf.mxu1 }
 0x156   :  { %v651_v36 = vpop.f32.mrf.mxu0 }
 0x157   :  { %v706_v39 = vpop.f32.mrf.mxu1  ;;  %v652_v40 = vadd.f32 %v651_v36, %v1777_v62 }
 0x158   :  { %v707_v41 = vadd.f32 %v706_v39, %v537_v35  ;;  %v967_v42 = vpop.f32.mrf.mxu0 }
 0x159   :  { %v1000_v44 = vpop.f32.mrf.mxu1  ;;  %v828_v46 = vadd.f32 %v1826_v37, %v652_v40  ;;  %v562_v42 = vadd.f32 %v1805_v11, %v1803_v10 }
 0x15a   :  { %v839_v47 = vadd.f32 %v1826_v37, %v707_v41  ;;  %v656_v49 = vpop.f32.mrf.mxu0 }
 0x15b   :  { %v711_v50 = vpop.f32.mrf.mxu1  ;;  %v849_v51 = vmax.f32 %v828_v46, 0.0  ;;  %v657_v53 = vadd.f32 %v656_v49, %v1779_v4 }
 0x15c   :  { %v860_v52 = vmax.f32 %v839_v47, 0.0  ;;  %v712_v54 = vadd.f32 %v711_v50, %v542_v45  ;;  %v970_v57 = vpop.f32.mrf.mxu0 }
 0x15d   :  { %v1003_v58 = vpop.f32.mrf.mxu1  ;;  %870 = vst [vmem:[%s1938_s3] sm:$0xff] %v849_v51  ;;  %v829_v62 = vadd.f32 %v1826_v37, %v657_v53 }
 0x15e   :  { %881 = vst [vmem:[%s1938_s3 + $0x58] sm:$0xff] %v860_v52  ;;  %v840_v55 = vadd.f32 %v1826_v37, %v712_v54  ;;  %v661_v56 = vpop.f32.mrf.mxu0  ;;  %v567_v52 = vadd.f32 %v1809_v16, %v1807_v15 }
 0x15f   :  { %v716_v63 = vpop.f32.mrf.mxu1  ;;  %v850_v3 = vmax.f32 %v829_v62, 0.0  ;;  %v662_v5 = vadd.f32 %v661_v56, %v1781_v0  ;;  %v572_v56 = vadd.f32 %v1813_v21, %v1811_v20 }
 0x160   :  { %v861_v4 = vmax.f32 %v840_v55, 0.0  ;;  %v717_v8 = vadd.f32 %v716_v63, %v547_v61  ;;  %v973_v59 = vpop.f32.mrf.mxu0 }
 0x161   :  { %v1006_v60 = vpop.f32.mrf.mxu1  ;;  %871 = vst [vmem:[%s1938_s3 + $0x8] sm:$0xff] %v850_v3  ;;  %v830_v12 = vadd.f32 %v1826_v37, %v662_v5 }
 0x162   :  { %882 = vst [vmem:[%s1938_s3 + $0x60] sm:$0xff] %v861_v4  ;;  %v841_v14 = vadd.f32 %v1826_v37, %v717_v8  ;;  %v666_v17 = vpop.f32.mrf.mxu0 }
 0x163   :  { %v721_v19 = vpop.f32.mrf.mxu1  ;;  %v851_v22 = vmax.f32 %v830_v12, 0.0  ;;  %v667_v24 = vadd.f32 %v666_v17, %v1783_v13 }
 0x164   :  { %v862_v0 = vmax.f32 %v841_v14, 0.0  ;;  %v722_v27 = vadd.f32 %v721_v19, %v552_v9  ;;  %v976_v1 = vpop.f32.mrf.mxu0  ;;  %v577_v9 = vadd.f32 %v1817_v26, %v1815_v25 }
 0x165   :  { %v1009_v2 = vpop.f32.mrf.mxu1  ;;  %872 = vst [vmem:[%s1938_s3 + $0x10] sm:$0xff] %v851_v22  ;;  %v831_v32 = vadd.f32 %v1826_v37, %v667_v24 }
 0x166   :  { %883 = vst [vmem:[%s1938_s3 + $0x68] sm:$0xff] %v862_v0  ;;  %v842_v34 = vadd.f32 %v1826_v37, %v722_v27  ;;  %v671_v35 = vpop.f32.mrf.mxu0  ;;  %v582_v27 = vadd.f32 %v1821_v31, %v1819_v30 }
 0x167   :  { %v726_v13 = vpop.f32.mrf.mxu1  ;;  %v852_v36 = vmax.f32 %v831_v32, 0.0  ;;  %v672_v40 = vadd.f32 %v671_v35, %v1785_v18 }
 0x168   :  { %v863_v39 = vmax.f32 %v842_v34, 0.0  ;;  %v727_v41 = vadd.f32 %v726_v13, %v557_v29  ;;  %v979_v6 = vpop.f32.mrf.mxu0 }
 0x169   :  { %v1012_v7 = vpop.f32.mrf.mxu1  ;;  %873 = vst [vmem:[%s1938_s3 + $0x18] sm:$0xff] %v852_v36  ;;  %v832_v44 = vadd.f32 %v1826_v37, %v672_v40 }
 0x16a   :  { %884 = vst [vmem:[%s1938_s3 + $0x70] sm:$0xff] %v863_v39  ;;  %v843_v45 = vadd.f32 %v1826_v37, %v727_v41  ;;  %v676_v46 = vpop.f32.mrf.mxu0 }
 0x16b   :  { %v731_v18 = vpop.f32.mrf.mxu1  ;;  %v853_v47 = vmax.f32 %v832_v44, 0.0  ;;  %v677_v50 = vadd.f32 %v676_v46, %v1787_v23 }
 0x16c   :  { %v864_v49 = vmax.f32 %v843_v45, 0.0  ;;  %v732_v51 = vadd.f32 %v731_v18, %v562_v42  ;;  %v982_v10 = vpop.f32.mrf.mxu0 }
 0x16d   :  { %v1015_v11 = vpop.f32.mrf.mxu1  ;;  %874 = vst [vmem:[%s1938_s3 + $0x20] sm:$0xff] %v853_v47  ;;  %v833_v53 = vadd.f32 %v1826_v37, %v677_v50 }
 0x16e   :  { %885 = vst [vmem:[%s1938_s3 + $0x78] sm:$0xff] %v864_v49  ;;  %v844_v54 = vadd.f32 %v1826_v37, %v732_v51  ;;  %v681_v57 = vpop.f32.mrf.mxu0 }
 0x16f   :  { %v736_v23 = vpop.f32.mrf.mxu1  ;;  %v854_v58 = vmax.f32 %v833_v53, 0.0  ;;  %v682_v62 = vadd.f32 %v681_v57, %v1789_v28 }
 0x170   :  { %v865_v61 = vmax.f32 %v844_v54, 0.0  ;;  %v737_v55 = vadd.f32 %v736_v23, %v567_v52  ;;  %v985_v15 = vpop.f32.mrf.mxu0 }
 0x171   :  { %v1018_v16 = vpop.f32.mrf.mxu1  ;;  %875 = vst [vmem:[%s1938_s3 + $0x28] sm:$0xff] %v854_v58  ;;  %v834_v63 = vadd.f32 %v1826_v37, %v682_v62 }
 0x172   :  { %886 = vst [vmem:[%s1938_s3 + $0x80] sm:$0xff] %v865_v61  ;;  %v845_v3 = vadd.f32 %v1826_v37, %v737_v55  ;;  %v686_v4 = vpop.f32.mrf.mxu0 }
 0x173   :  { %v741_v28 = vpop.f32.mrf.mxu1  ;;  %v855_v5 = vmax.f32 %v834_v63, 0.0  ;;  %v687_v59 = vadd.f32 %v686_v4, %v1791_v33 }
 0x174   :  { %v866_v8 = vmax.f32 %v845_v3, 0.0  ;;  %v742_v60 = vadd.f32 %v741_v28, %v572_v56  ;;  %v988_v20 = vpop.f32.mrf.mxu0 }
 0x175   :  { %v1021_v21 = vpop.f32.mrf.mxu1  ;;  %876 = vst [vmem:[%s1938_s3 + $0x30] sm:$0xff] %v855_v5  ;;  %v835_v12 = vadd.f32 %v1826_v37, %v687_v59 }
 0x176   :  { %887 = vst [vmem:[%s1938_s3 + $0x88] sm:$0xff] %v866_v8  ;;  %v846_v14 = vadd.f32 %v1826_v37, %v742_v60  ;;  %v691_v17 = vpop.f32.mrf.mxu0 }
 0x177   :  { %v746_v33 = vpop.f32.mrf.mxu1  ;;  %v856_v19 = vmax.f32 %v835_v12, 0.0  ;;  %v692_v0 = vadd.f32 %v691_v17, %v1793_v38 }
 0x178   :  { %v867_v22 = vmax.f32 %v846_v14, 0.0  ;;  %v747_v24 = vadd.f32 %v746_v33, %v577_v9  ;;  %v991_v25 = vpop.f32.mrf.mxu0 }
 0x179   :  { %v1024_v26 = vpop.f32.mrf.mxu1  ;;  %877 = vst [vmem:[%s1938_s3 + $0x38] sm:$0xff] %v856_v19  ;;  %v836_v1 = vadd.f32 %v1826_v37, %v692_v0 }
 0x17a   :  { %888 = vst [vmem:[%s1938_s3 + $0x90] sm:$0xff] %v867_v22  ;;  %v847_v2 = vadd.f32 %v1826_v37, %v747_v24  ;;  %v696_v29 = vpop.f32.mrf.mxu0 }
 0x17b   :  { %v751_v38 = vpop.f32.mrf.mxu1  ;;  %v857_v32 = vmax.f32 %v836_v1, 0.0  ;;  %v697_v35 = vadd.f32 %v696_v29, %v1795_v43 }
 0x17c   :  { %v868_v34 = vmax.f32 %v847_v2, 0.0  ;;  %v752_v13 = vadd.f32 %v751_v38, %v582_v27  ;;  %v994_v30 = vpop.f32.mrf.mxu0 }
 0x17d   :  { %v1027_v31 = vpop.f32.mrf.mxu1  ;;  %878 = vst [vmem:[%s1938_s3 + $0x40] sm:$0xff] %v857_v32  ;;  %v837_v36 = vadd.f32 %v1826_v37, %v697_v35 }
 0x17e   :  { %889 = vst [vmem:[%s1938_s3 + $0x98] sm:$0xff] %v868_v34  ;;  %v848_v39 = vadd.f32 %v1826_v37, %v752_v13  ;;  %v701_v40 = vpop.f32.mrf.mxu0 }
 0x17f   :  { %v858_v41 = vmax.f32 %v837_v36, 0.0  ;;  %v702_v43 = vadd.f32 %v701_v40, %v1797_v48 }
 0x180   :  { %v869_v6 = vmax.f32 %v848_v39, 0.0  ;;  %v997_v7 = vpop.f32.mrf.mxu0 }
 0x181   :  { %879 = vst [vmem:[%s1938_s3 + $0x48] sm:$0xff] %v858_v41  ;;  %v838_v42 = vadd.f32 %v1826_v37, %v702_v43 }
 0x182   :  { %890 = vst [vmem:[%s1938_s3 + $0xa0] sm:$0xff] %v869_v6 }
 0x183   :  { %v859_v44 = vmax.f32 %v838_v42, 0.0 }
 0x185   :  { %880 = vst [vmem:[%s1938_s3 + $0x50] sm:$0xff] %v859_v44 }

// kernel: forward.10
= control target key start
LH: loop header
LB: loop body
LE: loop exit
PB: predicated region body
PF: predicated region fallthrough
CT: control target
= control target key end

     0   :  { %v182_v0 = vmov 0.0   ;;  %vm183_vm0 = vmmov 0   ;;  %s261_s1 = inlined_call_operand.vmem [shape: f32[128,128], index: 1, kind: input, shape index: {}]   ;;  %s262_s0 = inlined_call_operand.vmem [shape: f32[8,128], index: 0, kind: input, shape index: {}]   ;;  %s263_s2 = inlined_call_operand.vmem [shape: f32[1,128], index: 2, kind: input, shape index: {}]   ;;  %s264_s3 = inlined_call_operand.vmem [shape: f32[8,128], index: 3, kind: output, shape index: {}]  }
   0x1   :  { %145 = vmatprep.subr.mxu0 %v182_v0  ;;  %v36_v1 = vld [vmem:[%s261_s1 + $0x78] sm:$0xff]  ;;  %v35_v2 = vld [vmem:[%s261_s1 + $0x70] sm:$0xff]  ;;  %177 = vmatprep.mubr.msk.f32.mxu0 %vm183_vm0, %v182_v0  ;;  %v34_v3 = vld [vmem:[%s261_s1 + $0x68] sm:$0xff] }
   0x2   :  { %146 = vmatpush3.msra.mxu0 %v36_v1  ;;  %v33_v4 = vld [vmem:[%s261_s1 + $0x60] sm:$0xff]  ;;  %v32_v5 = vld [vmem:[%s261_s1 + $0x58] sm:$0xff]  ;;  %v31_v6 = vld [vmem:[%s261_s1 + $0x50] sm:$0xff] }
   0x3   :  { %147 = vmatprep.subr.mxu0 %v182_v0  ;;  %v30_v7 = vld [vmem:[%s261_s1 + $0x48] sm:$0xff]  ;;  %v29_v8 = vld [vmem:[%s261_s1 + $0x40] sm:$0xff]  ;;  %v28_v9 = vld [vmem:[%s261_s1 + $0x38] sm:$0xff] }
   0x4   :  { %148 = vmatpush3.msra.mxu0 %v35_v2  ;;  %v27_v10 = vld [vmem:[%s261_s1 + $0x30] sm:$0xff]  ;;  %v26_v11 = vld [vmem:[%s261_s1 + $0x28] sm:$0xff]  ;;  %v25_v12 = vld [vmem:[%s261_s1 + $0x20] sm:$0xff] }
   0x5   :  { %149 = vmatprep.subr.mxu0 %v182_v0  ;;  %v24_v13 = vld [vmem:[%s261_s1 + $0x18] sm:$0xff]  ;;  %v23_v14 = vld [vmem:[%s261_s1 + $0x10] sm:$0xff]  ;;  %v22_v15 = vld [vmem:[%s261_s1 + $0x8] sm:$0xff] }
   0x6   :  { %150 = vmatpush3.msra.mxu0 %v34_v3  ;;  %v21_v16 = vld [vmem:[%s261_s1] sm:$0xff] }
   0x7   :  { %151 = vmatprep.subr.mxu0 %v182_v0  ;;  %v20_v17 = vld [vmem:[%s262_s0] sm:$0xff] }
   0x8   :  { %152 = vmatpush3.msra.mxu0 %v33_v4  ;;  %v127_v18 = vld [vmem:[%s263_s2] ss:$0 sm:$0xff] }
   0x9   :  { %153 = vmatprep.subr.mxu0 %v182_v0 }
   0xa   :  { %154 = vmatpush3.msra.mxu0 %v32_v5 }
   0xb   :  { %155 = vmatprep.subr.mxu0 %v182_v0 }
   0xc   :  { %156 = vmatpush3.msra.mxu0 %v31_v6 }
   0xd   :  { %157 = vmatprep.subr.mxu0 %v182_v0 }
   0xe   :  { %158 = vmatpush3.msra.mxu0 %v30_v7 }
   0xf   :  { %159 = vmatprep.subr.mxu0 %v182_v0 }
  0x10   :  { %160 = vmatpush3.msra.mxu0 %v29_v8 }
  0x11   :  { %161 = vmatprep.subr.mxu0 %v182_v0 }
  0x12   :  { %162 = vmatpush3.msra.mxu0 %v28_v9 }
  0x13   :  { %163 = vmatprep.subr.mxu0 %v182_v0 }
  0x14   :  { %164 = vmatpush3.msra.mxu0 %v27_v10 }
  0x15   :  { %165 = vmatprep.subr.mxu0 %v182_v0 }
  0x16   :  { %166 = vmatpush3.msra.mxu0 %v26_v11 }
  0x17   :  { %167 = vmatprep.subr.mxu0 %v182_v0 }
  0x18   :  { %168 = vmatpush3.msra.mxu0 %v25_v12 }
  0x19   :  { %169 = vmatprep.subr.mxu0 %v182_v0 }
  0x1a   :  { %170 = vmatpush3.msra.mxu0 %v24_v13 }
  0x1b   :  { %171 = vmatprep.subr.mxu0 %v182_v0 }
  0x1c   :  { %172 = vmatpush3.msra.mxu0 %v23_v14 }
  0x1d   :  { %173 = vmatprep.subr.mxu0 %v182_v0 }
  0x1e   :  { %174 = vmatpush3.msra.mxu0 %v22_v15 }
  0x1f   :  { %175 = vmatprep.subr.mxu0 %v182_v0 }
  0x20   :  { %176 = vmatpush3.msra.mxu0 %v21_v16 }
  0x21   :  { %178 = vmatmul.mubr.f32.vlgmr.msra.gmra.mxu0 %v20_v17 }
  0xe1   :  { %v103_v19 = vpop.f32.mrf.mxu0 }
  0xe2   :  { %v120_v20 = vadd.f32 %v127_v18, %v103_v19 }
  0xe3   :  { %v179_v21 = vpop.f32.mrf.mxu0 }
  0xe4   :  { %v121_v22 = vmax.f32 %v120_v20, 0.0 }
  0xe6   :  { %122 = vst [vmem:[%s264_s3] sm:$0xff] %v121_v22 }

// kernel: forward.9
= control target key start
LH: loop header
LB: loop body
LE: loop exit
PB: predicated region body
PF: predicated region fallthrough
CT: control target
= control target key end

     0   :  { %s1995_s1 = inlined_call_operand.vmem [shape: f32[2048,128], index: 1, kind: input, shape index: {}]   ;;  %s1996_s0 = inlined_call_operand.vmem [shape: f32[8,2048], index: 0, kind: input, shape index: {}]   ;;  %s1997_s2 = inlined_call_operand.vmem [shape: f32[1,128], index: 2, kind: input, shape index: {}]   ;;  %s1998_s3 = inlined_call_operand.vmem [shape: f32[8,128], index: 3, kind: output, shape index: {}]  }
   0x1   :  { %v67_v0 = vld [vmem:[%s1995_s1 + $0xf8] sm:$0xff]  ;;  %v66_v4 = vld [vmem:[%s1995_s1 + $0xf0] sm:$0xff]  ;;  %v65_v8 = vld [vmem:[%s1995_s1 + $0xe8] sm:$0xff] }
   0x2   :  { %v99_v1 = vld [vmem:[%s1995_s1 + $0x1f8] sm:$0xff]  ;;  %873 = vmatprep.subr.mxu0 %v67_v0  ;;  %v98_v5 = vld [vmem:[%s1995_s1 + $0x1f0] sm:$0xff]  ;;  %v97_v9 = vld [vmem:[%s1995_s1 + $0x1e8] sm:$0xff] }
   0x3   :  { %v51_v2 = vld [vmem:[%s1995_s1 + $0x78] sm:$0xff]  ;;  %908 = vmatprep.subr.mxu1 %v99_v1  ;;  %v50_v6 = vld [vmem:[%s1995_s1 + $0x70] sm:$0xff]  ;;  %v49_v10 = vld [vmem:[%s1995_s1 + $0x68] sm:$0xff] }
   0x4   :  { %v83_v3 = vld [vmem:[%s1995_s1 + $0x178] sm:$0xff]  ;;  %874 = vmatpush3.msra.mxu0 %v51_v2  ;;  %v82_v7 = vld [vmem:[%s1995_s1 + $0x170] sm:$0xff]  ;;  %v81_v11 = vld [vmem:[%s1995_s1 + $0x168] sm:$0xff] }
   0x5   :  { %909 = vmatpush3.msra.mxu1 %v83_v3  ;;  %875 = vmatprep.subr.mxu0 %v66_v4  ;;  %v64_v12 = vld [vmem:[%s1995_s1 + $0xe0] sm:$0xff]  ;;  %v63_v16 = vld [vmem:[%s1995_s1 + $0xd8] sm:$0xff]  ;;  %v62_v20 = vld [vmem:[%s1995_s1 + $0xd0] sm:$0xff] }
   0x6   :  { %910 = vmatprep.subr.mxu1 %v98_v5  ;;  %876 = vmatpush3.msra.mxu0 %v50_v6  ;;  %v96_v13 = vld [vmem:[%s1995_s1 + $0x1e0] sm:$0xff]  ;;  %v95_v17 = vld [vmem:[%s1995_s1 + $0x1d8] sm:$0xff]  ;;  %v94_v21 = vld [vmem:[%s1995_s1 + $0x1d0] sm:$0xff] }
   0x7   :  { %911 = vmatpush3.msra.mxu1 %v82_v7  ;;  %877 = vmatprep.subr.mxu0 %v65_v8  ;;  %v48_v14 = vld [vmem:[%s1995_s1 + $0x60] sm:$0xff]  ;;  %v47_v18 = vld [vmem:[%s1995_s1 + $0x58] sm:$0xff]  ;;  %v46_v22 = vld [vmem:[%s1995_s1 + $0x50] sm:$0xff] }
   0x8   :  { %912 = vmatprep.subr.mxu1 %v97_v9  ;;  %v80_v15 = vld [vmem:[%s1995_s1 + $0x160] sm:$0xff]  ;;  %878 = vmatpush3.msra.mxu0 %v49_v10  ;;  %v79_v19 = vld [vmem:[%s1995_s1 + $0x158] sm:$0xff]  ;;  %v78_v23 = vld [vmem:[%s1995_s1 + $0x150] sm:$0xff] }
   0x9   :  { %913 = vmatpush3.msra.mxu1 %v81_v11  ;;  %879 = vmatprep.subr.mxu0 %v64_v12  ;;  %v61_v24 = vld [vmem:[%s1995_s1 + $0xc8] sm:$0xff]  ;;  %v60_v28 = vld [vmem:[%s1995_s1 + $0xc0] sm:$0xff]  ;;  %v59_v32 = vld [vmem:[%s1995_s1 + $0xb8] sm:$0xff] }
   0xa   :  { %914 = vmatprep.subr.mxu1 %v96_v13  ;;  %880 = vmatpush3.msra.mxu0 %v48_v14  ;;  %v93_v25 = vld [vmem:[%s1995_s1 + $0x1c8] sm:$0xff]  ;;  %v92_v29 = vld [vmem:[%s1995_s1 + $0x1c0] sm:$0xff]  ;;  %v91_v33 = vld [vmem:[%s1995_s1 + $0x1b8] sm:$0xff] }
   0xb   :  { %915 = vmatpush3.msra.mxu1 %v80_v15  ;;  %881 = vmatprep.subr.mxu0 %v63_v16  ;;  %v45_v26 = vld [vmem:[%s1995_s1 + $0x48] sm:$0xff]  ;;  %v44_v30 = vld [vmem:[%s1995_s1 + $0x40] sm:$0xff]  ;;  %v43_v34 = vld [vmem:[%s1995_s1 + $0x38] sm:$0xff] }
   0xc   :  { %916 = vmatprep.subr.mxu1 %v95_v17  ;;  %882 = vmatpush3.msra.mxu0 %v47_v18  ;;  %v77_v27 = vld [vmem:[%s1995_s1 + $0x148] sm:$0xff]  ;;  %v76_v31 = vld [vmem:[%s1995_s1 + $0x140] sm:$0xff]  ;;  %v75_v35 = vld [vmem:[%s1995_s1 + $0x138] sm:$0xff] }
   0xd   :  { %917 = vmatpush3.msra.mxu1 %v79_v19  ;;  %883 = vmatprep.subr.mxu0 %v62_v20  ;;  %v58_v36 = vld [vmem:[%s1995_s1 + $0xb0] sm:$0xff]  ;;  %v57_v40 = vld [vmem:[%s1995_s1 + $0xa8] sm:$0xff]  ;;  %v56_v44 = vld [vmem:[%s1995_s1 + $0xa0] sm:$0xff] }
   0xe   :  { %918 = vmatprep.subr.mxu1 %v94_v21  ;;  %884 = vmatpush3.msra.mxu0 %v46_v22  ;;  %v90_v37 = vld [vmem:[%s1995_s1 + $0x1b0] sm:$0xff]  ;;  %v89_v41 = vld [vmem:[%s1995_s1 + $0x1a8] sm:$0xff]  ;;  %v88_v45 = vld [vmem:[%s1995_s1 + $0x1a0] sm:$0xff] }
   0xf   :  { %919 = vmatpush3.msra.mxu1 %v78_v23  ;;  %885 = vmatprep.subr.mxu0 %v61_v24  ;;  %v42_v38 = vld [vmem:[%s1995_s1 + $0x30] sm:$0xff]  ;;  %v41_v42 = vld [vmem:[%s1995_s1 + $0x28] sm:$0xff]  ;;  %v40_v46 = vld [vmem:[%s1995_s1 + $0x20] sm:$0xff] }
  0x10   :  { %920 = vmatprep.subr.mxu1 %v93_v25  ;;  %886 = vmatpush3.msra.mxu0 %v45_v26  ;;  %v74_v39 = vld [vmem:[%s1995_s1 + $0x130] sm:$0xff]  ;;  %v73_v43 = vld [vmem:[%s1995_s1 + $0x128] sm:$0xff]  ;;  %v72_v47 = vld [vmem:[%s1995_s1 + $0x120] sm:$0xff] }
  0x11   :  { %921 = vmatpush3.msra.mxu1 %v77_v27  ;;  %887 = vmatprep.subr.mxu0 %v60_v28  ;;  %v55_v48 = vld [vmem:[%s1995_s1 + $0x98] sm:$0xff]  ;;  %v54_v52 = vld [vmem:[%s1995_s1 + $0x90] sm:$0xff]  ;;  %v53_v56 = vld [vmem:[%s1995_s1 + $0x88] sm:$0xff] }
  0x12   :  { %922 = vmatprep.subr.mxu1 %v92_v29  ;;  %888 = vmatpush3.msra.mxu0 %v44_v30  ;;  %v87_v49 = vld [vmem:[%s1995_s1 + $0x198] sm:$0xff]  ;;  %v86_v53 = vld [vmem:[%s1995_s1 + $0x190] sm:$0xff]  ;;  %v85_v57 = vld [vmem:[%s1995_s1 + $0x188] sm:$0xff] }
  0x13   :  { %923 = vmatpush3.msra.mxu1 %v76_v31  ;;  %889 = vmatprep.subr.mxu0 %v59_v32  ;;  %v39_v50 = vld [vmem:[%s1995_s1 + $0x18] sm:$0xff]  ;;  %v38_v54 = vld [vmem:[%s1995_s1 + $0x10] sm:$0xff]  ;;  %v37_v58 = vld [vmem:[%s1995_s1 + $0x8] sm:$0xff] }
  0x14   :  { %924 = vmatprep.subr.mxu1 %v91_v33  ;;  %890 = vmatpush3.msra.mxu0 %v43_v34  ;;  %v71_v51 = vld [vmem:[%s1995_s1 + $0x118] sm:$0xff]  ;;  %v70_v55 = vld [vmem:[%s1995_s1 + $0x110] sm:$0xff]  ;;  %v69_v59 = vld [vmem:[%s1995_s1 + $0x108] sm:$0xff] }
  0x15   :  { %925 = vmatpush3.msra.mxu1 %v75_v35  ;;  %891 = vmatprep.subr.mxu0 %v58_v36  ;;  %v52_v60 = vld [vmem:[%s1995_s1 + $0x80] sm:$0xff]  ;;  %v21_v63 = vld [vmem:[%s1996_s0 + $0x8] sm:$0xff]  ;;  %v23_v1 = vld [vmem:[%s1996_s0 + $0x18] sm:$0xff] }
  0x16   :  { %926 = vmatprep.subr.mxu1 %v90_v37  ;;  %892 = vmatpush3.msra.mxu0 %v42_v38  ;;  %v84_v61 = vld [vmem:[%s1995_s1 + $0x180] sm:$0xff]  ;;  %v22_v3 = vld [vmem:[%s1996_s0 + $0x10] sm:$0xff]  ;;  %v131_v4 = vld [vmem:[%s1995_s1 + $0x2f8] sm:$0xff] }
  0x17   :  { %927 = vmatpush3.msra.mxu1 %v74_v39  ;;  %893 = vmatprep.subr.mxu0 %v57_v40  ;;  %v36_v62 = vld [vmem:[%s1995_s1] sm:$0xff]  ;;  %v163_v5 = vld [vmem:[%s1995_s1 + $0x3f8] sm:$0xff]  ;;  %v130_v8 = vld [vmem:[%s1995_s1 + $0x2f0] sm:$0xff] }
  0x18   :  { %928 = vmatprep.subr.mxu1 %v89_v41  ;;  %894 = vmatpush3.msra.mxu0 %v41_v42  ;;  %v68_v0 = vld [vmem:[%s1995_s1 + $0x100] sm:$0xff]  ;;  %v115_v6 = vld [vmem:[%s1995_s1 + $0x278] sm:$0xff]  ;;  %v162_v9 = vld [vmem:[%s1995_s1 + $0x3f0] sm:$0xff] }
  0x19   :  { %929 = vmatpush3.msra.mxu1 %v73_v43  ;;  %895 = vmatprep.subr.mxu0 %v56_v44  ;;  %v20_v2 = vld [vmem:[%s1996_s0] sm:$0xff]  ;;  %v147_v7 = vld [vmem:[%s1995_s1 + $0x378] sm:$0xff]  ;;  %v114_v10 = vld [vmem:[%s1995_s1 + $0x270] sm:$0xff] }
  0x1a   :  { %930 = vmatprep.subr.mxu1 %v88_v45  ;;  %896 = vmatpush3.msra.mxu0 %v40_v46  ;;  %v146_v11 = vld [vmem:[%s1995_s1 + $0x370] sm:$0xff]  ;;  %v129_v12 = vld [vmem:[%s1995_s1 + $0x2e8] sm:$0xff]  ;;  %v128_v16 = vld [vmem:[%s1995_s1 + $0x2e0] sm:$0xff] }
  0x1b   :  { %931 = vmatpush3.msra.mxu1 %v72_v47  ;;  %897 = vmatprep.subr.mxu0 %v55_v48  ;;  %v161_v13 = vld [vmem:[%s1995_s1 + $0x3e8] sm:$0xff]  ;;  %v160_v17 = vld [vmem:[%s1995_s1 + $0x3e0] sm:$0xff]  ;;  %v127_v20 = vld [vmem:[%s1995_s1 + $0x2d8] sm:$0xff] }
  0x1c   :  { %932 = vmatprep.subr.mxu1 %v87_v49  ;;  %898 = vmatpush3.msra.mxu0 %v39_v50  ;;  %v113_v14 = vld [vmem:[%s1995_s1 + $0x268] sm:$0xff]  ;;  %v112_v18 = vld [vmem:[%s1995_s1 + $0x260] sm:$0xff]  ;;  %v159_v21 = vld [vmem:[%s1995_s1 + $0x3d8] sm:$0xff] }
  0x1d   :  { %933 = vmatpush3.msra.mxu1 %v71_v51  ;;  %899 = vmatprep.subr.mxu0 %v54_v52  ;;  %v145_v15 = vld [vmem:[%s1995_s1 + $0x368] sm:$0xff]  ;;  %v144_v19 = vld [vmem:[%s1995_s1 + $0x360] sm:$0xff]  ;;  %v111_v22 = vld [vmem:[%s1995_s1 + $0x258] sm:$0xff] }
  0x1e   :  { %934 = vmatprep.subr.mxu1 %v86_v53  ;;  %900 = vmatpush3.msra.mxu0 %v38_v54  ;;  %v143_v23 = vld [vmem:[%s1995_s1 + $0x358] sm:$0xff]  ;;  %v126_v24 = vld [vmem:[%s1995_s1 + $0x2d0] sm:$0xff]  ;;  %v125_v28 = vld [vmem:[%s1995_s1 + $0x2c8] sm:$0xff] }
  0x1f   :  { %935 = vmatpush3.msra.mxu1 %v70_v55  ;;  %901 = vmatprep.subr.mxu0 %v53_v56  ;;  %v158_v25 = vld [vmem:[%s1995_s1 + $0x3d0] sm:$0xff]  ;;  %v157_v29 = vld [vmem:[%s1995_s1 + $0x3c8] sm:$0xff]  ;;  %v124_v32 = vld [vmem:[%s1995_s1 + $0x2c0] sm:$0xff] }
  0x20   :  { %936 = vmatprep.subr.mxu1 %v85_v57  ;;  %902 = vmatpush3.msra.mxu0 %v37_v58  ;;  %v110_v26 = vld [vmem:[%s1995_s1 + $0x250] sm:$0xff]  ;;  %v109_v30 = vld [vmem:[%s1995_s1 + $0x248] sm:$0xff]  ;;  %v156_v33 = vld [vmem:[%s1995_s1 + $0x3c0] sm:$0xff] }
  0x21   :  { %937 = vmatpush3.msra.mxu1 %v69_v59  ;;  %903 = vmatprep.subr.mxu0 %v52_v60  ;;  %v142_v27 = vld [vmem:[%s1995_s1 + $0x350] sm:$0xff]  ;;  %v141_v31 = vld [vmem:[%s1995_s1 + $0x348] sm:$0xff]  ;;  %v108_v34 = vld [vmem:[%s1995_s1 + $0x240] sm:$0xff] }
  0x22   :  { %938 = vmatprep.subr.mxu1 %v84_v61  ;;  %904 = vmatpush3.msra.mxu0 %v36_v62  ;;  %v140_v35 = vld [vmem:[%s1995_s1 + $0x340] sm:$0xff]  ;;  %v123_v36 = vld [vmem:[%s1995_s1 + $0x2b8] sm:$0xff]  ;;  %v122_v40 = vld [vmem:[%s1995_s1 + $0x2b0] sm:$0xff] }
  0x23   :  { %356 = vmatprep.mubr.f32.mxu0 %v21_v63  ;;  %939 = vmatpush3.msra.mxu1 %v68_v0  ;;  %v155_v37 = vld [vmem:[%s1995_s1 + $0x3b8] sm:$0xff]  ;;  %v154_v41 = vld [vmem:[%s1995_s1 + $0x3b0] sm:$0xff]  ;;  %v121_v44 = vld [vmem:[%s1995_s1 + $0x2a8] sm:$0xff] }
  0x24   :  { %426 = vmatprep.mubr.f32.mxu1 %v23_v1  ;;  %357 = vmatmul.mubr.f32.vlgmr.msra.gmra.mxu0 %v20_v2  ;;  %v107_v38 = vld [vmem:[%s1995_s1 + $0x238] sm:$0xff]  ;;  %v106_v42 = vld [vmem:[%s1995_s1 + $0x230] sm:$0xff]  ;;  %v153_v45 = vld [vmem:[%s1995_s1 + $0x3a8] sm:$0xff] }
  0x25   :  { %427 = vmatmul.mubr.f32.vlgmr.msra.gmra.mxu1 %v22_v3  ;;  %943 = vmatprep.subr.mxu0 %v131_v4  ;;  %v139_v39 = vld [vmem:[%s1995_s1 + $0x338] sm:$0xff]  ;;  %v138_v43 = vld [vmem:[%s1995_s1 + $0x330] sm:$0xff]  ;;  %v105_v46 = vld [vmem:[%s1995_s1 + $0x228] sm:$0xff] }
  0x26   :  { %978 = vmatprep.subr.mxu1 %v163_v5  ;;  %944 = vmatpush3.msra.mxu0 %v115_v6  ;;  %v137_v47 = vld [vmem:[%s1995_s1 + $0x328] sm:$0xff]  ;;  %v120_v48 = vld [vmem:[%s1995_s1 + $0x2a0] sm:$0xff]  ;;  %v119_v52 = vld [vmem:[%s1995_s1 + $0x298] sm:$0xff] }
  0x27   :  { %979 = vmatpush3.msra.mxu1 %v147_v7  ;;  %945 = vmatprep.subr.mxu0 %v130_v8  ;;  %v152_v49 = vld [vmem:[%s1995_s1 + $0x3a0] sm:$0xff]  ;;  %v151_v53 = vld [vmem:[%s1995_s1 + $0x398] sm:$0xff]  ;;  %v118_v56 = vld [vmem:[%s1995_s1 + $0x290] sm:$0xff] }
  0x28   :  { %980 = vmatprep.subr.mxu1 %v162_v9  ;;  %946 = vmatpush3.msra.mxu0 %v114_v10  ;;  %v104_v50 = vld [vmem:[%s1995_s1 + $0x220] sm:$0xff]  ;;  %v103_v54 = vld [vmem:[%s1995_s1 + $0x218] sm:$0xff]  ;;  %v150_v57 = vld [vmem:[%s1995_s1 + $0x390] sm:$0xff] }
  0x29   :  { %981 = vmatpush3.msra.mxu1 %v146_v11  ;;  %947 = vmatprep.subr.mxu0 %v129_v12  ;;  %v136_v51 = vld [vmem:[%s1995_s1 + $0x320] sm:$0xff]  ;;  %v135_v55 = vld [vmem:[%s1995_s1 + $0x318] sm:$0xff]  ;;  %v102_v58 = vld [vmem:[%s1995_s1 + $0x210] sm:$0xff] }
  0x2a   :  { %982 = vmatprep.subr.mxu1 %v161_v13  ;;  %948 = vmatpush3.msra.mxu0 %v113_v14  ;;  %v134_v59 = vld [vmem:[%s1995_s1 + $0x310] sm:$0xff]  ;;  %v117_v60 = vld [vmem:[%s1995_s1 + $0x288] sm:$0xff]  ;;  %v116_v0 = vld [vmem:[%s1995_s1 + $0x280] sm:$0xff] }
  0x2b   :  { %983 = vmatpush3.msra.mxu1 %v145_v15  ;;  %949 = vmatprep.subr.mxu0 %v128_v16  ;;  %v149_v61 = vld [vmem:[%s1995_s1 + $0x388] sm:$0xff]  ;;  %v148_v1 = vld [vmem:[%s1995_s1 + $0x380] sm:$0xff]  ;;  %v27_v6 = vld [vmem:[%s1996_s0 + $0x38] sm:$0xff] }
  0x2c   :  { %984 = vmatprep.subr.mxu1 %v160_v17  ;;  %950 = vmatpush3.msra.mxu0 %v112_v18  ;;  %v101_v62 = vld [vmem:[%s1995_s1 + $0x208] sm:$0xff]  ;;  %v100_v2 = vld [vmem:[%s1995_s1 + $0x200] sm:$0xff]  ;;  %v195_v7 = vld [vmem:[%s1995_s1 + $0x4f8] sm:$0xff] }
  0x2d   :  { %985 = vmatpush3.msra.mxu1 %v144_v19  ;;  %951 = vmatprep.subr.mxu0 %v127_v20  ;;  %v133_v63 = vld [vmem:[%s1995_s1 + $0x308] sm:$0xff]  ;;  %v132_v4 = vld [vmem:[%s1995_s1 + $0x300] sm:$0xff]  ;;  %v227_v8 = vld [vmem:[%s1995_s1 + $0x5f8] sm:$0xff] }
  0x2e   :  { %986 = vmatprep.subr.mxu1 %v159_v21  ;;  %952 = vmatpush3.msra.mxu0 %v111_v22  ;;  %v25_v3 = vld [vmem:[%s1996_s0 + $0x28] sm:$0xff]  ;;  %v24_v5 = vld [vmem:[%s1996_s0 + $0x20] sm:$0xff]  ;;  %v26_v9 = vld [vmem:[%s1996_s0 + $0x30] sm:$0xff] }
  0x2f   :  { %987 = vmatpush3.msra.mxu1 %v143_v23  ;;  %953 = vmatprep.subr.mxu0 %v126_v24  ;;  %v179_v10 = vld [vmem:[%s1995_s1 + $0x478] sm:$0xff]  ;;  %v194_v12 = vld [vmem:[%s1995_s1 + $0x4f0] sm:$0xff]  ;;  %v193_v16 = vld [vmem:[%s1995_s1 + $0x4e8] sm:$0xff] }
  0x30   :  { %988 = vmatprep.subr.mxu1 %v158_v25  ;;  %954 = vmatpush3.msra.mxu0 %v110_v26  ;;  %v211_v11 = vld [vmem:[%s1995_s1 + $0x578] sm:$0xff]  ;;  %v226_v13 = vld [vmem:[%s1995_s1 + $0x5f0] sm:$0xff]  ;;  %v225_v17 = vld [vmem:[%s1995_s1 + $0x5e8] sm:$0xff] }
  0x31   :  { %989 = vmatpush3.msra.mxu1 %v142_v27  ;;  %955 = vmatprep.subr.mxu0 %v125_v28  ;;  %v178_v14 = vld [vmem:[%s1995_s1 + $0x470] sm:$0xff]  ;;  %v177_v18 = vld [vmem:[%s1995_s1 + $0x468] sm:$0xff]  ;;  %v192_v20 = vld [vmem:[%s1995_s1 + $0x4e0] sm:$0xff] }
  0x32   :  { %990 = vmatprep.subr.mxu1 %v157_v29  ;;  %956 = vmatpush3.msra.mxu0 %v109_v30  ;;  %v210_v15 = vld [vmem:[%s1995_s1 + $0x570] sm:$0xff]  ;;  %v209_v19 = vld [vmem:[%s1995_s1 + $0x568] sm:$0xff]  ;;  %v224_v21 = vld [vmem:[%s1995_s1 + $0x5e0] sm:$0xff] }
  0x33   :  { %991 = vmatpush3.msra.mxu1 %v141_v31  ;;  %957 = vmatprep.subr.mxu0 %v124_v32  ;;  %v176_v22 = vld [vmem:[%s1995_s1 + $0x460] sm:$0xff]  ;;  %v191_v24 = vld [vmem:[%s1995_s1 + $0x4d8] sm:$0xff]  ;;  %v190_v28 = vld [vmem:[%s1995_s1 + $0x4d0] sm:$0xff] }
  0x34   :  { %992 = vmatprep.subr.mxu1 %v156_v33  ;;  %958 = vmatpush3.msra.mxu0 %v108_v34  ;;  %v208_v23 = vld [vmem:[%s1995_s1 + $0x560] sm:$0xff]  ;;  %v223_v25 = vld [vmem:[%s1995_s1 + $0x5d8] sm:$0xff]  ;;  %v222_v29 = vld [vmem:[%s1995_s1 + $0x5d0] sm:$0xff] }
  0x35   :  { %993 = vmatpush3.msra.mxu1 %v140_v35  ;;  %959 = vmatprep.subr.mxu0 %v123_v36  ;;  %v175_v26 = vld [vmem:[%s1995_s1 + $0x458] sm:$0xff]  ;;  %v174_v30 = vld [vmem:[%s1995_s1 + $0x450] sm:$0xff]  ;;  %v189_v32 = vld [vmem:[%s1995_s1 + $0x4c8] sm:$0xff] }
  0x36   :  { %994 = vmatprep.subr.mxu1 %v155_v37  ;;  %960 = vmatpush3.msra.mxu0 %v107_v38  ;;  %v207_v27 = vld [vmem:[%s1995_s1 + $0x558] sm:$0xff]  ;;  %v206_v31 = vld [vmem:[%s1995_s1 + $0x550] sm:$0xff]  ;;  %v221_v33 = vld [vmem:[%s1995_s1 + $0x5c8] sm:$0xff] }
  0x37   :  { %995 = vmatpush3.msra.mxu1 %v139_v39  ;;  %961 = vmatprep.subr.mxu0 %v122_v40  ;;  %v173_v34 = vld [vmem:[%s1995_s1 + $0x448] sm:$0xff]  ;;  %v188_v36 = vld [vmem:[%s1995_s1 + $0x4c0] sm:$0xff]  ;;  %v187_v40 = vld [vmem:[%s1995_s1 + $0x4b8] sm:$0xff] }
  0x38   :  { %996 = vmatprep.subr.mxu1 %v154_v41  ;;  %962 = vmatpush3.msra.mxu0 %v106_v42  ;;  %v205_v35 = vld [vmem:[%s1995_s1 + $0x548] sm:$0xff]  ;;  %v220_v37 = vld [vmem:[%s1995_s1 + $0x5c0] sm:$0xff]  ;;  %v219_v41 = vld [vmem:[%s1995_s1 + $0x5b8] sm:$0xff] }
  0x39   :  { %997 = vmatpush3.msra.mxu1 %v138_v43  ;;  %963 = vmatprep.subr.mxu0 %v121_v44  ;;  %v172_v38 = vld [vmem:[%s1995_s1 + $0x440] sm:$0xff]  ;;  %v171_v42 = vld [vmem:[%s1995_s1 + $0x438] sm:$0xff]  ;;  %v186_v44 = vld [vmem:[%s1995_s1 + $0x4b0] sm:$0xff] }
  0x3a   :  { %998 = vmatprep.subr.mxu1 %v153_v45  ;;  %964 = vmatpush3.msra.mxu0 %v105_v46  ;;  %v204_v39 = vld [vmem:[%s1995_s1 + $0x540] sm:$0xff]  ;;  %v203_v43 = vld [vmem:[%s1995_s1 + $0x538] sm:$0xff]  ;;  %v218_v45 = vld [vmem:[%s1995_s1 + $0x5b0] sm:$0xff] }
  0x3b   :  { %999 = vmatpush3.msra.mxu1 %v137_v47  ;;  %965 = vmatprep.subr.mxu0 %v120_v48  ;;  %v170_v46 = vld [vmem:[%s1995_s1 + $0x430] sm:$0xff]  ;;  %v185_v48 = vld [vmem:[%s1995_s1 + $0x4a8] sm:$0xff] }
  0x3c   :  { %1000 = vmatprep.subr.mxu1 %v152_v49  ;;  %966 = vmatpush3.msra.mxu0 %v104_v50  ;;  %v202_v47 = vld [vmem:[%s1995_s1 + $0x530] sm:$0xff]  ;;  %v217_v49 = vld [vmem:[%s1995_s1 + $0x5a8] sm:$0xff] }
  0x3d   :  { %1001 = vmatpush3.msra.mxu1 %v136_v51  ;;  %967 = vmatprep.subr.mxu0 %v119_v52  ;;  %v169_v50 = vld [vmem:[%s1995_s1 + $0x428] sm:$0xff]  ;;  %v184_v52 = vld [vmem:[%s1995_s1 + $0x4a0] sm:$0xff] }
  0x3e   :  { %1002 = vmatprep.subr.mxu1 %v151_v53  ;;  %968 = vmatpush3.msra.mxu0 %v103_v54  ;;  %v201_v51 = vld [vmem:[%s1995_s1 + $0x528] sm:$0xff]  ;;  %v216_v53 = vld [vmem:[%s1995_s1 + $0x5a0] sm:$0xff] }
  0x3f   :  { %1003 = vmatpush3.msra.mxu1 %v135_v55  ;;  %969 = vmatprep.subr.mxu0 %v118_v56  ;;  %v168_v54 = vld [vmem:[%s1995_s1 + $0x420] sm:$0xff]  ;;  %v183_v56 = vld [vmem:[%s1995_s1 + $0x498] sm:$0xff] }
  0x40   :  { %1004 = vmatprep.subr.mxu1 %v150_v57  ;;  %970 = vmatpush3.msra.mxu0 %v102_v58  ;;  %v200_v55 = vld [vmem:[%s1995_s1 + $0x520] sm:$0xff]  ;;  %v215_v57 = vld [vmem:[%s1995_s1 + $0x598] sm:$0xff] }
  0x41   :  { %1005 = vmatpush3.msra.mxu1 %v134_v59  ;;  %971 = vmatprep.subr.mxu0 %v117_v60  ;;  %v167_v58 = vld [vmem:[%s1995_s1 + $0x418] sm:$0xff]  ;;  %v182_v60 = vld [vmem:[%s1995_s1 + $0x490] sm:$0xff] }
  0x42   :  { %1006 = vmatprep.subr.mxu1 %v149_v61  ;;  %972 = vmatpush3.msra.mxu0 %v101_v62  ;;  %v199_v59 = vld [vmem:[%s1995_s1 + $0x518] sm:$0xff]  ;;  %v214_v61 = vld [vmem:[%s1995_s1 + $0x590] sm:$0xff] }
  0x43   :  { %1007 = vmatpush3.msra.mxu1 %v133_v63  ;;  %973 = vmatprep.subr.mxu0 %v116_v0  ;;  %v166_v62 = vld [vmem:[%s1995_s1 + $0x410] sm:$0xff]  ;;  %v181_v0 = vld [vmem:[%s1995_s1 + $0x488] sm:$0xff] }
  0x44   :  { %1008 = vmatprep.subr.mxu1 %v148_v1  ;;  %974 = vmatpush3.msra.mxu0 %v100_v2  ;;  %v198_v63 = vld [vmem:[%s1995_s1 + $0x510] sm:$0xff]  ;;  %v213_v1 = vld [vmem:[%s1995_s1 + $0x588] sm:$0xff] }
  0x45   :  { %496 = vmatprep.mubr.f32.mxu0 %v25_v3  ;;  %1009 = vmatpush3.msra.mxu1 %v132_v4  ;;  %v165_v2 = vld [vmem:[%s1995_s1 + $0x408] sm:$0xff]  ;;  %v180_v4 = vld [vmem:[%s1995_s1 + $0x480] sm:$0xff] }
  0x46   :  { %497 = vmatmul.mubr.f32.vlgmr.msra.gmra.mxu0 %v24_v5  ;;  %566 = vmatprep.mubr.f32.mxu1 %v27_v6  ;;  %v197_v3 = vld [vmem:[%s1995_s1 + $0x508] sm:$0xff]  ;;  %v212_v5 = vld [vmem:[%s1995_s1 + $0x580] sm:$0xff] }
  0x47   :  { %1013 = vmatprep.subr.mxu0 %v195_v7  ;;  %1048 = vmatprep.subr.mxu1 %v227_v8  ;;  %v164_v6 = vld [vmem:[%s1995_s1 + $0x400] sm:$0xff]  ;;  %v29_v7 = vld [vmem:[%s1996_s0 + $0x48] sm:$0xff] }
  0x48   :  { %567 = vmatmul.mubr.f32.vlgmr.msra.gmra.mxu1 %v26_v9  ;;  %1014 = vmatpush3.msra.mxu0 %v179_v10  ;;  %v196_v8 = vld [vmem:[%s1995_s1 + $0x500] sm:$0xff]  ;;  %v31_v10 = vld [vmem:[%s1996_s0 + $0x58] sm:$0xff] }
  0x49   :  { %1049 = vmatpush3.msra.mxu1 %v211_v11  ;;  %1015 = vmatprep.subr.mxu0 %v194_v12  ;;  %v28_v9 = vld [vmem:[%s1996_s0 + $0x40] sm:$0xff]  ;;  %v259_v11 = vld [vmem:[%s1995_s1 + $0x6f8] sm:$0xff] }
  0x4a   :  { %1050 = vmatprep.subr.mxu1 %v226_v13  ;;  %1016 = vmatpush3.msra.mxu0 %v178_v14  ;;  %v291_v12 = vld [vmem:[%s1995_s1 + $0x7f8] sm:$0xff]  ;;  %v30_v13 = vld [vmem:[%s1996_s0 + $0x50] sm:$0xff] }
  0x4b   :  { %1051 = vmatpush3.msra.mxu1 %v210_v15  ;;  %1017 = vmatprep.subr.mxu0 %v193_v16  ;;  %v243_v14 = vld [vmem:[%s1995_s1 + $0x678] sm:$0xff]  ;;  %v258_v16 = vld [vmem:[%s1995_s1 + $0x6f0] sm:$0xff] }
  0x4c   :  { %1052 = vmatprep.subr.mxu1 %v225_v17  ;;  %1018 = vmatpush3.msra.mxu0 %v177_v18  ;;  %v275_v15 = vld [vmem:[%s1995_s1 + $0x778] sm:$0xff]  ;;  %v290_v17 = vld [vmem:[%s1995_s1 + $0x7f0] sm:$0xff] }
  0x4d   :  { %1053 = vmatpush3.msra.mxu1 %v209_v19  ;;  %1019 = vmatprep.subr.mxu0 %v192_v20  ;;  %v242_v18 = vld [vmem:[%s1995_s1 + $0x670] sm:$0xff]  ;;  %v257_v20 = vld [vmem:[%s1995_s1 + $0x6e8] sm:$0xff] }
  0x4e   :  { %1054 = vmatprep.subr.mxu1 %v224_v21  ;;  %1020 = vmatpush3.msra.mxu0 %v176_v22  ;;  %v274_v19 = vld [vmem:[%s1995_s1 + $0x770] sm:$0xff]  ;;  %v289_v21 = vld [vmem:[%s1995_s1 + $0x7e8] sm:$0xff] }
  0x4f   :  { %1055 = vmatpush3.msra.mxu1 %v208_v23  ;;  %1021 = vmatprep.subr.mxu0 %v191_v24  ;;  %v241_v22 = vld [vmem:[%s1995_s1 + $0x668] sm:$0xff]  ;;  %v256_v24 = vld [vmem:[%s1995_s1 + $0x6e0] sm:$0xff] }
  0x50   :  { %1056 = vmatprep.subr.mxu1 %v223_v25  ;;  %1022 = vmatpush3.msra.mxu0 %v175_v26  ;;  %v273_v23 = vld [vmem:[%s1995_s1 + $0x768] sm:$0xff]  ;;  %v288_v25 = vld [vmem:[%s1995_s1 + $0x7e0] sm:$0xff] }
  0x51   :  { %1057 = vmatpush3.msra.mxu1 %v207_v27  ;;  %1023 = vmatprep.subr.mxu0 %v190_v28  ;;  %v240_v26 = vld [vmem:[%s1995_s1 + $0x660] sm:$0xff]  ;;  %v255_v28 = vld [vmem:[%s1995_s1 + $0x6d8] sm:$0xff] }
  0x52   :  { %1058 = vmatprep.subr.mxu1 %v222_v29  ;;  %1024 = vmatpush3.msra.mxu0 %v174_v30  ;;  %v272_v27 = vld [vmem:[%s1995_s1 + $0x760] sm:$0xff]  ;;  %v287_v29 = vld [vmem:[%s1995_s1 + $0x7d8] sm:$0xff] }
  0x53   :  { %1059 = vmatpush3.msra.mxu1 %v206_v31  ;;  %1025 = vmatprep.subr.mxu0 %v189_v32  ;;  %v239_v30 = vld [vmem:[%s1995_s1 + $0x658] sm:$0xff]  ;;  %v254_v32 = vld [vmem:[%s1995_s1 + $0x6d0] sm:$0xff] }
  0x54   :  { %1060 = vmatprep.subr.mxu1 %v221_v33  ;;  %1026 = vmatpush3.msra.mxu0 %v173_v34  ;;  %v271_v31 = vld [vmem:[%s1995_s1 + $0x758] sm:$0xff]  ;;  %v286_v33 = vld [vmem:[%s1995_s1 + $0x7d0] sm:$0xff] }
  0x55   :  { %1061 = vmatpush3.msra.mxu1 %v205_v35  ;;  %1027 = vmatprep.subr.mxu0 %v188_v36  ;;  %v238_v34 = vld [vmem:[%s1995_s1 + $0x650] sm:$0xff]  ;;  %v253_v36 = vld [vmem:[%s1995_s1 + $0x6c8] sm:$0xff] }
  0x56   :  { %1062 = vmatprep.subr.mxu1 %v220_v37  ;;  %1028 = vmatpush3.msra.mxu0 %v172_v38  ;;  %v270_v35 = vld [vmem:[%s1995_s1 + $0x750] sm:$0xff]  ;;  %v285_v37 = vld [vmem:[%s1995_s1 + $0x7c8] sm:$0xff] }
  0x57   :  { %1063 = vmatpush3.msra.mxu1 %v204_v39  ;;  %1029 = vmatprep.subr.mxu0 %v187_v40  ;;  %v237_v38 = vld [vmem:[%s1995_s1 + $0x648] sm:$0xff]  ;;  %v252_v40 = vld [vmem:[%s1995_s1 + $0x6c0] sm:$0xff] }
  0x58   :  { %1064 = vmatprep.subr.mxu1 %v219_v41  ;;  %1030 = vmatpush3.msra.mxu0 %v171_v42  ;;  %v269_v39 = vld [vmem:[%s1995_s1 + $0x748] sm:$0xff]  ;;  %v284_v41 = vld [vmem:[%s1995_s1 + $0x7c0] sm:$0xff] }
  0x59   :  { %1065 = vmatpush3.msra.mxu1 %v203_v43  ;;  %1031 = vmatprep.subr.mxu0 %v186_v44  ;;  %v236_v42 = vld [vmem:[%s1995_s1 + $0x640] sm:$0xff]  ;;  %v251_v44 = vld [vmem:[%s1995_s1 + $0x6b8] sm:$0xff] }
  0x5a   :  { %1066 = vmatprep.subr.mxu1 %v218_v45  ;;  %1032 = vmatpush3.msra.mxu0 %v170_v46  ;;  %v268_v43 = vld [vmem:[%s1995_s1 + $0x740] sm:$0xff]  ;;  %v283_v45 = vld [vmem:[%s1995_s1 + $0x7b8] sm:$0xff] }
  0x5b   :  { %1067 = vmatpush3.msra.mxu1 %v202_v47  ;;  %1033 = vmatprep.subr.mxu0 %v185_v48  ;;  %v235_v46 = vld [vmem:[%s1995_s1 + $0x638] sm:$0xff]  ;;  %v250_v48 = vld [vmem:[%s1995_s1 + $0x6b0] sm:$0xff] }
  0x5c   :  { %1068 = vmatprep.subr.mxu1 %v217_v49  ;;  %1034 = vmatpush3.msra.mxu0 %v169_v50  ;;  %v267_v47 = vld [vmem:[%s1995_s1 + $0x738] sm:$0xff]  ;;  %v282_v49 = vld [vmem:[%s1995_s1 + $0x7b0] sm:$0xff] }
  0x5d   :  { %1069 = vmatpush3.msra.mxu1 %v201_v51  ;;  %1035 = vmatprep.subr.mxu0 %v184_v52  ;;  %v234_v50 = vld [vmem:[%s1995_s1 + $0x630] sm:$0xff]  ;;  %v249_v52 = vld [vmem:[%s1995_s1 + $0x6a8] sm:$0xff] }
  0x5e   :  { %1070 = vmatprep.subr.mxu1 %v216_v53  ;;  %1036 = vmatpush3.msra.mxu0 %v168_v54  ;;  %v266_v51 = vld [vmem:[%s1995_s1 + $0x730] sm:$0xff]  ;;  %v281_v53 = vld [vmem:[%s1995_s1 + $0x7a8] sm:$0xff] }
  0x5f   :  { %1071 = vmatpush3.msra.mxu1 %v200_v55  ;;  %1037 = vmatprep.subr.mxu0 %v183_v56  ;;  %v233_v54 = vld [vmem:[%s1995_s1 + $0x628] sm:$0xff]  ;;  %v248_v56 = vld [vmem:[%s1995_s1 + $0x6a0] sm:$0xff] }
  0x60   :  { %1072 = vmatprep.subr.mxu1 %v215_v57  ;;  %1038 = vmatpush3.msra.mxu0 %v167_v58  ;;  %v265_v55 = vld [vmem:[%s1995_s1 + $0x728] sm:$0xff]  ;;  %v280_v57 = vld [vmem:[%s1995_s1 + $0x7a0] sm:$0xff] }
  0x61   :  { %1073 = vmatpush3.msra.mxu1 %v199_v59  ;;  %1039 = vmatprep.subr.mxu0 %v182_v60  ;;  %v232_v58 = vld [vmem:[%s1995_s1 + $0x620] sm:$0xff]  ;;  %v247_v60 = vld [vmem:[%s1995_s1 + $0x698] sm:$0xff] }
  0x62   :  { %1074 = vmatprep.subr.mxu1 %v214_v61  ;;  %1040 = vmatpush3.msra.mxu0 %v166_v62  ;;  %v264_v59 = vld [vmem:[%s1995_s1 + $0x720] sm:$0xff]  ;;  %v279_v61 = vld [vmem:[%s1995_s1 + $0x798] sm:$0xff] }
  0x63   :  { %1075 = vmatpush3.msra.mxu1 %v198_v63  ;;  %1041 = vmatprep.subr.mxu0 %v181_v0  ;;  %v231_v62 = vld [vmem:[%s1995_s1 + $0x618] sm:$0xff]  ;;  %v246_v0 = vld [vmem:[%s1995_s1 + $0x690] sm:$0xff] }
  0x64   :  { %1076 = vmatprep.subr.mxu1 %v213_v1  ;;  %1042 = vmatpush3.msra.mxu0 %v165_v2  ;;  %v263_v63 = vld [vmem:[%s1995_s1 + $0x718] sm:$0xff]  ;;  %v278_v1 = vld [vmem:[%s1995_s1 + $0x790] sm:$0xff] }
  0x65   :  { %1077 = vmatpush3.msra.mxu1 %v197_v3  ;;  %1043 = vmatprep.subr.mxu0 %v180_v4  ;;  %v230_v2 = vld [vmem:[%s1995_s1 + $0x610] sm:$0xff]  ;;  %v245_v4 = vld [vmem:[%s1995_s1 + $0x688] sm:$0xff] }
  0x66   :  { %1078 = vmatprep.subr.mxu1 %v212_v5  ;;  %1044 = vmatpush3.msra.mxu0 %v164_v6  ;;  %v262_v3 = vld [vmem:[%s1995_s1 + $0x710] sm:$0xff]  ;;  %v277_v5 = vld [vmem:[%s1995_s1 + $0x788] sm:$0xff] }
  0x67   :  { %636 = vmatprep.mubr.f32.mxu0 %v29_v7  ;;  %1079 = vmatpush3.msra.mxu1 %v196_v8  ;;  %v229_v6 = vld [vmem:[%s1995_s1 + $0x608] sm:$0xff]  ;;  %v244_v8 = vld [vmem:[%s1995_s1 + $0x680] sm:$0xff] }
  0x68   :  { %637 = vmatmul.mubr.f32.vlgmr.msra.gmra.mxu0 %v28_v9  ;;  %706 = vmatprep.mubr.f32.mxu1 %v31_v10  ;;  %v261_v7 = vld [vmem:[%s1995_s1 + $0x708] sm:$0xff]  ;;  %v276_v9 = vld [vmem:[%s1995_s1 + $0x780] sm:$0xff] }
  0x69   :  { %1083 = vmatprep.subr.mxu0 %v259_v11  ;;  %1118 = vmatprep.subr.mxu1 %v291_v12  ;;  %v228_v10 = vld [vmem:[%s1995_s1 + $0x600] sm:$0xff]  ;;  %v33_v11 = vld [vmem:[%s1996_s0 + $0x68] sm:$0xff] }
  0x6a   :  { %707 = vmatmul.mubr.f32.vlgmr.msra.gmra.mxu1 %v30_v13  ;;  %1084 = vmatpush3.msra.mxu0 %v243_v14  ;;  %v260_v12 = vld [vmem:[%s1995_s1 + $0x700] sm:$0xff]  ;;  %v35_v13 = vld [vmem:[%s1996_s0 + $0x78] sm:$0xff] }
  0x6b   :  { %1119 = vmatpush3.msra.mxu1 %v275_v15  ;;  %1085 = vmatprep.subr.mxu0 %v258_v16  ;;  %v32_v14 = vld [vmem:[%s1996_s0 + $0x60] sm:$0xff]  ;;  %v34_v15 = vld [vmem:[%s1996_s0 + $0x70] sm:$0xff] }
  0x6c   :  { %1120 = vmatprep.subr.mxu1 %v290_v17  ;;  %1086 = vmatpush3.msra.mxu0 %v242_v18 }
  0x6d   :  { %1121 = vmatpush3.msra.mxu1 %v274_v19  ;;  %1087 = vmatprep.subr.mxu0 %v257_v20 }
  0x6e   :  { %1122 = vmatprep.subr.mxu1 %v289_v21  ;;  %1088 = vmatpush3.msra.mxu0 %v241_v22 }
  0x6f   :  { %1123 = vmatpush3.msra.mxu1 %v273_v23  ;;  %1089 = vmatprep.subr.mxu0 %v256_v24 }
  0x70   :  { %1124 = vmatprep.subr.mxu1 %v288_v25  ;;  %1090 = vmatpush3.msra.mxu0 %v240_v26 }
  0x71   :  { %1125 = vmatpush3.msra.mxu1 %v272_v27  ;;  %1091 = vmatprep.subr.mxu0 %v255_v28 }
  0x72   :  { %1126 = vmatprep.subr.mxu1 %v287_v29  ;;  %1092 = vmatpush3.msra.mxu0 %v239_v30 }
  0x73   :  { %1127 = vmatpush3.msra.mxu1 %v271_v31  ;;  %1093 = vmatprep.subr.mxu0 %v254_v32 }
  0x74   :  { %1128 = vmatprep.subr.mxu1 %v286_v33  ;;  %1094 = vmatpush3.msra.mxu0 %v238_v34 }
  0x75   :  { %1129 = vmatpush3.msra.mxu1 %v270_v35  ;;  %1095 = vmatprep.subr.mxu0 %v253_v36 }
  0x76   :  { %1130 = vmatprep.subr.mxu1 %v285_v37  ;;  %1096 = vmatpush3.msra.mxu0 %v237_v38 }
  0x77   :  { %1131 = vmatpush3.msra.mxu1 %v269_v39  ;;  %1097 = vmatprep.subr.mxu0 %v252_v40 }
  0x78   :  { %1132 = vmatprep.subr.mxu1 %v284_v41  ;;  %1098 = vmatpush3.msra.mxu0 %v236_v42 }
  0x79   :  { %1133 = vmatpush3.msra.mxu1 %v268_v43  ;;  %1099 = vmatprep.subr.mxu0 %v251_v44 }
  0x7a   :  { %1134 = vmatprep.subr.mxu1 %v283_v45  ;;  %1100 = vmatpush3.msra.mxu0 %v235_v46  ;;  %v872_v46 = vld [vmem:[%s1997_s2] ss:$0 sm:$0xff] }
  0x7b   :  { %1135 = vmatpush3.msra.mxu1 %v267_v47  ;;  %1101 = vmatprep.subr.mxu0 %v250_v48 }
  0x7c   :  { %1136 = vmatprep.subr.mxu1 %v282_v49  ;;  %1102 = vmatpush3.msra.mxu0 %v234_v50 }
  0x7d   :  { %1137 = vmatpush3.msra.mxu1 %v266_v51  ;;  %1103 = vmatprep.subr.mxu0 %v249_v52 }
  0x7e   :  { %1138 = vmatprep.subr.mxu1 %v281_v53  ;;  %1104 = vmatpush3.msra.mxu0 %v233_v54 }
  0x7f   :  { %1139 = vmatpush3.msra.mxu1 %v265_v55  ;;  %1105 = vmatprep.subr.mxu0 %v248_v56 }
  0x80   :  { %1140 = vmatprep.subr.mxu1 %v280_v57  ;;  %1106 = vmatpush3.msra.mxu0 %v232_v58 }
  0x81   :  { %1141 = vmatpush3.msra.mxu1 %v264_v59  ;;  %1107 = vmatprep.subr.mxu0 %v247_v60 }
  0x82   :  { %1142 = vmatprep.subr.mxu1 %v279_v61  ;;  %1108 = vmatpush3.msra.mxu0 %v231_v62 }
  0x83   :  { %1143 = vmatpush3.msra.mxu1 %v263_v63  ;;  %1109 = vmatprep.subr.mxu0 %v246_v0 }
  0x84   :  { %1144 = vmatprep.subr.mxu1 %v278_v1  ;;  %1110 = vmatpush3.msra.mxu0 %v230_v2 }
  0x85   :  { %1145 = vmatpush3.msra.mxu1 %v262_v3  ;;  %1111 = vmatprep.subr.mxu0 %v245_v4 }
  0x86   :  { %1146 = vmatprep.subr.mxu1 %v277_v5  ;;  %1112 = vmatpush3.msra.mxu0 %v229_v6 }
  0x87   :  { %1147 = vmatpush3.msra.mxu1 %v261_v7  ;;  %1113 = vmatprep.subr.mxu0 %v244_v8 }
  0x88   :  { %1148 = vmatprep.subr.mxu1 %v276_v9  ;;  %1114 = vmatpush3.msra.mxu0 %v228_v10 }
  0x89   :  { %776 = vmatprep.mubr.f32.mxu0 %v33_v11  ;;  %1149 = vmatpush3.msra.mxu1 %v260_v12 }
  0x8a   :  { %846 = vmatprep.mubr.f32.mxu1 %v35_v13  ;;  %777 = vmatmul.mubr.f32.vlgmr.msra.gmra.mxu0 %v32_v14 }
  0x8b   :  { %847 = vmatmul.mubr.f32.vlgmr.msra.gmra.mxu1 %v34_v15 }
  0xe4   :  { %v905_v16 = vpop.f32.mrf.mxu0 }
  0xe5   :  { %v940_v17 = vpop.f32.mrf.mxu1 }
  0xe6   :  { %v906_v18 = vpop.f32.mrf.mxu0 }
  0xe7   :  { %v941_v20 = vpop.f32.mrf.mxu1  ;;  %v907_v23 = vadd.f32 %v906_v18, %v905_v16 }
  0xe8   :  { %v942_v24 = vadd.f32 %v941_v20, %v940_v17 }
  0xea   :  { %v429_v28 = vadd.f32 %v942_v24, %v907_v23 }
 0x106   :  { %v975_v19 = vpop.f32.mrf.mxu0 }
 0x108   :  { %v1010_v21 = vpop.f32.mrf.mxu1  ;;  %v976_v22 = vpop.f32.mrf.mxu0 }
 0x109   :  { %v977_v26 = vadd.f32 %v976_v22, %v975_v19 }
 0x10a   :  { %v1011_v27 = vpop.f32.mrf.mxu1 }
 0x10b   :  { %v499_v31 = vadd.f32 %v977_v26, %v429_v28  ;;  %v1012_v32 = vadd.f32 %v1011_v27, %v1010_v21 }
 0x10d   :  { %v569_v35 = vadd.f32 %v1012_v32, %v499_v31 }
 0x128   :  { %v1045_v25 = vpop.f32.mrf.mxu0 }
 0x12a   :  { %v1080_v29 = vpop.f32.mrf.mxu1  ;;  %v1046_v30 = vpop.f32.mrf.mxu0 }
 0x12b   :  { %v1047_v33 = vadd.f32 %v1046_v30, %v1045_v25 }
 0x12c   :  { %v1081_v34 = vpop.f32.mrf.mxu1 }
 0x12d   :  { %v639_v36 = vadd.f32 %v1047_v33, %v569_v35  ;;  %v1082_v37 = vadd.f32 %v1081_v34, %v1080_v29 }
 0x12f   :  { %v709_v42 = vadd.f32 %v1082_v37, %v639_v36 }
 0x14a   :  { %v1115_v38 = vpop.f32.mrf.mxu0 }
 0x14b   :  { %v1150_v39 = vpop.f32.mrf.mxu1 }
 0x14c   :  { %v1116_v40 = vpop.f32.mrf.mxu0 }
 0x14d   :  { %v1151_v41 = vpop.f32.mrf.mxu1  ;;  %v1117_v43 = vadd.f32 %v1116_v40, %v1115_v38 }
 0x14e   :  { %v1152_v45 = vadd.f32 %v1151_v41, %v1150_v39 }
 0x14f   :  { %v779_v44 = vadd.f32 %v1117_v43, %v709_v42 }
 0x151   :  { %v849_v47 = vadd.f32 %v1152_v45, %v779_v44 }
 0x153   :  { %v865_v48 = vadd.f32 %v872_v46, %v849_v47 }
 0x155   :  { %v866_v49 = vmax.f32 %v865_v48, 0.0 }
 0x157   :  { %867 = vst [vmem:[%s1998_s3] sm:$0xff] %v866_v49 }

// kernel: forward.11
= control target key start
LH: loop header
LB: loop body
LE: loop exit
PB: predicated region body
PF: predicated region fallthrough
CT: control target
= control target key end

     0   :  { %v181_v0 = vmov 0.0   ;;  %vm182_vm0 = vmmov 0   ;;  %s260_s1 = inlined_call_operand.vmem [shape: f32[128,128], index: 1, kind: input, shape index: {}]   ;;  %s261_s0 = inlined_call_operand.vmem [shape: f32[8,128], index: 0, kind: input, shape index: {}]   ;;  %s262_s2 = inlined_call_operand.vmem [shape: f32[1,128], index: 2, kind: input, shape index: {}]   ;;  %s263_s3 = inlined_call_operand.vmem [shape: f32[8,128], index: 3, kind: output, shape index: {}]  }
   0x1   :  { %144 = vmatprep.subr.mxu0 %v181_v0  ;;  %v36_v1 = vld [vmem:[%s260_s1 + $0x78] sm:$0xff]  ;;  %v35_v2 = vld [vmem:[%s260_s1 + $0x70] sm:$0xff]  ;;  %176 = vmatprep.mubr.msk.f32.mxu0 %vm182_vm0, %v181_v0  ;;  %v34_v3 = vld [vmem:[%s260_s1 + $0x68] sm:$0xff] }
   0x2   :  { %145 = vmatpush3.msra.mxu0 %v36_v1  ;;  %v33_v4 = vld [vmem:[%s260_s1 + $0x60] sm:$0xff]  ;;  %v32_v5 = vld [vmem:[%s260_s1 + $0x58] sm:$0xff]  ;;  %v31_v6 = vld [vmem:[%s260_s1 + $0x50] sm:$0xff] }
   0x3   :  { %146 = vmatprep.subr.mxu0 %v181_v0  ;;  %v30_v7 = vld [vmem:[%s260_s1 + $0x48] sm:$0xff]  ;;  %v29_v8 = vld [vmem:[%s260_s1 + $0x40] sm:$0xff]  ;;  %v28_v9 = vld [vmem:[%s260_s1 + $0x38] sm:$0xff] }
   0x4   :  { %147 = vmatpush3.msra.mxu0 %v35_v2  ;;  %v27_v10 = vld [vmem:[%s260_s1 + $0x30] sm:$0xff]  ;;  %v26_v11 = vld [vmem:[%s260_s1 + $0x28] sm:$0xff]  ;;  %v25_v12 = vld [vmem:[%s260_s1 + $0x20] sm:$0xff] }
   0x5   :  { %148 = vmatprep.subr.mxu0 %v181_v0  ;;  %v24_v13 = vld [vmem:[%s260_s1 + $0x18] sm:$0xff]  ;;  %v23_v14 = vld [vmem:[%s260_s1 + $0x10] sm:$0xff]  ;;  %v22_v15 = vld [vmem:[%s260_s1 + $0x8] sm:$0xff] }
   0x6   :  { %149 = vmatpush3.msra.mxu0 %v34_v3  ;;  %v21_v16 = vld [vmem:[%s260_s1] sm:$0xff] }
   0x7   :  { %150 = vmatprep.subr.mxu0 %v181_v0  ;;  %v20_v17 = vld [vmem:[%s261_s0] sm:$0xff] }
   0x8   :  { %151 = vmatpush3.msra.mxu0 %v33_v4  ;;  %v126_v18 = vld [vmem:[%s262_s2] ss:$0 sm:$0xff] }
   0x9   :  { %152 = vmatprep.subr.mxu0 %v181_v0 }
   0xa   :  { %153 = vmatpush3.msra.mxu0 %v32_v5 }
   0xb   :  { %154 = vmatprep.subr.mxu0 %v181_v0 }
   0xc   :  { %155 = vmatpush3.msra.mxu0 %v31_v6 }
   0xd   :  { %156 = vmatprep.subr.mxu0 %v181_v0 }
   0xe   :  { %157 = vmatpush3.msra.mxu0 %v30_v7 }
   0xf   :  { %158 = vmatprep.subr.mxu0 %v181_v0 }
  0x10   :  { %159 = vmatpush3.msra.mxu0 %v29_v8 }
  0x11   :  { %160 = vmatprep.subr.mxu0 %v181_v0 }
  0x12   :  { %161 = vmatpush3.msra.mxu0 %v28_v9 }
  0x13   :  { %162 = vmatprep.subr.mxu0 %v181_v0 }
  0x14   :  { %163 = vmatpush3.msra.mxu0 %v27_v10 }
  0x15   :  { %164 = vmatprep.subr.mxu0 %v181_v0 }
  0x16   :  { %165 = vmatpush3.msra.mxu0 %v26_v11 }
  0x17   :  { %166 = vmatprep.subr.mxu0 %v181_v0 }
  0x18   :  { %167 = vmatpush3.msra.mxu0 %v25_v12 }
  0x19   :  { %168 = vmatprep.subr.mxu0 %v181_v0 }
  0x1a   :  { %169 = vmatpush3.msra.mxu0 %v24_v13 }
  0x1b   :  { %170 = vmatprep.subr.mxu0 %v181_v0 }
  0x1c   :  { %171 = vmatpush3.msra.mxu0 %v23_v14 }
  0x1d   :  { %172 = vmatprep.subr.mxu0 %v181_v0 }
  0x1e   :  { %173 = vmatpush3.msra.mxu0 %v22_v15 }
  0x1f   :  { %174 = vmatprep.subr.mxu0 %v181_v0 }
  0x20   :  { %175 = vmatpush3.msra.mxu0 %v21_v16 }
  0x21   :  { %177 = vmatmul.mubr.f32.vlgmr.msra.gmra.mxu0 %v20_v17 }
  0xe1   :  { %v103_v19 = vpop.f32.mrf.mxu0 }
  0xe2   :  { %v120_v20 = vadd.f32 %v126_v18, %v103_v19 }
  0xe3   :  { %v178_v21 = vpop.f32.mrf.mxu0 }
  0xe4   :  { %121 = vst [vmem:[%s263_s3] sm:$0xff] %v120_v20 }

</bundles_post_ra>
